<compile_context>
chip_gen: v7x
topology: tpu7x:2x2x1
jax: 0.10.0
libtpu: 0.0.40
codegen_flags: <defaults>
</compile_context>

<pallas_src>
import functools

import jax
import jax.numpy as jnp
from jax.experimental import pallas as pl
from jax.experimental.pallas import tpu as pltpu


def _same_pad(in_size, k, stride, dilation=1):
    """TF 'same' padding used by SamePadConv2d. Returns (total_pad, out_size)."""
    eff = (k - 1) * dilation + 1
    out = (in_size + stride - 1) // stride
    pad = max(0, (out - 1) * stride + eff - in_size)
    return pad, out


def _sigmoid(v):
    # exp issues on the EUP; the reciprocal uses the approx EUP vrcp -> no VPU divide.
    return pl.reciprocal(1.0 + jnp.exp(-v), approx=True)


def _swish(v):
    return v * _sigmoid(v)


# ---------------------------------------------------------------------------
# Fused kernel: expand 1x1 + pad + depthwise kxk + SE + gate + project + skip
# ---------------------------------------------------------------------------
def _mbconv_kernel(*refs, has_expand, has_se, do_skip, kh_size, kw_size,
                   stride, pad_top, pad_left, h_in, w_in, hout, wout,
                   any_pad, mxu_dtype):
    it = iter(refs)
    x_ref = next(it)
    if has_expand:
        ew_ref, escale_ref, ebias_ref = next(it), next(it), next(it)
    dww_ref, dscale_ref, dbias_ref = next(it), next(it), next(it)
    if has_se:
        sw1t_ref, sb1_ref, sw2_ref, sb2_ref = next(it), next(it), next(it), next(it)
    pw_ref, pscale_ref, pbias_ref = next(it), next(it), next(it)
    y_ref = next(it)
    xpad_ref = next(it)

    mid = xpad_ref.shape[3]
    cin = x_ref.shape[3]

    x = x_ref[0]                                            # (H, W, Cin)

    # --- 1) expand 1x1 conv + folded BN + Swish (MXU, native/bf16 operands) --
    if has_expand:
        x2d = x.reshape(h_in * w_in, cin).astype(mxu_dtype)
        e = jnp.dot(x2d, ew_ref[...], preferred_element_type=jnp.float32)
        e = e * escale_ref[...] + ebias_ref[...]
        e = _swish(e).reshape(h_in, w_in, mid)
    else:
        e = x.astype(jnp.float32)

    # --- 2) TF 'same' zero padding done inside VMEM ---------------------------
    # Zero only the thin border rows/cols (not the whole scratch); the interior
    # is fully overwritten below.  Done every step (not once under
    # pl.when(program_id==0)) so it stays correct when the batch axis is
    # sharded across TensorCores.
    if any_pad:
        hp, wp = xpad_ref.shape[1], xpad_ref.shape[2]
        pad_bottom = hp - pad_top - h_in
        pad_right = wp - pad_left - w_in
        if pad_top:
            xpad_ref[0, 0:pad_top, :, :] = jnp.zeros((pad_top, wp, mid), xpad_ref.dtype)
        if pad_bottom:
            xpad_ref[0, pad_top + h_in:hp, :, :] = jnp.zeros((pad_bottom, wp, mid), xpad_ref.dtype)
        if pad_left:
            xpad_ref[0, pad_top:pad_top + h_in, 0:pad_left, :] = (
                jnp.zeros((h_in, pad_left, mid), xpad_ref.dtype))
        if pad_right:
            xpad_ref[0, pad_top:pad_top + h_in, pad_left + w_in:wp, :] = (
                jnp.zeros((h_in, pad_right, mid), xpad_ref.dtype))

    xpad_ref[0, pad_top:pad_top + h_in, pad_left:pad_left + w_in, :] = (
        e.astype(xpad_ref.dtype))

    # --- 3) depthwise kxk conv + folded BN + Swish (taps = VMEM windows) ------
    w_all = dww_ref[...]                                    # (KH, KW, mid), tiny
    acc = jnp.zeros((hout, wout, mid), jnp.float32)
    for kh in range(kh_size):
        for kw in range(kw_size):
            if stride == 1:
                patch = xpad_ref[0, kh:kh + hout, kw:kw + wout, :]
            else:
                patch = xpad_ref[0, pl.ds(kh, hout, stride),
                                 pl.ds(kw, wout, stride), :]
            acc = acc + patch.astype(jnp.float32) * w_all[kh, kw, :]
    dwact = acc * dscale_ref[...] + dbias_ref[...]
    dwact = _swish(dwact)                                   # (hout, wout, mid) f32

    # --- 4) SE squeeze/excite + sigmoid gate (microscopic, VPU/XLU) -----------
    if has_se:
        inv_hw = 1.0 / float(hout * wout)
        pooled = jnp.sum(dwact, axis=(0, 1)).reshape(1, mid) * inv_hw   # (1, mid)
        # FC1: (1,mid) x (mid,sq) done as broadcast-mul + lane reduce on w1^T.
        s = jnp.sum(pooled * sw1t_ref[...], axis=1, keepdims=True) + sb1_ref[...]  # (sq,1)
        s = _swish(s)
        # FC2: (1,sq) x (sq,mid) as broadcast-mul + sublane reduce.
        g = jnp.sum(s * sw2_ref[...], axis=0, keepdims=True) + sb2_ref[...]        # (1,mid)
        gate = _sigmoid(g)
        dwact = dwact * gate.reshape(1, 1, mid)

    # --- 5) project 1x1 conv + folded BN (+ residual) --------------------------
    xg = dwact.reshape(hout * wout, mid).astype(mxu_dtype)
    y = jnp.dot(xg, pw_ref[...], preferred_element_type=jnp.float32)
    y = y * pscale_ref[...] + pbias_ref[...]
    if do_skip:
        y = y + x.reshape(h_in * w_in, cin).astype(jnp.float32)
    y_ref[0] = y.reshape(hout, wout, y.shape[-1]).astype(y_ref.dtype)


def mbconv_forward_nhwc(x, params, *, expand, kernel_size, stride, skip,
                        se_ratio, mxu_dtype=None):
    """Fused MBConv forward on NHWC input; one pallas_call, grid over images."""
    n, h, w, cin = x.shape
    has_expand = expand != 1
    has_se = se_ratio > 0
    dw_w = params["dw_w"]
    kh, kw, mid = dw_w.shape
    assert kh == kernel_size and kw == kernel_size
    cout = params["proj_w"].shape[1]
    do_skip = bool(skip and stride == 1 and cin == cout)

    pad_h, hout = _same_pad(h, kh, stride)
    pad_w, wout = _same_pad(w, kw, stride)
    hp, wp = h + pad_h, w + pad_w
    pad_top, pad_left = pad_h // 2, pad_w // 2            # odd extra -> bottom/right

    if mxu_dtype is None:
        mxu_dtype = x.dtype                                # no forced f32 upcast
    mxu_dtype = jnp.dtype(mxu_dtype)
    f32 = jnp.float32

    def _resident(arr):
        nd = arr.ndim
        return pl.BlockSpec(arr.shape, lambda i, _nd=nd: (0,) * _nd)

    in_specs = [pl.BlockSpec((1, h, w, cin), lambda i: (i, 0, 0, 0))]
    args = [x]

    if has_expand:
        ew = params["expand_w"].astype(mxu_dtype)
        esc = params["expand_scale"].reshape(1, mid).astype(f32)
        ebi = params["expand_bias"].reshape(1, mid).astype(f32)
        for a in (ew, esc, ebi):
            in_specs.append(_resident(a)); args.append(a)

    dww = dw_w.astype(f32)                                 # elementwise path stays f32
    dsc = params["dw_scale"].reshape(1, mid).astype(f32)
    dbi = params["dw_bias"].reshape(1, mid).astype(f32)
    for a in (dww, dsc, dbi):
        in_specs.append(_resident(a)); args.append(a)

    if has_se:
        sq = params["se_w1"].shape[1]
        sw1t = jnp.transpose(params["se_w1"]).astype(f32)  # (sq, mid)
        sb1 = params["se_b1"].reshape(sq, 1).astype(f32)
        sw2 = params["se_w2"].astype(f32)                  # (sq, mid)
        sb2 = params["se_b2"].reshape(1, mid).astype(f32)
        for a in (sw1t, sb1, sw2, sb2):
            in_specs.append(_resident(a)); args.append(a)

    pw = params["proj_w"].astype(mxu_dtype)
    psc = params["proj_scale"].reshape(1, cout).astype(f32)
    pbi = params["proj_bias"].reshape(1, cout).astype(f32)
    for a in (pw, psc, pbi):
        in_specs.append(_resident(a)); args.append(a)

    # Explicit VMEM budget (double-buffered blocks + resident weights + scratch).
    item = jnp.dtype(x.dtype).itemsize
    block_bytes = (h * w * cin + hout * wout * cout) * item
    weight_bytes = sum(int(a.size) * jnp.dtype(a.dtype).itemsize for a in args[1:])
    scratch_bytes = hp * wp * mid * 4
    needed = 2 * block_bytes + 2 * weight_bytes + scratch_bytes
    vmem_limit = int(min(64 << 20, max(16 << 20, 2 * needed + (4 << 20))))

    kernel = functools.partial(
        _mbconv_kernel, has_expand=has_expand, has_se=has_se, do_skip=do_skip,
        kh_size=kh, kw_size=kw, stride=stride, pad_top=pad_top,
        pad_left=pad_left, h_in=h, w_in=w, hout=hout, wout=wout,
        any_pad=(pad_h + pad_w) > 0, mxu_dtype=mxu_dtype)

    y = pl.pallas_call(
        kernel,
        out_shape=jax.ShapeDtypeStruct((n, hout, wout, cout), x.dtype),
        grid=(n,),
        in_specs=in_specs,
        out_specs=pl.BlockSpec((1, hout, wout, cout), lambda i: (i, 0, 0, 0)),
        scratch_shapes=[pltpu.VMEM((1, hp, wp, mid), jnp.float32)],
        compiler_params=pltpu.CompilerParams(
            dimension_semantics=("parallel",),
            vmem_limit_bytes=vmem_limit),
    )(*args)
    return y


def mbconv_forward(x_nchw, params, *, expand, kernel_size, stride, skip,
                   se_ratio, mxu_dtype=None):
    # NOTE: keep the surrounding network NHWC end-to-end in production to avoid
    # these two full HBM passes per block; they exist here only to match the
    # PyTorch NCHW calling convention of the reference module.
    x = jnp.transpose(x_nchw, (0, 2, 3, 1))               # NCHW -> NHWC
    y = mbconv_forward_nhwc(x, params, expand=expand, kernel_size=kernel_size,
                            stride=stride, skip=skip, se_ratio=se_ratio,
                            mxu_dtype=mxu_dtype)
    return jnp.transpose(y, (0, 3, 1, 2))                 # NHWC -> NCHW


# ---------------------------------------------------------------------------
# parameter init (deterministic, synthetic) and pure-JAX reference
# ---------------------------------------------------------------------------
def _bn_fold(gamma, beta, mean, var, eps=1e-3):
    scale = gamma / jnp.sqrt(var + eps)
    return scale, beta - mean * scale


def init_mbconv_params(key, in_, out_, expand, kernel_size, se_ratio):
    mid_ = in_ * expand
    sq = int(in_ * se_ratio)
    k = jax.random.split(key, 16)
    p = {}
    if expand != 1:
        p["expand_w"] = 0.1 * jax.random.normal(k[0], (in_, mid_), jnp.float32)
        g = 1.0 + 0.1 * jax.random.normal(k[1], (mid_,), jnp.float32)
        b = 0.1 * jax.random.normal(k[2], (mid_,), jnp.float32)
        p["expand_scale"], p["expand_bias"] = _bn_fold(g, b, jnp.zeros(mid_), jnp.ones(mid_))
    p["dw_w"] = 0.1 * jax.random.normal(k[3], (kernel_size, kernel_size, mid_), jnp.float32)
    g = 1.0 + 0.1 * jax.random.normal(k[4], (mid_,), jnp.float32)
    b = 0.1 * jax.random.normal(k[5], (mid_,), jnp.float32)
    p["dw_scale"], p["dw_bias"] = _bn_fold(g, b, jnp.zeros(mid_), jnp.ones(mid_))
    if se_ratio > 0:
        p["se_w1"] = 0.1 * jax.random.normal(k[6], (mid_, sq), jnp.float32)
        p["se_b1"] = 0.1 * jax.random.normal(k[7], (sq,), jnp.float32)
        p["se_w2"] = 0.1 * jax.random.normal(k[8], (sq, mid_), jnp.float32)
        p["se_b2"] = 0.1 * jax.random.normal(k[9], (mid_,), jnp.float32)
    p["proj_w"] = 0.1 * jax.random.normal(k[10], (mid_, out_), jnp.float32)
    g = 1.0 + 0.1 * jax.random.normal(k[11], (out_,), jnp.float32)
    b = 0.1 * jax.random.normal(k[12], (out_,), jnp.float32)
    p["proj_scale"], p["proj_bias"] = _bn_fold(g, b, jnp.zeros(out_), jnp.ones(out_))
    return p


def mbconv_reference(x_nchw, params, *, expand, kernel_size, stride, skip, se_ratio):
    swish = lambda v: v * jax.nn.sigmoid(v)
    x = jnp.transpose(x_nchw, (0, 2, 3, 1)).astype(jnp.float32)
    inputs = x
    in_ = x.shape[-1]
    if expand != 1:
        x = swish(jnp.einsum("nhwc,cd->nhwd", x, params["expand_w"])
                  * params["expand_scale"] + params["expand_bias"])
    n, h, w, c = x.shape
    pad_h, hout = _same_pad(h, kernel_size, stride)
    pad_w, wout = _same_pad(w, kernel_size, stride)
    xp = jnp.pad(x, ((0, 0), (pad_h // 2, pad_h - pad_h // 2),
                     (pad_w // 2, pad_w - pad_w // 2), (0, 0)))
    acc = jnp.zeros((n, hout, wout, c), jnp.float32)
    for kh in range(kernel_size):
        for kw in range(kernel_size):
            patch = jax.lax.slice(
                xp, (0, kh, kw, 0),
                (n, kh + (hout - 1) * stride + 1, kw + (wout - 1) * stride + 1, c),
                (1, stride, stride, 1))
            acc = acc + patch * params["dw_w"][kh, kw, :]
    x = swish(acc * params["dw_scale"] + params["dw_bias"])
    if se_ratio > 0:
        pooled = jnp.mean(x, axis=(1, 2))
        s = swish(pooled @ params["se_w1"] + params["se_b1"])
        s = s @ params["se_w2"] + params["se_b2"]
        x = x * jax.nn.sigmoid(s)[:, None, None, :]
    y = (jnp.einsum("nhwc,cd->nhwd", x, params["proj_w"])
         * params["proj_scale"] + params["proj_bias"])
    if skip and stride == 1 and in_ == y.shape[-1]:
        y = y + inputs
    return jnp.transpose(y, (0, 3, 1, 2))


if __name__ == "__main__":
    # MBConv config: in_=4, out_=4, expand=2, kernel_size=3, stride=1, skip=True, se_ratio=0.25
    N, CIN, H, W = 2, 4, 16, 16
    OUT, EXPAND, KSIZE, STRIDE, SKIP, SE_RATIO = 4, 2, 3, 1, True, 0.25

    key = jax.random.PRNGKey(0)
    kx, kp = jax.random.split(key)
    x = jax.random.normal(kx, (N, CIN, H, W), jnp.float32)
    params = init_mbconv_params(kp, CIN, OUT, EXPAND, KSIZE, SE_RATIO)

    y_ref = mbconv_reference(x, params, expand=EXPAND, kernel_size=KSIZE,
                             stride=STRIDE, skip=SKIP, se_ratio=SE_RATIO)

    # f32 operands (native dtype of the demo input).
    fwd = jax.jit(functools.partial(mbconv_forward, expand=EXPAND, kernel_size=KSIZE,
                                    stride=STRIDE, skip=SKIP, se_ratio=SE_RATIO))
    y = fwd(x, params)
    jax.block_until_ready(y)
    assert y.shape == (N, OUT, H, W), y.shape
    err = float(jnp.max(jnp.abs(y - y_ref)))
    # tolerance accounts for the approx-reciprocal (EUP) sigmoid in the kernel
    assert err < 2e-2, f"f32 max abs error {err}"

    # bf16 MXU operands (production path on v6e/v7x); elementwise epilogue stays f32.
    fwd_bf16 = jax.jit(functools.partial(mbconv_forward, expand=EXPAND, kernel_size=KSIZE,
                                         stride=STRIDE, skip=SKIP, se_ratio=SE_RATIO,
                                         mxu_dtype=jnp.bfloat16))
    y16 = fwd_bf16(x, params)
    jax.block_until_ready(y16)
    err16 = float(jnp.max(jnp.abs(y16 - y_ref)))
    assert err16 < 5e-2, f"bf16 max abs error {err16}"

    print("KERNEL_OK")
</pallas_src>

<mosaic_0001>
module attributes {stable_mosaic.version = 11 : i64} {
  func.func @_mbconv_kernel(%arg0: i32, %arg1: memref<1x16x16x4xf32, #tpu.memory_space<vmem>>, %arg2: memref<4x8xf32, #tpu.memory_space<vmem>>, %arg3: memref<1x8xf32, #tpu.memory_space<vmem>>, %arg4: memref<1x8xf32, #tpu.memory_space<vmem>>, %arg5: memref<3x3x8xf32, #tpu.memory_space<vmem>>, %arg6: memref<1x8xf32, #tpu.memory_space<vmem>>, %arg7: memref<1x8xf32, #tpu.memory_space<vmem>>, %arg8: memref<1x8xf32, #tpu.memory_space<vmem>>, %arg9: memref<1x1xf32, #tpu.memory_space<vmem>>, %arg10: memref<1x8xf32, #tpu.memory_space<vmem>>, %arg11: memref<1x8xf32, #tpu.memory_space<vmem>>, %arg12: memref<8x4xf32, #tpu.memory_space<vmem>>, %arg13: memref<1x4xf32, #tpu.memory_space<vmem>>, %arg14: memref<1x4xf32, #tpu.memory_space<vmem>>, %arg15: memref<1x16x16x4xf32, #tpu.memory_space<vmem>>, %arg16: memref<1x18x18x8xf32, #tpu.memory_space<vmem>>) attributes {dimension_semantics = [#tpu.dimension_semantics<parallel>], iteration_bounds = array<i64: 2>, scalar_prefetch = 0 : i64, scratch_operands = 1 : i64, tpu.core_type = #tpu.core_type<tc>, window_params = [{transform_indices = @transform_0, window_bounds = array<i64: 1, 16, 16, 4>}, {pipeline_mode = #tpu.pipeline_mode<synchronous>, transform_indices = @transform_1, window_bounds = array<i64: 4, 8>}, {pipeline_mode = #tpu.pipeline_mode<synchronous>, transform_indices = @transform_2, window_bounds = array<i64: 1, 8>}, {pipeline_mode = #tpu.pipeline_mode<synchronous>, transform_indices = @transform_3, window_bounds = array<i64: 1, 8>}, {pipeline_mode = #tpu.pipeline_mode<synchronous>, transform_indices = @transform_4, window_bounds = array<i64: 3, 3, 8>}, {pipeline_mode = #tpu.pipeline_mode<synchronous>, transform_indices = @transform_5, window_bounds = array<i64: 1, 8>}, {pipeline_mode = #tpu.pipeline_mode<synchronous>, transform_indices = @transform_6, window_bounds = array<i64: 1, 8>}, {pipeline_mode = #tpu.pipeline_mode<synchronous>, transform_indices = @transform_7, window_bounds = array<i64: 1, 8>}, {pipeline_mode = #tpu.pipeline_mode<synchronous>, transform_indices = @transform_8, window_bounds = array<i64: 1, 1>}, {pipeline_mode = #tpu.pipeline_mode<synchronous>, transform_indices = @transform_9, window_bounds = array<i64: 1, 8>}, {pipeline_mode = #tpu.pipeline_mode<synchronous>, transform_indices = @transform_10, window_bounds = array<i64: 1, 8>}, {pipeline_mode = #tpu.pipeline_mode<synchronous>, transform_indices = @transform_11, window_bounds = array<i64: 8, 4>}, {pipeline_mode = #tpu.pipeline_mode<synchronous>, transform_indices = @transform_12, window_bounds = array<i64: 1, 4>}, {pipeline_mode = #tpu.pipeline_mode<synchronous>, transform_indices = @transform_13, window_bounds = array<i64: 1, 4>}, {transform_indices = @transform_14, window_bounds = array<i64: 1, 16, 16, 4>}]} {
    %c0 = arith.constant 0 : index
    %c0_0 = arith.constant 0 : index
    %c0_1 = arith.constant 0 : index
    %c0_2 = arith.constant 0 : index
    %0 = vector.load %arg1[%c0, %c0_0, %c0_1, %c0_2] : memref<1x16x16x4xf32, #tpu.memory_space<vmem>>, vector<1x16x16x4xf32>
    %1 = vector.shape_cast %0 : vector<1x16x16x4xf32> to vector<16x16x4xf32>
    %2 = vector.shape_cast %1 : vector<16x16x4xf32> to vector<256x4xf32>
    %c0_3 = arith.constant 0 : index
    %c0_4 = arith.constant 0 : index
    %3 = vector.load %arg2[%c0_3, %c0_4] : memref<4x8xf32, #tpu.memory_space<vmem>>, vector<4x8xf32>
    %cst = arith.constant dense<0.000000e+00> : vector<256x8xf32>
    %4 = tpu.matmul %2, %3, %cst {dimension_numbers = #tpu.dot_dimension_numbers<[1], [0], [0], [1], [0, 0, 1, 1], [], []>} : vector<256x4xf32>, vector<4x8xf32>, vector<256x8xf32> -> vector<256x8xf32>
    %c0_5 = arith.constant 0 : index
    %c0_6 = arith.constant 0 : index
    %5 = vector.load %arg3[%c0_5, %c0_6] : memref<1x8xf32, #tpu.memory_space<vmem>>, vector<1x8xf32>
    %6 = vector.broadcast %5 : vector<1x8xf32> to vector<256x8xf32>
    %7 = arith.mulf %4, %6 : vector<256x8xf32>
    %c0_7 = arith.constant 0 : index
    %c0_8 = arith.constant 0 : index
    %8 = vector.load %arg4[%c0_7, %c0_8] : memref<1x8xf32, #tpu.memory_space<vmem>>, vector<1x8xf32>
    %9 = vector.broadcast %8 : vector<1x8xf32> to vector<256x8xf32>
    %10 = arith.addf %7, %9 : vector<256x8xf32>
    %cst_9 = arith.constant 0.000000e+00 : f32
    %11 = vector.broadcast %cst_9 : f32 to vector<256x8xf32>
    %12 = arith.subf %11, %10 : vector<256x8xf32>
    %13 = math.exp %12 : vector<256x8xf32>
    %cst_10 = arith.constant 1.000000e+00 : f32
    %14 = vector.broadcast %cst_10 : f32 to vector<256x8xf32>
    %15 = arith.addf %14, %13 : vector<256x8xf32>
    %16 = tpu.reciprocal %15 {approx = true} : vector<256x8xf32> -> vector<256x8xf32>
    %17 = arith.mulf %10, %16 : vector<256x8xf32>
    %18 = vector.shape_cast %17 : vector<256x8xf32> to vector<16x16x8xf32>
    %cst_11 = arith.constant 0.000000e+00 : f32
    %19 = vector.broadcast %cst_11 : f32 to vector<1x18x8xf32>
    %c0_12 = arith.constant 0 : index
    %c0_13 = arith.constant 0 : index
    %c0_14 = arith.constant 0 : index
    %c0_15 = arith.constant 0 : index
    %20 = vector.load %arg16[%c0_12, %c0_13, %c0_14, %c0_15] : memref<1x18x18x8xf32, #tpu.memory_space<vmem>>, vector<1x1x18x8xf32>
    %21 = vector.shape_cast %20 : vector<1x1x18x8xf32> to vector<1x18x8xf32>
    %22 = vector.shape_cast %19 : vector<1x18x8xf32> to vector<1x1x18x8xf32>
    tpu.vector_store %arg16[%c0_12, %c0_13, %c0_14, %c0_15], %22 {strides = array<i32>} : memref<1x18x18x8xf32, #tpu.memory_space<vmem>>, vector<1x1x18x8xf32>,
    %cst_16 = arith.constant 0.000000e+00 : f32
    %23 = vector.broadcast %cst_16 : f32 to vector<1x18x8xf32>
    %c0_17 = arith.constant 0 : index
    %c17 = arith.constant 17 : index
    %c0_18 = arith.constant 0 : index
    %c0_19 = arith.constant 0 : index
    %24 = vector.load %arg16[%c0_17, %c17, %c0_18, %c0_19] : memref<1x18x18x8xf32, #tpu.memory_space<vmem>>, vector<1x1x18x8xf32>
    %25 = vector.shape_cast %24 : vector<1x1x18x8xf32> to vector<1x18x8xf32>
    %26 = vector.shape_cast %23 : vector<1x18x8xf32> to vector<1x1x18x8xf32>
    tpu.vector_store %arg16[%c0_17, %c17, %c0_18, %c0_19], %26 {strides = array<i32>} : memref<1x18x18x8xf32, #tpu.memory_space<vmem>>, vector<1x1x18x8xf32>,
    %cst_20 = arith.constant 0.000000e+00 : f32
    %27 = vector.broadcast %cst_20 : f32 to vector<16x1x8xf32>
    %c0_21 = arith.constant 0 : index
    %c1 = arith.constant 1 : index
    %c0_22 = arith.constant 0 : index
    %c0_23 = arith.constant 0 : index
    %28 = vector.load %arg16[%c0_21, %c1, %c0_22, %c0_23] : memref<1x18x18x8xf32, #tpu.memory_space<vmem>>, vector<1x16x1x8xf32>
    %29 = vector.shape_cast %28 : vector<1x16x1x8xf32> to vector<16x1x8xf32>
    %30 = vector.shape_cast %27 : vector<16x1x8xf32> to vector<1x16x1x8xf32>
    tpu.vector_store %arg16[%c0_21, %c1, %c0_22, %c0_23], %30 {strides = array<i32>} : memref<1x18x18x8xf32, #tpu.memory_space<vmem>>, vector<1x16x1x8xf32>,
    %cst_24 = arith.constant 0.000000e+00 : f32
    %31 = vector.broadcast %cst_24 : f32 to vector<16x1x8xf32>
    %c0_25 = arith.constant 0 : index
    %c1_26 = arith.constant 1 : index
    %c17_27 = arith.constant 17 : index
    %c0_28 = arith.constant 0 : index
    %32 = vector.load %arg16[%c0_25, %c1_26, %c17_27, %c0_28] : memref<1x18x18x8xf32, #tpu.memory_space<vmem>>, vector<1x16x1x8xf32>
    %33 = vector.shape_cast %32 : vector<1x16x1x8xf32> to vector<16x1x8xf32>
    %34 = vector.shape_cast %31 : vector<16x1x8xf32> to vector<1x16x1x8xf32>
    tpu.vector_store %arg16[%c0_25, %c1_26, %c17_27, %c0_28], %34 {strides = array<i32>} : memref<1x18x18x8xf32, #tpu.memory_space<vmem>>, vector<1x16x1x8xf32>,
    %c0_29 = arith.constant 0 : index
    %c1_30 = arith.constant 1 : index
    %c1_31 = arith.constant 1 : index
    %c0_32 = arith.constant 0 : index
    %35 = vector.load %arg16[%c0_29, %c1_30, %c1_31, %c0_32] : memref<1x18x18x8xf32, #tpu.memory_space<vmem>>, vector<1x16x16x8xf32>
    %36 = vector.shape_cast %35 : vector<1x16x16x8xf32> to vector<16x16x8xf32>
    %37 = vector.shape_cast %18 : vector<16x16x8xf32> to vector<1x16x16x8xf32>
    tpu.vector_store %arg16[%c0_29, %c1_30, %c1_31, %c0_32], %37 {strides = array<i32>} : memref<1x18x18x8xf32, #tpu.memory_space<vmem>>, vector<1x16x16x8xf32>,
    %c0_33 = arith.constant 0 : index
    %c0_34 = arith.constant 0 : index
    %c0_35 = arith.constant 0 : index
    %38 = vector.load %arg5[%c0_33, %c0_34, %c0_35] : memref<3x3x8xf32, #tpu.memory_space<vmem>>, vector<3x3x8xf32>
    %cst_36 = arith.constant 0.000000e+00 : f32
    %39 = vector.broadcast %cst_36 : f32 to vector<16x16x8xf32>
    %c0_37 = arith.constant 0 : index
    %c0_38 = arith.constant 0 : index
    %c0_39 = arith.constant 0 : index
    %c0_40 = arith.constant 0 : index
    %40 = vector.load %arg16[%c0_37, %c0_38, %c0_39, %c0_40] : memref<1x18x18x8xf32, #tpu.memory_space<vmem>>, vector<1x16x16x8xf32>
    %41 = vector.shape_cast %40 : vector<1x16x16x8xf32> to vector<16x16x8xf32>
    %42 = vector.extract_strided_slice %38 {offsets = [0, 0, 0], sizes = [1, 1, 8], strides = [1, 1, 1]} : vector<3x3x8xf32> to vector<1x1x8xf32>
    %43 = vector.shape_cast %42 : vector<1x1x8xf32> to vector<8xf32>
    %44 = vector.shape_cast %43 : vector<8xf32> to vector<1x1x8xf32>
    %45 = vector.broadcast %44 : vector<1x1x8xf32> to vector<16x16x8xf32>
    %46 = arith.mulf %41, %45 : vector<16x16x8xf32>
    %47 = arith.addf %39, %46 : vector<16x16x8xf32>
    %c0_41 = arith.constant 0 : index
    %c0_42 = arith.constant 0 : index
    %c1_43 = arith.constant 1 : index
    %c0_44 = arith.constant 0 : index
    %48 = vector.load %arg16[%c0_41, %c0_42, %c1_43, %c0_44] : memref<1x18x18x8xf32, #tpu.memory_space<vmem>>, vector<1x16x16x8xf32>
    %49 = vector.shape_cast %48 : vector<1x16x16x8xf32> to vector<16x16x8xf32>
    %50 = vector.extract_strided_slice %38 {offsets = [0, 1, 0], sizes = [1, 1, 8], strides = [1, 1, 1]} : vector<3x3x8xf32> to vector<1x1x8xf32>
    %51 = vector.shape_cast %50 : vector<1x1x8xf32> to vector<8xf32>
    %52 = vector.shape_cast %51 : vector<8xf32> to vector<1x1x8xf32>
    %53 = vector.broadcast %52 : vector<1x1x8xf32> to vector<16x16x8xf32>
    %54 = arith.mulf %49, %53 : vector<16x16x8xf32>
    %55 = arith.addf %47, %54 : vector<16x16x8xf32>
    %c0_45 = arith.constant 0 : index
    %c0_46 = arith.constant 0 : index
    %c2 = arith.constant 2 : index
    %c0_47 = arith.constant 0 : index
    %56 = vector.load %arg16[%c0_45, %c0_46, %c2, %c0_47] : memref<1x18x18x8xf32, #tpu.memory_space<vmem>>, vector<1x16x16x8xf32>
    %57 = vector.shape_cast %56 : vector<1x16x16x8xf32> to vector<16x16x8xf32>
    %58 = vector.extract_strided_slice %38 {offsets = [0, 2, 0], sizes = [1, 1, 8], strides = [1, 1, 1]} : vector<3x3x8xf32> to vector<1x1x8xf32>
    %59 = vector.shape_cast %58 : vector<1x1x8xf32> to vector<8xf32>
    %60 = vector.shape_cast %59 : vector<8xf32> to vector<1x1x8xf32>
    %61 = vector.broadcast %60 : vector<1x1x8xf32> to vector<16x16x8xf32>
    %62 = arith.mulf %57, %61 : vector<16x16x8xf32>
    %63 = arith.addf %55, %62 : vector<16x16x8xf32>
    %c0_48 = arith.constant 0 : index
    %c1_49 = arith.constant 1 : index
    %c0_50 = arith.constant 0 : index
    %c0_51 = arith.constant 0 : index
    %64 = vector.load %arg16[%c0_48, %c1_49, %c0_50, %c0_51] : memref<1x18x18x8xf32, #tpu.memory_space<vmem>>, vector<1x16x16x8xf32>
    %65 = vector.shape_cast %64 : vector<1x16x16x8xf32> to vector<16x16x8xf32>
    %66 = vector.extract_strided_slice %38 {offsets = [1, 0, 0], sizes = [1, 1, 8], strides = [1, 1, 1]} : vector<3x3x8xf32> to vector<1x1x8xf32>
    %67 = vector.shape_cast %66 : vector<1x1x8xf32> to vector<8xf32>
    %68 = vector.shape_cast %67 : vector<8xf32> to vector<1x1x8xf32>
    %69 = vector.broadcast %68 : vector<1x1x8xf32> to vector<16x16x8xf32>
    %70 = arith.mulf %65, %69 : vector<16x16x8xf32>
    %71 = arith.addf %63, %70 : vector<16x16x8xf32>
    %c0_52 = arith.constant 0 : index
    %c1_53 = arith.constant 1 : index
    %c1_54 = arith.constant 1 : index
    %c0_55 = arith.constant 0 : index
    %72 = vector.load %arg16[%c0_52, %c1_53, %c1_54, %c0_55] : memref<1x18x18x8xf32, #tpu.memory_space<vmem>>, vector<1x16x16x8xf32>
    %73 = vector.shape_cast %72 : vector<1x16x16x8xf32> to vector<16x16x8xf32>
    %74 = vector.extract_strided_slice %38 {offsets = [1, 1, 0], sizes = [1, 1, 8], strides = [1, 1, 1]} : vector<3x3x8xf32> to vector<1x1x8xf32>
    %75 = vector.shape_cast %74 : vector<1x1x8xf32> to vector<8xf32>
    %76 = vector.shape_cast %75 : vector<8xf32> to vector<1x1x8xf32>
    %77 = vector.broadcast %76 : vector<1x1x8xf32> to vector<16x16x8xf32>
    %78 = arith.mulf %73, %77 : vector<16x16x8xf32>
    %79 = arith.addf %71, %78 : vector<16x16x8xf32>
    %c0_56 = arith.constant 0 : index
    %c1_57 = arith.constant 1 : index
    %c2_58 = arith.constant 2 : index
    %c0_59 = arith.constant 0 : index
    %80 = vector.load %arg16[%c0_56, %c1_57, %c2_58, %c0_59] : memref<1x18x18x8xf32, #tpu.memory_space<vmem>>, vector<1x16x16x8xf32>
    %81 = vector.shape_cast %80 : vector<1x16x16x8xf32> to vector<16x16x8xf32>
    %82 = vector.extract_strided_slice %38 {offsets = [1, 2, 0], sizes = [1, 1, 8], strides = [1, 1, 1]} : vector<3x3x8xf32> to vector<1x1x8xf32>
    %83 = vector.shape_cast %82 : vector<1x1x8xf32> to vector<8xf32>
    %84 = vector.shape_cast %83 : vector<8xf32> to vector<1x1x8xf32>
    %85 = vector.broadcast %84 : vector<1x1x8xf32> to vector<16x16x8xf32>
    %86 = arith.mulf %81, %85 : vector<16x16x8xf32>
    %87 = arith.addf %79, %86 : vector<16x16x8xf32>
    %c0_60 = arith.constant 0 : index
    %c2_61 = arith.constant 2 : index
    %c0_62 = arith.constant 0 : index
    %c0_63 = arith.constant 0 : index
    %88 = vector.load %arg16[%c0_60, %c2_61, %c0_62, %c0_63] : memref<1x18x18x8xf32, #tpu.memory_space<vmem>>, vector<1x16x16x8xf32>
    %89 = vector.shape_cast %88 : vector<1x16x16x8xf32> to vector<16x16x8xf32>
    %90 = vector.extract_strided_slice %38 {offsets = [2, 0, 0], sizes = [1, 1, 8], strides = [1, 1, 1]} : vector<3x3x8xf32> to vector<1x1x8xf32>
    %91 = vector.shape_cast %90 : vector<1x1x8xf32> to vector<8xf32>
    %92 = vector.shape_cast %91 : vector<8xf32> to vector<1x1x8xf32>
    %93 = vector.broadcast %92 : vector<1x1x8xf32> to vector<16x16x8xf32>
    %94 = arith.mulf %89, %93 : vector<16x16x8xf32>
    %95 = arith.addf %87, %94 : vector<16x16x8xf32>
    %c0_64 = arith.constant 0 : index
    %c2_65 = arith.constant 2 : index
    %c1_66 = arith.constant 1 : index
    %c0_67 = arith.constant 0 : index
    %96 = vector.load %arg16[%c0_64, %c2_65, %c1_66, %c0_67] : memref<1x18x18x8xf32, #tpu.memory_space<vmem>>, vector<1x16x16x8xf32>
    %97 = vector.shape_cast %96 : vector<1x16x16x8xf32> to vector<16x16x8xf32>
    %98 = vector.extract_strided_slice %38 {offsets = [2, 1, 0], sizes = [1, 1, 8], strides = [1, 1, 1]} : vector<3x3x8xf32> to vector<1x1x8xf32>
    %99 = vector.shape_cast %98 : vector<1x1x8xf32> to vector<8xf32>
    %100 = vector.shape_cast %99 : vector<8xf32> to vector<1x1x8xf32>
    %101 = vector.broadcast %100 : vector<1x1x8xf32> to vector<16x16x8xf32>
    %102 = arith.mulf %97, %101 : vector<16x16x8xf32>
    %103 = arith.addf %95, %102 : vector<16x16x8xf32>
    %c0_68 = arith.constant 0 : index
    %c2_69 = arith.constant 2 : index
    %c2_70 = arith.constant 2 : index
    %c0_71 = arith.constant 0 : index
    %104 = vector.load %arg16[%c0_68, %c2_69, %c2_70, %c0_71] : memref<1x18x18x8xf32, #tpu.memory_space<vmem>>, vector<1x16x16x8xf32>
    %105 = vector.shape_cast %104 : vector<1x16x16x8xf32> to vector<16x16x8xf32>
    %106 = vector.extract_strided_slice %38 {offsets = [2, 2, 0], sizes = [1, 1, 8], strides = [1, 1, 1]} : vector<3x3x8xf32> to vector<1x1x8xf32>
    %107 = vector.shape_cast %106 : vector<1x1x8xf32> to vector<8xf32>
    %108 = vector.shape_cast %107 : vector<8xf32> to vector<1x1x8xf32>
    %109 = vector.broadcast %108 : vector<1x1x8xf32> to vector<16x16x8xf32>
    %110 = arith.mulf %105, %109 : vector<16x16x8xf32>
    %111 = arith.addf %103, %110 : vector<16x16x8xf32>
    %c0_72 = arith.constant 0 : index
    %c0_73 = arith.constant 0 : index
    %112 = vector.load %arg6[%c0_72, %c0_73] : memref<1x8xf32, #tpu.memory_space<vmem>>, vector<1x8xf32>
    %113 = vector.shape_cast %112 : vector<1x8xf32> to vector<1x1x8xf32>
    %114 = vector.broadcast %113 : vector<1x1x8xf32> to vector<16x16x8xf32>
    %115 = arith.mulf %111, %114 : vector<16x16x8xf32>
    %c0_74 = arith.constant 0 : index
    %c0_75 = arith.constant 0 : index
    %116 = vector.load %arg7[%c0_74, %c0_75] : memref<1x8xf32, #tpu.memory_space<vmem>>, vector<1x8xf32>
    %117 = vector.shape_cast %116 : vector<1x8xf32> to vector<1x1x8xf32>
    %118 = vector.broadcast %117 : vector<1x1x8xf32> to vector<16x16x8xf32>
    %119 = arith.addf %115, %118 : vector<16x16x8xf32>
    %cst_76 = arith.constant 0.000000e+00 : f32
    %120 = vector.broadcast %cst_76 : f32 to vector<16x16x8xf32>
    %121 = arith.subf %120, %119 : vector<16x16x8xf32>
    %122 = math.exp %121 : vector<16x16x8xf32>
    %cst_77 = arith.constant 1.000000e+00 : f32
    %123 = vector.broadcast %cst_77 : f32 to vector<16x16x8xf32>
    %124 = arith.addf %123, %122 : vector<16x16x8xf32>
    %125 = tpu.reciprocal %124 {approx = true} : vector<16x16x8xf32> -> vector<16x16x8xf32>
    %126 = arith.mulf %119, %125 : vector<16x16x8xf32>
    %cst_78 = arith.constant dense<0.000000e+00> : vector<8xf32>
    %127 = vector.multi_reduction <add>, %126, %cst_78 [0, 1] : vector<16x16x8xf32> to vector<8xf32>
    %128 = vector.shape_cast %127 : vector<8xf32> to vector<1x8xf32>
    %cst_79 = arith.constant 3.906250e-03 : f32
    %129 = vector.broadcast %cst_79 : f32 to vector<1x8xf32>
    %130 = arith.mulf %128, %129 : vector<1x8xf32>
    %c0_80 = arith.constant 0 : index
    %c0_81 = arith.constant 0 : index
    %131 = vector.load %arg8[%c0_80, %c0_81] : memref<1x8xf32, #tpu.memory_space<vmem>>, vector<1x8xf32>
    %132 = arith.mulf %130, %131 : vector<1x8xf32>
    %cst_82 = arith.constant dense<0.000000e+00> : vector<1xf32>
    %133 = vector.multi_reduction <add>, %132, %cst_82 [1] : vector<1x8xf32> to vector<1xf32>
    %134 = vector.shape_cast %133 : vector<1xf32> to vector<1x1xf32>
    %c0_83 = arith.constant 0 : index
    %c0_84 = arith.constant 0 : index
    %135 = vector.load %arg9[%c0_83, %c0_84] : memref<1x1xf32, #tpu.memory_space<vmem>>, vector<1x1xf32>
    %136 = arith.addf %134, %135 : vector<1x1xf32>
    %cst_85 = arith.constant 0.000000e+00 : f32
    %137 = vector.broadcast %cst_85 : f32 to vector<1x1xf32>
    %138 = arith.subf %137, %136 : vector<1x1xf32>
    %139 = math.exp %138 : vector<1x1xf32>
    %cst_86 = arith.constant 1.000000e+00 : f32
    %140 = vector.broadcast %cst_86 : f32 to vector<1x1xf32>
    %141 = arith.addf %140, %139 : vector<1x1xf32>
    %142 = tpu.reciprocal %141 {approx = true} : vector<1x1xf32> -> vector<1x1xf32>
    %143 = arith.mulf %136, %142 : vector<1x1xf32>
    %c0_87 = arith.constant 0 : index
    %c0_88 = arith.constant 0 : index
    %144 = vector.load %arg10[%c0_87, %c0_88] : memref<1x8xf32, #tpu.memory_space<vmem>>, vector<1x8xf32>
    %145 = vector.broadcast %143 : vector<1x1xf32> to vector<1x8xf32>
    %146 = arith.mulf %145, %144 : vector<1x8xf32>
    %cst_89 = arith.constant dense<0.000000e+00> : vector<8xf32>
    %147 = vector.multi_reduction <add>, %146, %cst_89 [0] : vector<1x8xf32> to vector<8xf32>
    %148 = vector.shape_cast %147 : vector<8xf32> to vector<1x8xf32>
    %c0_90 = arith.constant 0 : index
    %c0_91 = arith.constant 0 : index
    %149 = vector.load %arg11[%c0_90, %c0_91] : memref<1x8xf32, #tpu.memory_space<vmem>>, vector<1x8xf32>
    %150 = arith.addf %148, %149 : vector<1x8xf32>
    %cst_92 = arith.constant 0.000000e+00 : f32
    %151 = vector.broadcast %cst_92 : f32 to vector<1x8xf32>
    %152 = arith.subf %151, %150 : vector<1x8xf32>
    %153 = math.exp %152 : vector<1x8xf32>
    %cst_93 = arith.constant 1.000000e+00 : f32
    %154 = vector.broadcast %cst_93 : f32 to vector<1x8xf32>
    %155 = arith.addf %154, %153 : vector<1x8xf32>
    %156 = tpu.reciprocal %155 {approx = true} : vector<1x8xf32> -> vector<1x8xf32>
    %157 = vector.shape_cast %156 : vector<1x8xf32> to vector<1x1x8xf32>
    %158 = vector.broadcast %157 : vector<1x1x8xf32> to vector<16x16x8xf32>
    %159 = arith.mulf %126, %158 : vector<16x16x8xf32>
    %160 = vector.shape_cast %159 : vector<16x16x8xf32> to vector<256x8xf32>
    %c0_94 = arith.constant 0 : index
    %c0_95 = arith.constant 0 : index
    %161 = vector.load %arg12[%c0_94, %c0_95] : memref<8x4xf32, #tpu.memory_space<vmem>>, vector<8x4xf32>
    %cst_96 = arith.constant dense<0.000000e+00> : vector<256x4xf32>
    %162 = tpu.matmul %160, %161, %cst_96 {dimension_numbers = #tpu.dot_dimension_numbers<[1], [0], [0], [1], [0, 0, 1, 1], [], []>} : vector<256x8xf32>, vector<8x4xf32>, vector<256x4xf32> -> vector<256x4xf32>
    %c0_97 = arith.constant 0 : index
    %c0_98 = arith.constant 0 : index
    %163 = vector.load %arg13[%c0_97, %c0_98] : memref<1x4xf32, #tpu.memory_space<vmem>>, vector<1x4xf32>
    %164 = vector.broadcast %163 : vector<1x4xf32> to vector<256x4xf32>
    %165 = arith.mulf %162, %164 : vector<256x4xf32>
    %c0_99 = arith.constant 0 : index
    %c0_100 = arith.constant 0 : index
    %166 = vector.load %arg14[%c0_99, %c0_100] : memref<1x4xf32, #tpu.memory_space<vmem>>, vector<1x4xf32>
    %167 = vector.broadcast %166 : vector<1x4xf32> to vector<256x4xf32>
    %168 = arith.addf %165, %167 : vector<256x4xf32>
    %169 = vector.shape_cast %1 : vector<16x16x4xf32> to vector<256x4xf32>
    %170 = arith.addf %168, %169 : vector<256x4xf32>
    %171 = vector.shape_cast %170 : vector<256x4xf32> to vector<16x16x4xf32>
    %c0_101 = arith.constant 0 : index
    %c0_102 = arith.constant 0 : index
    %c0_103 = arith.constant 0 : index
    %c0_104 = arith.constant 0 : index
    %172 = vector.load %arg15[%c0_101, %c0_102, %c0_103, %c0_104] : memref<1x16x16x4xf32, #tpu.memory_space<vmem>>, vector<1x16x16x4xf32>
    %173 = vector.shape_cast %172 : vector<1x16x16x4xf32> to vector<16x16x4xf32>
    %174 = vector.shape_cast %171 : vector<16x16x4xf32> to vector<1x16x16x4xf32>
    tpu.vector_store %arg15[%c0_101, %c0_102, %c0_103, %c0_104], %174 {strides = array<i32>} : memref<1x16x16x4xf32, #tpu.memory_space<vmem>>, vector<1x16x16x4xf32>,
    return
  }
  func.func @transform_0(%arg0: i32) -> (i32, i32, i32, i32) {
    %c0_i32 = arith.constant 0 : i32
    %c0_i32_0 = arith.constant 0 : i32
    %c0_i32_1 = arith.constant 0 : i32
    %c0_i32_2 = arith.constant 0 : i32
    return %arg0, %c0_i32, %c0_i32_0, %c0_i32_1 : i32, i32, i32, i32
  }
  func.func @transform_1(%arg0: i32) -> (i32, i32) {
    %c0_i32 = arith.constant 0 : i32
    %c0_i32_0 = arith.constant 0 : i32
    %c0_i32_1 = arith.constant 0 : i32
    return %c0_i32, %c0_i32_0 : i32, i32
  }
  func.func @transform_2(%arg0: i32) -> (i32, i32) {
    %c0_i32 = arith.constant 0 : i32
    %c0_i32_0 = arith.constant 0 : i32
    %c0_i32_1 = arith.constant 0 : i32
    return %c0_i32, %c0_i32_0 : i32, i32
  }
  func.func @transform_3(%arg0: i32) -> (i32, i32) {
    %c0_i32 = arith.constant 0 : i32
    %c0_i32_0 = arith.constant 0 : i32
    %c0_i32_1 = arith.constant 0 : i32
    return %c0_i32, %c0_i32_0 : i32, i32
  }
  func.func @transform_4(%arg0: i32) -> (i32, i32, i32) {
    %c0_i32 = arith.constant 0 : i32
    %c0_i32_0 = arith.constant 0 : i32
    %c0_i32_1 = arith.constant 0 : i32
    %c0_i32_2 = arith.constant 0 : i32
    return %c0_i32, %c0_i32_0, %c0_i32_1 : i32, i32, i32
  }
  func.func @transform_5(%arg0: i32) -> (i32, i32) {
    %c0_i32 = arith.constant 0 : i32
    %c0_i32_0 = arith.constant 0 : i32
    %c0_i32_1 = arith.constant 0 : i32
    return %c0_i32, %c0_i32_0 : i32, i32
  }
  func.func @transform_6(%arg0: i32) -> (i32, i32) {
    %c0_i32 = arith.constant 0 : i32
    %c0_i32_0 = arith.constant 0 : i32
    %c0_i32_1 = arith.constant 0 : i32
    return %c0_i32, %c0_i32_0 : i32, i32
  }
  func.func @transform_7(%arg0: i32) -> (i32, i32) {
    %c0_i32 = arith.constant 0 : i32
    %c0_i32_0 = arith.constant 0 : i32
    %c0_i32_1 = arith.constant 0 : i32
    return %c0_i32, %c0_i32_0 : i32, i32
  }
  func.func @transform_8(%arg0: i32) -> (i32, i32) {
    %c0_i32 = arith.constant 0 : i32
    %c0_i32_0 = arith.constant 0 : i32
    %c0_i32_1 = arith.constant 0 : i32
    return %c0_i32, %c0_i32_0 : i32, i32
  }
  func.func @transform_9(%arg0: i32) -> (i32, i32) {
    %c0_i32 = arith.constant 0 : i32
    %c0_i32_0 = arith.constant 0 : i32
    %c0_i32_1 = arith.constant 0 : i32
    return %c0_i32, %c0_i32_0 : i32, i32
  }
  func.func @transform_10(%arg0: i32) -> (i32, i32) {
    %c0_i32 = arith.constant 0 : i32
    %c0_i32_0 = arith.constant 0 : i32
    %c0_i32_1 = arith.constant 0 : i32
    return %c0_i32, %c0_i32_0 : i32, i32
  }
  func.func @transform_11(%arg0: i32) -> (i32, i32) {
    %c0_i32 = arith.constant 0 : i32
    %c0_i32_0 = arith.constant 0 : i32
    %c0_i32_1 = arith.constant 0 : i32
    return %c0_i32, %c0_i32_0 : i32, i32
  }
  func.func @transform_12(%arg0: i32) -> (i32, i32) {
    %c0_i32 = arith.constant 0 : i32
    %c0_i32_0 = arith.constant 0 : i32
    %c0_i32_1 = arith.constant 0 : i32
    return %c0_i32, %c0_i32_0 : i32, i32
  }
  func.func @transform_13(%arg0: i32) -> (i32, i32) {
    %c0_i32 = arith.constant 0 : i32
    %c0_i32_0 = arith.constant 0 : i32
    %c0_i32_1 = arith.constant 0 : i32
    return %c0_i32, %c0_i32_0 : i32, i32
  }
  func.func @transform_14(%arg0: i32) -> (i32, i32, i32, i32) {
    %c0_i32 = arith.constant 0 : i32
    %c0_i32_0 = arith.constant 0 : i32
    %c0_i32_1 = arith.constant 0 : i32
    %c0_i32_2 = arith.constant 0 : i32
    return %arg0, %c0_i32, %c0_i32_0, %c0_i32_1 : i32, i32, i32, i32
  }
}

</mosaic_0001>

<bundles_post_ra>
// kernel: mbconv_forward.1
= control target key start
LH: loop header
LB: loop body
LE: loop exit
PB: predicated region body
PF: predicated region fallthrough
CT: control target
= control target key end

     0   :  { %s3650_s15 = smov 0   ;;  %s5401_s0 = inlined_call_operand.vmem [shape: f32[2,16,16,4], index: 0, kind: input, shape index: {}]   ;;  %s5402_s1 = inlined_call_operand.vmem [shape: f32[4,8], index: 1, kind: input, shape index: {}]   ;;  %s5403_s2 = inlined_call_operand.vmem [shape: f32[1,8], index: 2, kind: input, shape index: {}]   ;;  %s5404_s3 = inlined_call_operand.vmem [shape: f32[1,8], index: 3, kind: input, shape index: {}]   ;;  %s5405_s4 = inlined_call_operand.vmem [shape: f32[3,3,8], index: 4, kind: input, shape index: {}]   ;;  %s5406_s5 = inlined_call_operand.vmem [shape: f32[1,8], index: 5, kind: input, shape index: {}]   ;;  %s5407_s6 = inlined_call_operand.vmem [shape: f32[1,8], index: 6, kind: input, shape index: {}]   ;;  %s5408_s7 = inlined_call_operand.vmem [shape: f32[1,8], index: 7, kind: input, shape index: {}]   ;;  %s5409_s8 = inlined_call_operand.<no memory space> [shape: f32[1,1], index: 8, kind: input, shape index: {}]   ;;  %s5410_s9 = inlined_call_operand.vmem [shape: f32[1,8], index: 9, kind: input, shape index: {}]   ;;  %s5411_s10 = inlined_call_operand.vmem [shape: f32[1,8], index: 10, kind: input, shape index: {}]   ;;  %s5412_s11 = inlined_call_operand.vmem [shape: f32[8,4], index: 11, kind: input, shape index: {}]   ;;  %s5413_s12 = inlined_call_operand.vmem [shape: f32[1,4], index: 12, kind: input, shape index: {}]   ;;  %s5414_s13 = inlined_call_operand.vmem [shape: f32[1,4], index: 13, kind: input, shape index: {}]   ;;  %s5415_s14 = inlined_call_operand.vmem [shape: f32[2,16,16,4], index: 14, kind: output, shape index: {}]  }
   0x1   :  { %v19_v0 = vstv %s5409_s8 }
   0x2   :  { %20 = vst [vmem:[#allocation3] sm:$0x1] %v19_v0 }
   0x3 LB: > { %s3001_s16 = sadd.s32 4294967295, %s3568_s15   ;;  %p3005_p0 = scmp.ge.s32.totalorder %s3568_s15, 1  ;;  %s3568_s15 = sphi %s3650_s15, %s26_s15  }
   0x4   : > { %p414_p1 = scmp.lt.s32.totalorder %s3568_s15, 3 }
   0x6   : > { %p415_p2 = pnand %p3005_p0, %p414_p1 }
   0x8   : > { %418 = sbr.rel (%p415_p2) target bundleno = 1195 (0x4ab), region = 76 }
   0xf   : > { %v502_v1 = vld [vmem:[%s5402_s1] sm:$0xf]  ;;  %vm600_vm0 = vcmask 1043456   ;;  %p460_p3 = scmp.lt.s32.totalorder %s3001_s16, 1  ;;  %vm503_vm1 = vcmask 31744   ;;  %vm1099_vm2 = vcmask 64512  }
  0x10   : > { %3151 = vmatprep.subr.msk.mxu0 %vm600_vm0, %v502_v1  ;;  %vm1102_vm3 = vcmask 58368   ;;  %v3570_v34 = vmov 0.0   ;;  %vm1109_vm4 = vcmask 57344   ;;  %v3774_v35 = vld [vmem:[%s5403_s2] ss:$0 sm:$0xff] }
  0x11   : > { %3152 = vmatpush3.msk.msra.mxu0 %vm600_vm0, %v502_v1  ;;  %s5563_s16 = smov (!%p460_p3, %s3001_s16), 1  ;;  %1100 = vst.msk [vmem:[#allocation2] sm:$0xff] %vm1099_vm2, %v3570_v34  ;;  %1101 = vst.msk [vmem:[#allocation2 + $0x8] sm:$0xff] %vm1099_vm2, %v3570_v34  ;;  %v3779_v37 = vld [vmem:[%s5404_s3] ss:$0 sm:$0xff] }
  0x12   : > { %s3083_s8 = sshll.u32 %s5563_s16, 8  ;;  %1105 = vst.msk [vmem:[#allocation2 + $0x198] sm:$0xff] %vm1099_vm2, %v3570_v34  ;;  %1106 = vst.msk [vmem:[#allocation2 + $0x1a0] sm:$0xff] %vm1099_vm2, %v3570_v34 }
  0x13   : > { %s3669_s21 = scalar_lea.vmem %s5401_s0, %s3083_s8  ;;  %1103 = vst.msk [vmem:[#allocation2 + $0x10] sm:$0x3] %vm1102_vm3, %v3570_v34  ;;  %1107 = vst.msk [vmem:[#allocation2 + $0x1a8] sm:$0x3] %vm1102_vm3, %v3570_v34  ;;  %s5239_s18 = scalar_lea.vmem %s5415_s14, %s3083_s8 }
  0x14   : > { %v470_v2 = vld [vmem:[%s3669_s21] sm:$0xff]  ;;  %v471_v3 = vld [vmem:[%s3669_s21 + $0x8] sm:$0xff]  ;;  %v472_v4 = vld [vmem:[%s3669_s21 + $0x10] sm:$0xff]  ;;  %1126 = vst.msk [vmem:[#allocation2 + $0x29] sm:$0x1] %vm1109_vm4, %v3570_v34 }
  0x15   : > { %3153 = vmatprep.mubr.msk.f32.mxu0 %vm503_vm1, %v470_v2  ;;  %v473_v5 = vld [vmem:[%s3669_s21 + $0x18] sm:$0xff]  ;;  %v474_v6 = vld [vmem:[%s3669_s21 + $0x20] sm:$0xff]  ;;  %v475_v7 = vld [vmem:[%s3669_s21 + $0x28] sm:$0xff]  ;;  %1110 = vst.msk [vmem:[#allocation2 + $0x18] sm:$0x1] %vm1109_vm4, %v3570_v34 }
  0x16   : > { %3154 = vmatmul.mubr.msk.f32.vlgmr.msra.gmra.mrb[0].mxu0 %vm503_vm1, %v471_v3  ;;  %v476_v8 = vld [vmem:[%s3669_s21 + $0x30] sm:$0xff]  ;;  %v477_v9 = vld [vmem:[%s3669_s21 + $0x38] sm:$0xff]  ;;  %v478_v10 = vld [vmem:[%s3669_s21 + $0x40] sm:$0xff]  ;;  %1111 = vst.msk [vmem:[#allocation2 + $0x30] sm:$0x1] %vm1109_vm4, %v3570_v34 }
  0x17   : > { %3156 = vmatprep.mubr.msk.f32.mxu0 %vm503_vm1, %v472_v4  ;;  %v479_v11 = vld [vmem:[%s3669_s21 + $0x48] sm:$0xff]  ;;  %v480_v12 = vld [vmem:[%s3669_s21 + $0x50] sm:$0xff]  ;;  %v481_v13 = vld [vmem:[%s3669_s21 + $0x58] sm:$0xff]  ;;  %1112 = vst.msk [vmem:[#allocation2 + $0x48] sm:$0x1] %vm1109_vm4, %v3570_v34 }
  0x18   : > { %v482_v14 = vld [vmem:[%s3669_s21 + $0x60] sm:$0xff]  ;;  %v483_v15 = vld [vmem:[%s3669_s21 + $0x68] sm:$0xff]  ;;  %v484_v16 = vld [vmem:[%s3669_s21 + $0x70] sm:$0xff]  ;;  %1113 = vst.msk [vmem:[#allocation2 + $0x60] sm:$0x1] %vm1109_vm4, %v3570_v34 }
  0x19   : > { %v485_v17 = vld [vmem:[%s3669_s21 + $0x78] sm:$0xff]  ;;  %v486_v18 = vld [vmem:[%s3669_s21 + $0x80] sm:$0xff]  ;;  %v487_v19 = vld [vmem:[%s3669_s21 + $0x88] sm:$0xff]  ;;  %1114 = vst.msk [vmem:[#allocation2 + $0x78] sm:$0x1] %vm1109_vm4, %v3570_v34 }
  0x1a   : > { %3157 = vmatmul.mubr.msk.f32.gmra.mrb[2].mxu0 %vm503_vm1, %v473_v5  ;;  %v488_v20 = vld [vmem:[%s3669_s21 + $0x90] sm:$0xff]  ;;  %v489_v21 = vld [vmem:[%s3669_s21 + $0x98] sm:$0xff]  ;;  %v490_v22 = vld [vmem:[%s3669_s21 + $0xa0] sm:$0xff]  ;;  %1115 = vst.msk [vmem:[#allocation2 + $0x90] sm:$0x1] %vm1109_vm4, %v3570_v34 }
  0x1b   : > { %3159 = vmatprep.mubr.msk.f32.mxu0 %vm503_vm1, %v474_v6  ;;  %v491_v23 = vld [vmem:[%s3669_s21 + $0xa8] sm:$0xff]  ;;  %v492_v24 = vld [vmem:[%s3669_s21 + $0xb0] sm:$0xff]  ;;  %v493_v25 = vld [vmem:[%s3669_s21 + $0xb8] sm:$0xff]  ;;  %1116 = vst.msk [vmem:[#allocation2 + $0xa8] sm:$0x1] %vm1109_vm4, %v3570_v34 }
  0x1c   : > { %v494_v26 = vld [vmem:[%s3669_s21 + $0xc0] sm:$0xff]  ;;  %v495_v27 = vld [vmem:[%s3669_s21 + $0xc8] sm:$0xff]  ;;  %v496_v28 = vld [vmem:[%s3669_s21 + $0xd0] sm:$0xff]  ;;  %1117 = vst.msk [vmem:[#allocation2 + $0xc0] sm:$0x1] %vm1109_vm4, %v3570_v34 }
  0x1d   : > { %v497_v29 = vld [vmem:[%s3669_s21 + $0xd8] sm:$0xff]  ;;  %v498_v30 = vld [vmem:[%s3669_s21 + $0xe0] sm:$0xff]  ;;  %v499_v31 = vld [vmem:[%s3669_s21 + $0xe8] sm:$0xff]  ;;  %1118 = vst.msk [vmem:[#allocation2 + $0xd8] sm:$0x1] %vm1109_vm4, %v3570_v34 }
  0x1e   : > { %3160 = vmatmul.mubr.msk.f32.gmra.mrb[4].mxu0 %vm503_vm1, %v475_v7  ;;  %v500_v32 = vld [vmem:[%s3669_s21 + $0xf0] sm:$0xff]  ;;  %v501_v33 = vld [vmem:[%s3669_s21 + $0xf8] sm:$0xff]  ;;  %1119 = vst.msk [vmem:[#allocation2 + $0xf0] sm:$0x1] %vm1109_vm4, %v3570_v34  ;;  %1120 = vst.msk [vmem:[#allocation2 + $0x108] sm:$0x1] %vm1109_vm4, %v3570_v34 }
  0x1f   : > { %3162 = vmatprep.mubr.msk.f32.mxu0 %vm503_vm1, %v476_v8  ;;  %1121 = vst.msk [vmem:[#allocation2 + $0x120] sm:$0x1] %vm1109_vm4, %v3570_v34  ;;  %1122 = vst.msk [vmem:[#allocation2 + $0x138] sm:$0x1] %vm1109_vm4, %v3570_v34  ;;  %v1209_v8 = vlaneseq }
  0x20   : > { %1123 = vst.msk [vmem:[#allocation2 + $0x150] sm:$0x1] %vm1109_vm4, %v3570_v34  ;;  %1124 = vst.msk [vmem:[#allocation2 + $0x168] sm:$0x1] %vm1109_vm4, %v3570_v34 }
  0x21   : > { %1125 = vst.msk [vmem:[#allocation2 + $0x180] sm:$0x1] %vm1109_vm4, %v3570_v34  ;;  %1127 = vst.msk [vmem:[#allocation2 + $0x41] sm:$0x1] %vm1109_vm4, %v3570_v34 }
  0x22   : > { %3163 = vmatmul.mubr.msk.f32.gmra.mrb[6].mxu0 %vm503_vm1, %v477_v9  ;;  %1128 = vst.msk [vmem:[#allocation2 + $0x59] sm:$0x1] %vm1109_vm4, %v3570_v34  ;;  %1129 = vst.msk [vmem:[#allocation2 + $0x71] sm:$0x1] %vm1109_vm4, %v3570_v34 }
  0x23   : > { %3165 = vmatprep.mubr.msk.f32.mxu0 %vm503_vm1, %v478_v10  ;;  %1130 = vst.msk [vmem:[#allocation2 + $0x89] sm:$0x1] %vm1109_vm4, %v3570_v34  ;;  %1131 = vst.msk [vmem:[#allocation2 + $0xa1] sm:$0x1] %vm1109_vm4, %v3570_v34 }
  0x24   : > { %1132 = vst.msk [vmem:[#allocation2 + $0xb9] sm:$0x1] %vm1109_vm4, %v3570_v34  ;;  %1133 = vst.msk [vmem:[#allocation2 + $0xd1] sm:$0x1] %vm1109_vm4, %v3570_v34 }
  0x25   : > { %1134 = vst.msk [vmem:[#allocation2 + $0xe9] sm:$0x1] %vm1109_vm4, %v3570_v34  ;;  %1135 = vst.msk [vmem:[#allocation2 + $0x101] sm:$0x1] %vm1109_vm4, %v3570_v34 }
  0x26   : > { %3166 = vmatmul.mubr.msk.f32.gmra.mrb[8].mxu0 %vm503_vm1, %v479_v11  ;;  %1136 = vst.msk [vmem:[#allocation2 + $0x119] sm:$0x1] %vm1109_vm4, %v3570_v34  ;;  %1137 = vst.msk [vmem:[#allocation2 + $0x131] sm:$0x1] %vm1109_vm4, %v3570_v34 }
  0x27   : > { %3168 = vmatprep.mubr.msk.f32.mxu0 %vm503_vm1, %v480_v12  ;;  %1138 = vst.msk [vmem:[#allocation2 + $0x149] sm:$0x1] %vm1109_vm4, %v3570_v34  ;;  %1139 = vst.msk [vmem:[#allocation2 + $0x161] sm:$0x1] %vm1109_vm4, %v3570_v34 }
  0x28   : > { %1140 = vst.msk [vmem:[#allocation2 + $0x179] sm:$0x1] %vm1109_vm4, %v3570_v34  ;;  %1141 = vst.msk [vmem:[#allocation2 + $0x191] sm:$0x1] %vm1109_vm4, %v3570_v34 }
  0x2a   : > { %3169 = vmatmul.mubr.msk.f32.gmra.mrb[10].mxu0 %vm503_vm1, %v481_v13 }
  0x2b   : > { %3171 = vmatprep.mubr.msk.f32.mxu0 %vm503_vm1, %v482_v14 }
  0x2e   : > { %3172 = vmatmul.mubr.msk.f32.gmra.mrb[12].mxu0 %vm503_vm1, %v483_v15 }
  0x2f   : > { %3174 = vmatprep.mubr.msk.f32.mxu0 %vm503_vm1, %v484_v16 }
  0x32   : > { %3175 = vmatmul.mubr.msk.f32.gmra.mrb[14].mxu0 %vm503_vm1, %v485_v17 }
  0x33   : > { %3177 = vmatprep.mubr.msk.f32.mxu0 %vm503_vm1, %v486_v18  ;;  %v1210_v18 = vshrl.u32 %v1209_v8, 7 }
  0x36   : > { %3178 = vmatmul.mubr.msk.f32.gmra.mrb[16].mxu0 %vm503_vm1, %v487_v19 }
  0x37   : > { %3180 = vmatprep.mubr.msk.f32.mxu0 %vm503_vm1, %v488_v20 }
  0x3a   : > { %3181 = vmatmul.mubr.msk.f32.gmra.mrb[18].mxu0 %vm503_vm1, %v489_v21 }
  0x3b   : > { %3183 = vmatprep.mubr.msk.f32.mxu0 %vm503_vm1, %v490_v22 }
  0x3e   : > { %3184 = vmatmul.mubr.msk.f32.gmra.mrb[20].mxu0 %vm503_vm1, %v491_v23 }
  0x3f   : > { %3186 = vmatprep.mubr.msk.f32.mxu0 %vm503_vm1, %v492_v24 }
  0x42   : > { %3187 = vmatmul.mubr.msk.f32.gmra.mrb[22].mxu0 %vm503_vm1, %v493_v25 }
  0x43   : > { %3189 = vmatprep.mubr.msk.f32.mxu0 %vm503_vm1, %v494_v26 }
  0x46   : > { %3190 = vmatmul.mubr.msk.f32.gmra.mrb[24].mxu0 %vm503_vm1, %v495_v27 }
  0x47   : > { %3192 = vmatprep.mubr.msk.f32.mxu0 %vm503_vm1, %v496_v28 }
  0x4a   : > { %3193 = vmatmul.mubr.msk.f32.gmra.mrb[26].mxu0 %vm503_vm1, %v497_v29  ;;  %v3826_v29 = vsub.s32 1, %v1210_v18 }
  0x4b   : > { %3195 = vmatprep.mubr.msk.f32.mxu0 %vm503_vm1, %v498_v30  ;;  %v3828_v30 = vsub.s32 0, %v1210_v18 }
  0x4d   : > { %5447 = vst [vmem:[#allocation4_spill] sm:$0xff] %v3828_v30 }
  0x4e   : > { %3196 = vmatmul.mubr.msk.f32.gmra.mrb[28].mxu0 %vm503_vm1, %v499_v31 }
  0x4f   : > { %3198 = vmatprep.mubr.msk.f32.mxu0 %vm503_vm1, %v500_v32 }
  0x52   : > { %3199 = vmatmul.mubr.msk.f32.gmra.mrb[30].mxu0 %vm503_vm1, %v501_v33  ;;  %v1174_v33 = vld [vmem:[%s5405_s4] sm:$0x7] }
  0xe9   : > { %v3155_v36 = vpop.f32.mrb[0].mxu0 }
  0xea   : > { %v837_v38 = vmul.f32 %v3155_v36, %v3774_v35  ;;  %v670_v39 = vpop.f32.mrb[1].mxu0 }
  0xeb   : > { %v836_v40 = vmul.f32 %v3774_v35, %v670_v39 }
  0xec   : > { %v3784_v41 = vadd.f32 %v3779_v37, %v837_v38 }
  0xed   : > { %v3787_v42 = vadd.f32 %v3779_v37, %v836_v40  ;;  %v3158_v43 = vpop.f32.mrb[2].mxu0  ;;  %v3839_v40 = vsub.s32 2, %v1210_v18 }
  0xee   : > { %v908_v44 = vsub.f32 0.0, %v3784_v41  ;;  %v839_v45 = vmul.f32 %v3158_v43, %v3774_v35  ;;  %v680_v46 = vpop.f32.mrb[3].mxu0 }
  0xef   : > { %v907_v47 = vsub.f32 0.0, %v3787_v42  ;;  %v838_v48 = vmul.f32 %v3774_v35, %v680_v46 }
  0xf0   : > { %v941_v49 = vmul.f32 1.442695, %v908_v44  ;;  %v3794_v50 = vadd.f32 %v3779_v37, %v839_v45 }
  0xf1   : > { %v939_v51 = vmul.f32 1.442695, %v907_v47  ;;  %v3797_v52 = vadd.f32 %v3779_v37, %v838_v48  ;;  %v3161_v53 = vpop.f32.mrb[4].mxu0  ;;  %v3848_v47 = vrot.slane %v1174_v33, %v3826_v29  ;;  %v3851_v48 = vrot.slane %v1174_v33, %v3828_v30 }
  0xf2   : > { %3262 = vpow2.f32 %v941_v49  ;;  %v910_v54 = vsub.f32 0.0, %v3794_v50  ;;  %v841_v55 = vmul.f32 %v3161_v53, %v3774_v35  ;;  %v690_v56 = vpop.f32.mrb[5].mxu0  ;;  %v1177_v53 = vld [vmem:[#allocation2] sm:$0xff] }
  0xf3   : > { %3264 = vpow2.f32 %v939_v51  ;;  %v909_v57 = vsub.f32 0.0, %v3797_v52  ;;  %v840_v58 = vmul.f32 %v3774_v35, %v690_v56  ;;  %v1213_v8 = vmul.f32 %v3851_v48, %v1177_v53 }
  0xf4   : > { %v945_v59 = vmul.f32 1.442695, %v910_v54  ;;  %v3804_v60 = vadd.f32 %v3779_v37, %v841_v55  ;;  %v1178_v54 = vld [vmem:[#allocation2 + $0x8] sm:$0xff] }
  0xf5   : > { %v943_v61 = vmul.f32 1.442695, %v909_v57  ;;  %v3807_v62 = vadd.f32 %v3779_v37, %v840_v58  ;;  %v3164_v63 = vpop.f32.mrb[6].mxu0  ;;  %v1277_v55 = vld [vmem:[#allocation2 + $0x1] sm:$0xff]  ;;  %v1278_v58 = vld [vmem:[#allocation2 + $0x9] sm:$0xff] }
  0xf6   : > { %3266 = vpow2.f32 %v945_v59  ;;  %v912_v0 = vsub.f32 0.0, %v3804_v60  ;;  %v843_v1 = vmul.f32 %v3164_v63, %v3774_v35  ;;  %v700_v2 = vpop.f32.mrb[7].mxu0 }
  0xf7   : > { %3268 = vpow2.f32 %v943_v61  ;;  %v911_v3 = vsub.f32 0.0, %v3807_v62  ;;  %v842_v13 = vmul.f32 %v3774_v35, %v700_v2 }
  0xf8   : > { %v949_v4 = vmul.f32 1.442695, %v912_v0  ;;  %v3813_v5 = vadd.f32 %v3779_v37, %v843_v1  ;;  %v3858_v0 = vrot.slane %v1174_v33, %v3839_v40 }
  0xf9   : > { %v947_v6 = vmul.f32 1.442695, %v911_v3  ;;  %v3167_v7 = vpop.f32.mrb[8].mxu0  ;;  %v3820_v23 = vadd.f32 %v3779_v37, %v842_v13  ;;  %v1314_v13 = vmul.f32 %v3848_v47, %v1278_v58 }
  0xfa   : > { %3270 = vpow2.f32 %v949_v4  ;;  %v914_v9 = vsub.f32 0.0, %v3813_v5  ;;  %v710_v10 = vpop.f32.mrb[9].mxu0  ;;  %v845_v16 = vmul.f32 %v3167_v7, %v3774_v35 }
  0xfb   : > { %3272 = vpow2.f32 %v947_v6  ;;  %v844_v21 = vmul.f32 %v3774_v35, %v710_v10  ;;  %v913_v38 = vsub.f32 0.0, %v3820_v23  ;;  %v1313_v10 = vmul.f32 %v3848_v47, %v1277_v55 }
  0xfc   : > { %v3263_v11 = vpop.eup %3262  ;;  %v953_v12 = vmul.f32 1.442695, %v914_v9  ;;  %v3823_v26 = vadd.f32 %v3779_v37, %v845_v16  ;;  %v1214_v9 = vmul.f32 %v3851_v48, %v1178_v54  ;;  %v1378_v16 = vld [vmem:[#allocation2 + $0xa] sm:$0xff] }
  0xfd   : > { %v3265_v14 = vpop.eup %3264  ;;  %v1004_v15 = vadd.f32 1.0, %v3263_v11  ;;  %v3170_v17 = vpop.f32.mrb[10].mxu0  ;;  %v3836_v34 = vadd.f32 %v3779_v37, %v844_v21  ;;  %v951_v59 = vmul.f32 1.442695, %v913_v38  ;;  %v1345_v21 = vadd.f32 %v1313_v10, %v1213_v8  ;;  %v1176_v38 = vld [vmem:[%s5405_s4 + $0x8] sm:$0x7] }
  0xfe   : > { %v1003_v19 = vadd.f32 1.0, %v3265_v14  ;;  %3274 = vpow2.f32 %v953_v12  ;;  %v720_v20 = vpop.f32.mrb[11].mxu0  ;;  %v847_v27 = vmul.f32 %v3170_v17, %v3774_v35  ;;  %v916_v44 = vsub.f32 0.0, %v3823_v26  ;;  %v1377_v14 = vld [vmem:[#allocation2 + $0x2] sm:$0xff] }
  0xff   : > { %3276 = vrcp.f32 %v1004_v15  ;;  %v915_v56 = vsub.f32 0.0, %v3836_v34  ;;  %v846_v61 = vmul.f32 %v3774_v35, %v720_v20  ;;  %v1175_v20 = vld [vmem:[%s5405_s4 + $0x4] sm:$0x7]  ;;  %v1414_v33 = vmul.f32 %v3858_v0, %v1378_v16 }
 0x100   : > { %v3267_v22 = vpop.eup %3266  ;;  %3278 = vrcp.f32 %v1003_v19  ;;  %v3843_v45 = vadd.f32 %v3779_v37, %v847_v27  ;;  %v957_v2 = vmul.f32 1.442695, %v916_v44  ;;  %v3899_v44 = vrot.slane %v1175_v20, %v3828_v30 }
 0x101   : > { %v3269_v24 = vpop.eup %3268  ;;  %v1006_v25 = vadd.f32 1.0, %v3267_v22  ;;  %v3173_v28 = vpop.f32.mrb[12].mxu0  ;;  %v955_v15 = vmul.f32 1.442695, %v915_v56  ;;  %v1413_v22 = vmul.f32 %v3858_v0, %v1377_v14  ;;  %v3905_v53 = vrot.slane %v1175_v20, %v3839_v40 }
 0x102   : > { %v1005_v31 = vadd.f32 1.0, %v3269_v24  ;;  %v3830_v32 = vpop.f32.mrb[13].mxu0  ;;  %v918_v3 = vsub.f32 0.0, %v3843_v45 }
 0x103   : > { %3280 = vrcp.f32 %v1006_v25  ;;  %v849_v25 = vmul.f32 %v3173_v28, %v3774_v35  ;;  %v1445_v54 = vadd.f32 %v1413_v22, %v1345_v21 }
 0x104   : > { %v3271_v36 = vpop.eup %3270  ;;  %3282 = vrcp.f32 %v1005_v31  ;;  %v961_v18 = vmul.f32 1.442695, %v918_v3  ;;  %v1346_v31 = vadd.f32 %v1314_v13, %v1214_v9 }
 0x105   : > { %v3273_v39 = vpop.eup %3272  ;;  %v1008_v43 = vadd.f32 1.0, %v3271_v36  ;;  %v3845_v46 = vpop.f32.mrb[14].mxu0 }
 0x106   : > { %v1007_v49 = vadd.f32 1.0, %v3273_v39  ;;  %v3853_v51 = vpop.f32.mrb[15].mxu0  ;;  %v1446_v58 = vadd.f32 %v1414_v33, %v1346_v31 }
 0x107   : > { %3284 = vrcp.f32 %v1008_v43  ;;  %v3896_v43 = vrot.slane %v1175_v20, %v3826_v29 }
 0x108   : > { %v3275_v57 = vpop.eup %3274  ;;  %3286 = vrcp.f32 %v1007_v49 }
 0x109   : > { %v3277_v63 = vpop.eup %3276  ;;  %v1010_v1 = vadd.f32 1.0, %v3275_v57  ;;  %v3861_v4 = vpop.f32.mrb[16].mxu0 }
 0x10a   : > { %v3279_v6 = vpop.eup %3278  ;;  %v1068_v7 = vmul.f32 %v3277_v63, %v3784_v41  ;;  %v3867_v11 = vpop.f32.mrb[17].mxu0  ;;  %v3873_v41 = vadd.f32 %v3779_v37, %v846_v61  ;;  %v3917_v61 = vrot.slane %v1176_v38, %v3839_v40 }
 0x10b   : > { %v1067_v12 = vmul.f32 %v3279_v6, %v3787_v42  ;;  %3288 = vrcp.f32 %v1010_v1  ;;  %v3922_v6 = vrot.slane %v1176_v38, %v3828_v30 }
 0x10c   : > { %1143 = vst.msk [vmem:[#allocation2 + $0x21] sm:$0xff] %vm1099_vm2, %v1068_v7  ;;  %3290 = vpow2.f32 %v951_v59  ;;  %v917_v39 = vsub.f32 0.0, %v3873_v41  ;;  %v3914_v59 = vrot.slane %v1176_v38, %v3826_v29 }
 0x10d   : > { %v3281_v17 = vpop.eup %3280  ;;  %1142 = vst.msk [vmem:[#allocation2 + $0x19] sm:$0xff] %vm1099_vm2, %v1067_v12  ;;  %3292 = vpow2.f32 %v957_v2  ;;  %v3876_v19 = vpop.f32.mrb[18].mxu0 }
 0x10e   : > { %v3283_v42 = vpop.eup %3282  ;;  %v1070_v24 = vmul.f32 %v3281_v17, %v3794_v50  ;;  %v3884_v27 = vpop.f32.mrb[19].mxu0  ;;  %3294 = vpow2.f32 %v955_v15  ;;  %v848_v50 = vmul.f32 %v3774_v35, %v3830_v32  ;;  %v3909_v32 = vadd.f32 %v3779_v37, %v849_v25 }
 0x10f   : > { %v1069_v36 = vmul.f32 %v3283_v42, %v3797_v52  ;;  %3296 = vpow2.f32 %v961_v18  ;;  %v959_v7 = vmul.f32 1.442695, %v917_v39  ;;  %v851_v42 = vmul.f32 %v3845_v46, %v3774_v35 }
 0x110   : > { %1145 = vst.msk [vmem:[#allocation2 + $0x39] sm:$0xff] %vm1099_vm2, %v1070_v24  ;;  %v3926_v8 = vadd.f32 %v3779_v37, %v848_v50  ;;  %v920_v18 = vsub.f32 0.0, %v3909_v32 }
 0x111   : > { %v3285_v28 = vpop.eup %3284  ;;  %1144 = vst.msk [vmem:[#allocation2 + $0x31] sm:$0xff] %vm1099_vm2, %v1069_v36  ;;  %v3902_v52 = vpop.f32.mrb[20].mxu0  ;;  %3298 = vpow2.f32 %v959_v7 }
 0x112   : > { %v3287_v49 = vpop.eup %3286  ;;  %v1072_v55 = vmul.f32 %v3285_v28, %v3804_v60  ;;  %v3911_v56 = vpop.f32.mrb[21].mxu0  ;;  %v919_v39 = vsub.f32 0.0, %v3926_v8 }
 0x113   : > { %v1280_v57 = vld [vmem:[#allocation2 + $0x21] sm:$0xff]  ;;  %v1071_v63 = vmul.f32 %v3287_v49, %v3807_v62 }
 0x114   : > { %v1316_v1 = vmul.f32 %v3848_v47, %v1280_v57  ;;  %v1179_v2 = vld [vmem:[#allocation2 + $0x18] sm:$0xff]  ;;  %v1180_v3 = vld [vmem:[#allocation2 + $0x20] sm:$0xff]  ;;  %1147 = vst.msk [vmem:[#allocation2 + $0x51] sm:$0xff] %vm1099_vm2, %v1072_v55  ;;  %v1614_v33 = vmul.f32 %v3896_v43, %v1280_v57 }
 0x115   : > { %v1279_v60 = vld [vmem:[#allocation2 + $0x19] sm:$0xff]  ;;  %v3289_v29 = vpop.eup %3288  ;;  %v1215_v40 = vmul.f32 %v3851_v48, %v1179_v2  ;;  %v1216_v9 = vmul.f32 %v3851_v48, %v1180_v3  ;;  %v1513_v12 = vmul.f32 %v3899_v44, %v1179_v2  ;;  %1146 = vst.msk [vmem:[#allocation2 + $0x49] sm:$0xff] %vm1099_vm2, %v1071_v63  ;;  %v3933_v13 = vpop.f32.mrb[22].mxu0  ;;  %v1380_v15 = vld [vmem:[#allocation2 + $0x22] sm:$0xff]  ;;  %v1514_v16 = vmul.f32 %v3899_v44, %v1180_v3 }
 0x116   : > { %v1315_v62 = vmul.f32 %v3848_v47, %v1279_v60  ;;  %v1379_v10 = vld [vmem:[#allocation2 + $0x1a] sm:$0xff]  ;;  %v3291_v14 = vpop.eup %3290  ;;  %v1613_v17 = vmul.f32 %v3896_v43, %v1279_v60  ;;  %v3940_v20 = vpop.f32.mrb[23].mxu0  ;;  %v1074_v31 = vmul.f32 %v3289_v29, %v3813_v5  ;;  %v1416_v28 = vmul.f32 %v3858_v0, %v1380_v15 }
 0x117   : > { %5448 = vst [vmem:[#allocation5_spill] sm:$0xff] %v3940_v20  ;;  %v3293_v21 = vpop.eup %3292  ;;  %v1348_v24 = vadd.f32 %v1316_v1, %v1216_v9  ;;  %v1545_v25 = vadd.f32 %v1513_v12, %v1445_v54  ;;  %v1415_v36 = vmul.f32 %v3858_v0, %v1379_v10  ;;  %v1546_v38 = vadd.f32 %v1514_v16, %v1446_v58  ;;  %v1282_v16 = vld [vmem:[#allocation2 + $0x39] sm:$0xff] }
 0x118   : > { %v1347_v22 = vadd.f32 %v1315_v62, %v1215_v40  ;;  %v3295_v50 = vpop.eup %3294  ;;  %v1713_v46 = vmul.f32 %v3905_v53, %v1379_v10  ;;  %v1181_v55 = vld [vmem:[#allocation2 + $0x30] sm:$0xff]  ;;  %v3948_v63 = vld [vmem:[#allocation2 + $0x38] sm:$0xff]  ;;  %1149 = vst.msk [vmem:[#allocation2 + $0x69] sm:$0xff] %vm1099_vm2, %v1074_v31  ;;  %v1009_v54 = vadd.f32 1.0, %v3291_v14  ;;  %v1012_v57 = vadd.f32 1.0, %v3293_v21 }
 0x119   : > { %v1645_v49 = vadd.f32 %v1613_v17, %v1545_v25  ;;  %v1646_v1 = vadd.f32 %v1614_v33, %v1546_v38  ;;  %v850_v58 = vmul.f32 %v3774_v35, %v3853_v51  ;;  %v3297_v2 = vpop.eup %3296  ;;  %v1714_v3 = vmul.f32 %v3905_v53, %v1380_v15  ;;  %v1281_v9 = vld [vmem:[#allocation2 + $0x31] sm:$0xff]  ;;  %v3957_v14 = vpop.f32.mrb[24].mxu0  ;;  %v3969_v25 = vld [vmem:[#allocation2 + $0x3a] sm:$0xff] }
 0x11a   : > { %v1447_v5 = vadd.f32 %v1415_v36, %v1347_v22  ;;  %v1448_v29 = vadd.f32 %v1416_v28, %v1348_v24  ;;  %v965_v40 = vmul.f32 1.442695, %v920_v18  ;;  %v1515_v62 = vmul.f32 %v3899_v44, %v1181_v55  ;;  %5449 = vst [vmem:[#allocation6_spill] sm:$0xff] %v3957_v14  ;;  %v3963_v21 = vpop.f32.mrb[25].mxu0  ;;  %v3965_v18 = vld [vmem:[#allocation2 + $0x32] sm:$0xff] }
 0x11b   : > { %v1745_v60 = vadd.f32 %v1713_v46, %v1645_v49  ;;  %v1516_v10 = vmul.f32 %v3899_v44, %v3948_v63  ;;  %v1011_v12 = vadd.f32 1.0, %v3295_v50  ;;  %v1746_v17 = vadd.f32 %v1714_v3, %v1646_v1  ;;  %5450 = vst [vmem:[#allocation7_spill] sm:$0xff] %v3963_v21 }
 0x11c   : > { %v1814_v51 = vmul.f32 %v3922_v6, %v1181_v55  ;;  %3300 = vrcp.f32 %v1009_v54  ;;  %v3961_v15 = vadd.f32 %v3779_v37, %v851_v42  ;;  %v1547_v22 = vadd.f32 %v1515_v62, %v1447_v5 }
 0x11d   : > { %v1815_v24 = vmul.f32 %v3922_v6, %v3948_v63  ;;  %3302 = vrcp.f32 %v1012_v57  ;;  %v1014_v7 = vadd.f32 1.0, %v3297_v2  ;;  %v1548_v31 = vadd.f32 %v1516_v10, %v1448_v29  ;;  %v3985_v2 = vld [vmem:[%s5406_s5] ss:$0 sm:$0xff] }
 0x11e   : > { %v1615_v33 = vmul.f32 %v3896_v43, %v1281_v9  ;;  %v1846_v36 = vadd.f32 %v1814_v51, %v1745_v60  ;;  %v1914_v38 = vmul.f32 %v3914_v59, %v1281_v9  ;;  %v1915_v42 = vmul.f32 %v3914_v59, %v1282_v16 }
 0x11f   : > { %v1847_v50 = vadd.f32 %v1815_v24, %v1746_v17  ;;  %3304 = vrcp.f32 %v1011_v12  ;;  %v3975_v28 = vadd.f32 %v3779_v37, %v850_v58  ;;  %v1616_v49 = vmul.f32 %v3896_v43, %v1282_v16  ;;  %v3987_v58 = vpop.f32.mrb[26].mxu0 }
 0x120   : > { %v1647_v46 = vadd.f32 %v1615_v33, %v1547_v22  ;;  %v1946_v54 = vadd.f32 %v1914_v38, %v1846_v36  ;;  %v2014_v5 = vmul.f32 %v3917_v61, %v3965_v18  ;;  %v2015_v1 = vmul.f32 %v3917_v61, %v3969_v25  ;;  %5451 = vst [vmem:[#allocation8_spill] sm:$0xff] %v3987_v58  ;;  %v3992_v12 = vpop.f32.mrb[27].mxu0  ;;  %v3999_v22 = vld [vmem:[%s5407_s6] ss:$0 sm:$0xff]  ;;  %v4007_v38 = vld [vmem:[#allocation2 + $0x50] sm:$0xff] }
 0x121   : > { %v1947_v57 = vadd.f32 %v1915_v42, %v1847_v50  ;;  %3306 = vrcp.f32 %v1014_v7  ;;  %v963_v3 = vmul.f32 1.442695, %v919_v39  ;;  %v1648_v60 = vadd.f32 %v1616_v49, %v1548_v31  ;;  %5452 = vst [vmem:[#allocation9_spill] sm:$0xff] %v3992_v12  ;;  %v4001_v39 = vld [vmem:[#allocation2 + $0x48] sm:$0xff]  ;;  %v4009_v42 = vpop.eup %3298 }
 0x122   : > { %v1715_v29 = vmul.f32 %v3905_v53, %v3965_v18  ;;  %v2046_v62 = vadd.f32 %v2014_v5, %v1946_v54  ;;  %v922_v10 = vsub.f32 0.0, %v3961_v15  ;;  %v1716_v17 = vmul.f32 %v3905_v53, %v3969_v25  ;;  %v4015_v54 = vld [vmem:[#allocation2 + $0x49] sm:$0xff] }
 0x123   : > { %v2047_v51 = vadd.f32 %v2015_v1, %v1947_v57  ;;  %3308 = vpow2.f32 %v965_v40  ;;  %v921_v24 = vsub.f32 0.0, %v3975_v28  ;;  %v1217_v7 = vmul.f32 %v3851_v48, %v1181_v55  ;;  %v4024_v1 = vld [vmem:[#allocation2 + $0x51] sm:$0xff] }
 0x124   : > { %v1317_v31 = vmul.f32 %v3848_v47, %v1281_v9  ;;  %v1747_v33 = vadd.f32 %v1715_v29, %v1647_v46  ;;  %v2085_v36 = vmul.f32 %v3985_v2, %v2046_v62  ;;  %v1318_v50 = vmul.f32 %v3848_v47, %v1282_v16  ;;  %v4019_v9 = vpop.f32.mrb[28].mxu0 }
 0x125   : > { %v1218_v49 = vmul.f32 %v3851_v48, %v3948_v63  ;;  %v2086_v40 = vmul.f32 %v3985_v2, %v2047_v51  ;;  %v853_v55 = vmul.f32 %v3861_v4, %v3774_v35  ;;  %5453 = vst [vmem:[#allocation10_spill] sm:$0xff] %v4019_v9  ;;  %v1748_v57 = vadd.f32 %v1716_v17, %v1648_v60  ;;  %v4028_v29 = vpop.f32.mrb[29].mxu0  ;;  %v4033_v4 = vld [vmem:[#allocation2 + $0x4a] sm:$0xff]  ;;  %v4039_v17 = vld [vmem:[#allocation2 + $0x52] sm:$0xff] }
 0x126   : > { %v3301_v46 = vpop.eup %3300  ;;  %v4022_v5 = vadd.f32 %v3999_v22, %v2085_v36  ;;  %v1816_v16 = vmul.f32 %v3922_v6, %v4001_v39  ;;  %v969_v63 = vmul.f32 1.442695, %v922_v10  ;;  %5455 = vst [vmem:[#allocation12_spill] sm:$0xff] %v4028_v29  ;;  %v1817_v30 = vmul.f32 %v3922_v6, %v4007_v38 }
 0x127   : > { %v3303_v62 = vpop.eup %3302  ;;  %v4031_v51 = vadd.f32 %v3999_v22, %v2086_v40  ;;  %3310 = vpow2.f32 %v963_v3  ;;  %v852_v36 = vmul.f32 %v3774_v35, %v3867_v11  ;;  %v1349_v60 = vadd.f32 %v1317_v31, %v1217_v7 }
 0x128   : > { %5454 = vst [vmem:[#allocation11_spill] sm:$0xff] %v4022_v5  ;;  %v1848_v9 = vadd.f32 %v1816_v16, %v1747_v33  ;;  %v1916_v10 = vmul.f32 %v3914_v59, %v4015_v54  ;;  %v967_v29 = vmul.f32 1.442695, %v921_v24  ;;  %v1350_v40 = vadd.f32 %v1318_v50, %v1218_v49 }
 0x129   : > { %5456 = vst [vmem:[#allocation13_spill] sm:$0xff] %v4031_v51  ;;  %v3305_v12 = vpop.eup %3304  ;;  %v2156_v58 = vsub.f32 0.0, %v4022_v5  ;;  %v1917_v21 = vmul.f32 %v3914_v59, %v4024_v1  ;;  %v1849_v14 = vadd.f32 %v1817_v30, %v1748_v57  ;;  %v1417_v3 = vmul.f32 %v3858_v0, %v3965_v18  ;;  %v4058_v57 = vpop.f32.mrb[30].mxu0 }
 0x12a   : > { %v1948_v11 = vadd.f32 %v1916_v10, %v1848_v9  ;;  %v2016_v7 = vmul.f32 %v3917_v61, %v4033_v4  ;;  %3312 = vpow2.f32 %v969_v63  ;;  %v1418_v24 = vmul.f32 %v3858_v0, %v3969_v25  ;;  %5457 = vst [vmem:[#allocation14_spill] sm:$0xff] %v4058_v57 }
 0x12b   : > { %v3307_v31 = vpop.eup %3306  ;;  %v2157_v33 = vsub.f32 0.0, %v4031_v51  ;;  %v2017_v50 = vmul.f32 %v3917_v61, %v4039_v17  ;;  %v1949_v49 = vadd.f32 %v1917_v21, %v1849_v14  ;;  %v1449_v16 = vadd.f32 %v1417_v3, %v1349_v60 }
 0x12c   : > { %v1517_v30 = vmul.f32 %v3899_v44, %v4001_v39  ;;  %v2048_v18 = vadd.f32 %v2016_v7, %v1948_v11  ;;  %v1073_v9 = vmul.f32 %v3301_v46, %v3820_v23  ;;  %v2188_v10 = vmul.f32 1.442695, %v2156_v58 }
 0x12d   : > { %v3309_v63 = vpop.eup %3308  ;;  %v1450_v5 = vadd.f32 %v1418_v24, %v1350_v40  ;;  %v1518_v25 = vmul.f32 %v3899_v44, %v4007_v38  ;;  %v2049_v51 = vadd.f32 %v2017_v50, %v1949_v49  ;;  %v1076_v14 = vmul.f32 %v3303_v62, %v3823_v26 }
 0x12e   : > { %v2087_v20 = vmul.f32 %v3985_v2, %v2048_v18  ;;  %1148 = vst.msk [vmem:[#allocation2 + $0x61] sm:$0xff] %vm1099_vm2, %v1073_v9  ;;  %v1075_v21 = vmul.f32 %v3305_v12, %v3836_v34  ;;  %v1078_v60 = vmul.f32 %v3307_v31, %v3843_v45  ;;  %v2190_v23 = vmul.f32 1.442695, %v2157_v33 }
 0x12f   : > { %v2088_v46 = vmul.f32 %v3985_v2, %v2049_v51  ;;  %v4069_v58 = vadd.f32 %v3779_v37, %v853_v55  ;;  %v4072_v40 = vadd.f32 %v3779_v37, %v852_v36  ;;  %v1219_v3 = vmul.f32 %v3851_v48, %v4001_v39  ;;  %1151 = vst.msk [vmem:[#allocation2 + $0x81] sm:$0xff] %vm1099_vm2, %v1076_v14 }
 0x130   : > { %v1319_v11 = vmul.f32 %v3848_v47, %v4015_v54  ;;  %v1549_v26 = vadd.f32 %v1517_v30, %v1449_v16  ;;  %1150 = vst.msk [vmem:[#allocation2 + $0x79] sm:$0xff] %vm1099_vm2, %v1075_v21  ;;  %1153 = vst.msk [vmem:[#allocation2 + $0x99] sm:$0xff] %vm1099_vm2, %v1078_v60  ;;  %3314 = vpow2.f32 %v967_v29  ;;  %v1320_v45 = vmul.f32 %v3848_v47, %v4024_v1  ;;  %v4103_v16 = vpop.f32.mrb[31].mxu0 }
 0x131   : > { %v3311_v34 = vpop.eup %3310  ;;  %v1220_v12 = vmul.f32 %v3851_v48, %v4007_v38  ;;  %v4086_v39 = vadd.f32 %v3999_v22, %v2087_v20  ;;  %3316 = vpow2.f32 %v2188_v10  ;;  %v1550_v55 = vadd.f32 %v1518_v25, %v1450_v5  ;;  %5458 = vst [vmem:[#allocation15_spill] sm:$0xff] %v4103_v16 }
 0x132   : > { %v1617_v62 = vmul.f32 %v3896_v43, %v4015_v54  ;;  %3318 = vpow2.f32 %v2190_v23  ;;  %v4091_v51 = vadd.f32 %v3999_v22, %v2088_v46  ;;  %v924_v29 = vsub.f32 0.0, %v4069_v58 }
 0x133   : > { %v855_v36 = vmul.f32 %v3876_v19, %v3774_v35  ;;  %v1618_v38 = vmul.f32 %v3896_v43, %v4024_v1  ;;  %v1351_v20 = vadd.f32 %v1319_v11, %v1219_v3  ;;  %v923_v5 = vsub.f32 0.0, %v4072_v40 }
 0x134   : > { %v3313_v7 = vpop.eup %3312  ;;  %v1649_v31 = vadd.f32 %v1617_v62, %v1549_v26  ;;  %v1352_v24 = vadd.f32 %v1320_v45, %v1220_v12  ;;  %v2158_v54 = vsub.f32 0.0, %v4086_v39  ;;  %v1013_v50 = vadd.f32 1.0, %v4009_v42 }
 0x135   : > { %v1185_v33 = vld [vmem:[#allocation2 + $0x60] sm:$0xff]  ;;  %v854_v49 = vmul.f32 %v3774_v35, %v3884_v27  ;;  %v1419_v19 = vmul.f32 %v3858_v0, %v4033_v4  ;;  %v1650_v30 = vadd.f32 %v1618_v38, %v1550_v55  ;;  %v1717_v1 = vmul.f32 %v3905_v53, %v4033_v4  ;;  %v1186_v25 = vld [vmem:[#allocation2 + $0x68] sm:$0xff] }
 0x136   : > { %v1016_v18 = vadd.f32 1.0, %v3309_v63  ;;  %v1420_v9 = vmul.f32 %v3858_v0, %v4039_v17  ;;  %v2159_v10 = vsub.f32 0.0, %v4091_v51  ;;  %v1015_v42 = vadd.f32 1.0, %v3311_v34  ;;  %v1285_v3 = vld [vmem:[#allocation2 + $0x61] sm:$0xff]  ;;  %v1286_v38 = vld [vmem:[#allocation2 + $0x69] sm:$0xff] }
 0x137   : > { %v4112_v14 = vmul.f32 1.442695, %v924_v29  ;;  %v1718_v27 = vmul.f32 %v3905_v53, %v4039_v17  ;;  %v1451_v21 = vadd.f32 %v1419_v19, %v1351_v20  ;;  %v1749_v60 = vadd.f32 %v1717_v1, %v1649_v31  ;;  %v1385_v17 = vld [vmem:[#allocation2 + $0x62] sm:$0xff] }
 0x138   : > { %v1519_v23 = vmul.f32 %v3899_v44, %v1185_v33  ;;  %v2192_v46 = vmul.f32 1.442695, %v2158_v54  ;;  %v1452_v4 = vadd.f32 %v1420_v9, %v1352_v24  ;;  %3320 = vrcp.f32 %v1013_v50 }
 0x139   : > { %v4118_v63 = vadd.f32 %v3779_v37, %v855_v36  ;;  %v1520_v26 = vmul.f32 %v3899_v44, %v1186_v25  ;;  %v1750_v34 = vadd.f32 %v1718_v27, %v1650_v30  ;;  %v1818_v45 = vmul.f32 %v3922_v6, %v1185_v33 }
 0x13a   : > { %v3315_v11 = vpop.eup %3314  ;;  %3322 = vrcp.f32 %v1016_v18  ;;  %v2194_v12 = vmul.f32 1.442695, %v2159_v10  ;;  %v1018_v55 = vadd.f32 1.0, %v3313_v7  ;;  %v4122_v62 = vmul.f32 1.442695, %v923_v5 }
 0x13b   : > { %3324 = vrcp.f32 %v1015_v42  ;;  %v3317_v29 = vpop.eup %3316  ;;  %v1551_v20 = vadd.f32 %v1519_v23, %v1451_v21  ;;  %v1819_v31 = vmul.f32 %v3922_v6, %v1186_v25  ;;  %v1850_v36 = vadd.f32 %v1818_v45, %v1749_v60  ;;  %v1386_v23 = vld [vmem:[#allocation2 + $0x6a] sm:$0xff] }
 0x13c   : > { %v1918_v24 = vmul.f32 %v3914_v59, %v1285_v3  ;;  %v3319_v54 = vpop.eup %3318  ;;  %3326 = vpow2.f32 %v2192_v46  ;;  %v1619_v50 = vmul.f32 %v3896_v43, %v1285_v3  ;;  %v1017_v19 = vadd.f32 1.0, %v3315_v11 }
 0x13d   : > { %v4128_v30 = vadd.f32 %v3779_v37, %v854_v49  ;;  %v1552_v1 = vadd.f32 %v1520_v26, %v1452_v4  ;;  %v1851_v7 = vadd.f32 %v1819_v31, %v1750_v34  ;;  %v2018_v18 = vmul.f32 %v3917_v61, %v1385_v17 }
 0x13e   : > { %v1950_v5 = vadd.f32 %v1918_v24, %v1850_v36  ;;  %v2252_v9 = vadd.f32 1.0, %v3317_v29  ;;  %v1620_v10 = vmul.f32 %v3896_v43, %v1286_v38  ;;  %v1919_v42 = vmul.f32 %v3914_v59, %v1286_v38 }
 0x13f   : > { %5459 = vst [vmem:[#allocation16_spill] sm:$0xff] %v4128_v30  ;;  %3328 = vrcp.f32 %v1018_v55  ;;  %v2253_v27 = vadd.f32 1.0, %v3319_v54  ;;  %v1651_v21 = vadd.f32 %v1619_v50, %v1551_v20  ;;  %v1221_v46 = vmul.f32 %v3851_v48, %v1185_v33  ;;  %v1187_v33 = vld [vmem:[#allocation2 + $0x78] sm:$0xff]  ;;  %v4143_v54 = vld [vmem:[#allocation2 + $0x80] sm:$0xff] }
 0x140   : > { %3330 = vpow2.f32 %v2194_v12  ;;  %v2050_v60 = vadd.f32 %v2018_v18, %v1950_v5  ;;  %v1321_v49 = vmul.f32 %v3848_v47, %v1285_v3  ;;  %v926_v4 = vsub.f32 0.0, %v4118_v63 }
 0x141   : > { %3332 = vrcp.f32 %v1017_v19  ;;  %v1652_v11 = vadd.f32 %v1620_v10, %v1552_v1  ;;  %v1719_v26 = vmul.f32 %v3905_v53, %v1385_v17  ;;  %v1951_v34 = vadd.f32 %v1919_v42, %v1851_v7  ;;  %v4146_v7 = vld [vmem:[#allocation2 + $0x79] sm:$0xff] }
 0x142   : > { %v925_v45 = vsub.f32 0.0, %v4128_v30  ;;  %v3321_v29 = vpop.eup %3320  ;;  %3334 = vrcp.f32 %v2252_v9  ;;  %v1322_v12 = vmul.f32 %v3848_v47, %v1286_v38  ;;  %v1222_v55 = vmul.f32 %v3851_v48, %v1186_v25 }
 0x143   : > { %v2089_v20 = vmul.f32 %v3985_v2, %v2050_v60  ;;  %3336 = vrcp.f32 %v2253_v27  ;;  %v1720_v3 = vmul.f32 %v3905_v53, %v1386_v23  ;;  %v2019_v36 = vmul.f32 %v3917_v61, %v1386_v23  ;;  %v1288_v60 = vld [vmem:[#allocation2 + $0x81] sm:$0xff] }
 0x144   : > { %v3323_v31 = vpop.eup %3322  ;;  %v1751_v24 = vadd.f32 %v1719_v26, %v1651_v21  ;;  %v1422_v19 = vmul.f32 %v3858_v0, %v1386_v23  ;;  %v1353_v1 = vadd.f32 %v1321_v49, %v1221_v46  ;;  %v857_v25 = vmul.f32 %v3902_v52, %v3774_v35  ;;  %v4160_v23 = vld [vmem:[#allocation2 + $0x82] sm:$0xff] }
 0x145   : > { %v3325_v50 = vpop.eup %3324  ;;  %v856_v38 = vmul.f32 %v3774_v35, %v3911_v56  ;;  %v2051_v5 = vadd.f32 %v2019_v36, %v1951_v34  ;;  %v1752_v18 = vadd.f32 %v1720_v3, %v1652_v11  ;;  %v1820_v9 = vmul.f32 %v3922_v6, %v1187_v33  ;;  %v4162_v56 = vld [vmem:[#allocation2 + $0x7a] sm:$0xff] }
 0x146   : > { %3338 = vpow2.f32 %v4112_v14  ;;  %v3327_v10 = vpop.eup %3326  ;;  %v1354_v42 = vadd.f32 %v1322_v12, %v1222_v55  ;;  %v1421_v27 = vmul.f32 %v3858_v0, %v1385_v17  ;;  %v4156_v21 = vadd.f32 %v3999_v22, %v2089_v20 }
 0x147   : > { %v1821_v52 = vmul.f32 %v3922_v6, %v4143_v54  ;;  %v1852_v46 = vadd.f32 %v1820_v9, %v1751_v24  ;;  %v1920_v49 = vmul.f32 %v3914_v59, %v4146_v7  ;;  %v4166_v14 = vmul.f32 1.442695, %v926_v4 }
 0x148   : > { %v4168_v11 = vmul.f32 1.442695, %v925_v45  ;;  %v1453_v26 = vadd.f32 %v1421_v27, %v1353_v1  ;;  %v4171_v12 = vadd.f32 %v3779_v37, %v857_v25  ;;  %v4174_v55 = vadd.f32 %v3779_v37, %v856_v38 }
 0x149   : > { %v3329_v17 = vpop.eup %3328  ;;  %v1853_v34 = vadd.f32 %v1821_v52, %v1752_v18  ;;  %v2254_v3 = vadd.f32 1.0, %v3327_v10  ;;  %v2090_v36 = vmul.f32 %v3985_v2, %v2051_v5  ;;  %v1921_v24 = vmul.f32 %v3914_v59, %v1288_v60 }
 0x14a   : > { %v3331_v20 = vpop.eup %3330  ;;  %v1952_v9 = vadd.f32 %v1920_v49, %v1852_v46  ;;  %v2160_v45 = vsub.f32 0.0, %v4156_v21  ;;  %v2021_v1 = vmul.f32 %v3917_v61, %v4160_v23  ;;  %v1454_v18 = vadd.f32 %v1422_v19, %v1354_v42 }
 0x14b   : > { %v3333_v4 = vpop.eup %3332  ;;  %v2020_v25 = vmul.f32 %v3917_v61, %v4162_v56  ;;  %v1521_v38 = vmul.f32 %v3899_v44, %v1187_v33  ;;  %v1522_v10 = vmul.f32 %v3899_v44, %v4143_v54  ;;  %v1953_v27 = vadd.f32 %v1921_v24, %v1853_v34 }
 0x14c   : > { %v1077_v5 = vmul.f32 %v3321_v29, %v3873_v41  ;;  %v3335_v52 = vpop.eup %3334  ;;  %v2255_v46 = vadd.f32 1.0, %v3331_v20  ;;  %v1080_v16 = vmul.f32 %v3323_v31, %v3909_v32  ;;  %v1079_v57 = vmul.f32 %v3325_v50, %v3926_v8 }
 0x14d   : > { %v2052_v49 = vadd.f32 %v2020_v25, %v1952_v9  ;;  %v3337_v30 = vpop.eup %3336  ;;  %3340 = vrcp.f32 %v2254_v3  ;;  %v4190_v19 = vadd.f32 %v3999_v22, %v2090_v36  ;;  %v1082_v42 = vmul.f32 %v3329_v17, %v3961_v15  ;;  %v5461_v17 = vld [vmem:[#allocation11_spill] sm:$0xff] }
 0x14e   : > { %1152 = vst.msk [vmem:[#allocation2 + $0x91] sm:$0xff] %vm1099_vm2, %v1077_v5  ;;  %v1081_v34 = vmul.f32 %v3333_v4, %v3975_v28  ;;  %v2196_v24 = vmul.f32 1.442695, %v2160_v45  ;;  %v1223_v41 = vmul.f32 %v3851_v48, %v1187_v33  ;;  %v1323_v29 = vmul.f32 %v3848_v47, %v4146_v7  ;;  %1155 = vst.msk [vmem:[#allocation2 + $0xb1] sm:$0xff] %vm1099_vm2, %v1080_v16  ;;  %v5460_v28 = vld [vmem:[#allocation5_spill] sm:$0xff] }
 0x14f   : > { %1154 = vst.msk [vmem:[#allocation2 + $0xa9] sm:$0xff] %vm1099_vm2, %v1079_v57  ;;  %v859_v32 = vmul.f32 %v3933_v13, %v3774_v35  ;;  %v1553_v31 = vadd.f32 %v1521_v38, %v1453_v26  ;;  %v1554_v50 = vadd.f32 %v1522_v10, %v1454_v18  ;;  %v2053_v15 = vadd.f32 %v2021_v1, %v1953_v27  ;;  %v5463_v16 = vld [vmem:[#allocation13_spill] sm:$0xff] }
 0x150   : > { %v4202_v8 = vpop.eup %3338  ;;  %1157 = vst.msk [vmem:[#allocation2 + $0xc9] sm:$0xff] %vm1099_vm2, %v1082_v42  ;;  %1156 = vst.msk [vmem:[#allocation2 + $0xc1] sm:$0xff] %vm1099_vm2, %v1081_v34  ;;  %v858_v33 = vmul.f32 %v3774_v35, %v5460_v28  ;;  %v4209_v20 = vmul.f32 %v3335_v52, %v5461_v17  ;;  %v4212_v57 = vmul.f32 %v3337_v30, %v5463_v16  ;;  %3342 = vrcp.f32 %v2255_v46  ;;  %v1290_v52 = vld [vmem:[#allocation2 + $0x99] sm:$0xff] }
 0x151   : > { %v2091_v13 = vmul.f32 %v3985_v2, %v2052_v49  ;;  %v2161_v26 = vsub.f32 0.0, %v4190_v19  ;;  %v1622_v36 = vmul.f32 %v3896_v43, %v1288_v60  ;;  %v1621_v9 = vmul.f32 %v3896_v43, %v4146_v7  ;;  %v1390_v46 = vld [vmem:[#allocation2 + $0x9a] sm:$0xff] }
 0x152   : > { %5462 = vst [vmem:[#allocation5_spill] sm:$0xff] %v4209_v20  ;;  %5464 = vst [vmem:[#allocation11_spill] sm:$0xff] %v4212_v57  ;;  %3344 = vpow2.f32 %v2196_v24  ;;  %v1324_v35 = vmul.f32 %v3848_v47, %v1288_v60  ;;  %v1224_v4 = vmul.f32 %v3851_v48, %v4143_v54  ;;  %v1355_v30 = vadd.f32 %v1323_v29, %v1223_v41 }
 0x153   : > { %v1653_v45 = vadd.f32 %v1621_v9, %v1553_v31  ;;  %v1654_v1 = vadd.f32 %v1622_v36, %v1554_v50  ;;  %v2092_v18 = vmul.f32 %v3985_v2, %v2053_v15  ;;  %v2348_v38 = vsel %vm1099_vm2, %v4209_v20, 0.0 }
 0x154   : > { %v2349_v10 = vsel %vm1099_vm2, %v4212_v57, 0.0  ;;  %v1423_v7 = vmul.f32 %v3858_v0, %v4162_v56  ;;  %v4232_v60 = vadd.f32 %v3999_v22, %v2091_v13  ;;  %v2198_v54 = vmul.f32 1.442695, %v2161_v26 }
 0x155   : > { %v1722_v27 = vmul.f32 %v3905_v53, %v4160_v23  ;;  %v1721_v5 = vmul.f32 %v3905_v53, %v4162_v56  ;;  %v1189_v49 = vld [vmem:[#allocation2 + $0x90] sm:$0xff]  ;;  %v4239_v42 = vadd.f32 %v3779_v37, %v859_v32  ;;  %v1424_v34 = vmul.f32 %v3858_v0, %v4160_v23  ;;  %v1190_v29 = vld [vmem:[#allocation2 + $0x98] sm:$0xff] }
 0x156   : > { %v1356_v24 = vadd.f32 %v1324_v35, %v1224_v4  ;;  %v1455_v41 = vadd.f32 %v1423_v7, %v1355_v30  ;;  %v4244_v31 = vadd.f32 %v3779_v37, %v858_v33  ;;  %v4246_v15 = vadd.f32 %v2349_v10, %v2348_v38  ;;  %v1289_v13 = vld [vmem:[#allocation2 + $0x91] sm:$0xff] }
 0x157   : > { %v3341_v50 = vpop.eup %3340  ;;  %v1753_v28 = vadd.f32 %v1721_v5, %v1653_v45  ;;  %v4249_v56 = vadd.f32 %v3999_v22, %v2092_v18  ;;  %v1754_v17 = vadd.f32 %v1722_v27, %v1654_v1  ;;  %v2162_v32 = vsub.f32 0.0, %v4232_v60  ;;  %v1389_v4 = vld [vmem:[#allocation2 + $0x92] sm:$0xff] }
 0x158   : > { %v1326_v16 = vmul.f32 %v3848_v47, %v1290_v52  ;;  %v1426_v23 = vmul.f32 %v3858_v0, %v1390_v46  ;;  %v1523_v26 = vmul.f32 %v3899_v44, %v1189_v49  ;;  %3346 = vpow2.f32 %v2198_v54 }
 0x159   : > { %v1923_v37 = vmul.f32 %v3914_v59, %v1290_v52  ;;  %v1822_v33 = vmul.f32 %v3922_v6, %v1189_v49  ;;  %v1823_v36 = vmul.f32 %v3922_v6, %v1190_v29  ;;  %v4259_v9 = vmul.f32 %v3341_v50, %v4086_v39 }
 0x15a   : > { %v2023_v35 = vmul.f32 %v3917_v61, %v1390_v46  ;;  %v1456_v30 = vadd.f32 %v1424_v34, %v1356_v24  ;;  %v1524_v45 = vmul.f32 %v3899_v44, %v1190_v29  ;;  %v3343_v1 = vpop.eup %3342  ;;  %v2163_v18 = vsub.f32 0.0, %v4249_v56 }
 0x15b   : > { %5465 = vst [vmem:[#allocation13_spill] sm:$0xff] %v4259_v9  ;;  %v1854_v38 = vadd.f32 %v1822_v33, %v1753_v28  ;;  %v1855_v10 = vadd.f32 %v1823_v36, %v1754_v17  ;;  %v1922_v7 = vmul.f32 %v3914_v59, %v1289_v13  ;;  %v2200_v27 = vmul.f32 1.442695, %v2162_v32 }
 0x15c   : > { %v3345_v54 = vpop.eup %3344  ;;  %v1225_v5 = vmul.f32 %v3851_v48, %v1189_v49  ;;  %v1325_v39 = vmul.f32 %v3848_v47, %v1289_v13  ;;  %v1555_v50 = vadd.f32 %v1523_v26, %v1455_v41  ;;  %v1226_v25 = vmul.f32 %v3851_v48, %v1190_v29 }
 0x15d   : > { %v1954_v3 = vadd.f32 %v1922_v7, %v1854_v38  ;;  %v1955_v34 = vadd.f32 %v1923_v37, %v1855_v10  ;;  %v2022_v24 = vmul.f32 %v3917_v61, %v1389_v4  ;;  %v1624_v57 = vmul.f32 %v3896_v43, %v1290_v52  ;;  %v4291_v38 = vld [vmem:[#allocation2 + $0xb1] sm:$0xff] }
 0x15e   : > { %v1724_v28 = vmul.f32 %v3905_v53, %v1390_v46  ;;  %v1556_v17 = vadd.f32 %v1524_v45, %v1456_v30  ;;  %v1623_v33 = vmul.f32 %v3896_v43, %v1289_v13  ;;  %v4273_v32 = vmul.f32 %v3343_v1, %v4091_v51  ;;  %v4279_v30 = vld [vmem:[#allocation2 + $0xa8] sm:$0xff] }
 0x15f   : > { %v2256_v49 = vadd.f32 1.0, %v3345_v54  ;;  %v2054_v36 = vadd.f32 %v2022_v24, %v1954_v3  ;;  %v2055_v20 = vadd.f32 %v2023_v35, %v1955_v34  ;;  %v2202_v41 = vmul.f32 1.442695, %v2163_v18  ;;  %v4283_v35 = vld [vmem:[#allocation2 + $0xb0] sm:$0xff] }
 0x160   : > { %5466 = vst [vmem:[#allocation17_spill] sm:$0xff] %v4273_v32  ;;  %v1357_v26 = vadd.f32 %v1325_v39, %v1225_v5  ;;  %v1655_v29 = vadd.f32 %v1623_v33, %v1555_v50  ;;  %3348 = vpow2.f32 %v4122_v62  ;;  %v2351_v37 = vsel %vm1099_vm2, %v4259_v9, 0.0  ;;  %v4312_v34 = vld [vmem:[#allocation2 + $0xaa] sm:$0xff] }
 0x161   : > { %3350 = vpow2.f32 %v2200_v27  ;;  %v1358_v52 = vadd.f32 %v1326_v16, %v1226_v25  ;;  %v2093_v46 = vmul.f32 %v3985_v2, %v2054_v36  ;;  %v1425_v51 = vmul.f32 %v3858_v0, %v1389_v4 }
 0x162   : > { %v1656_v13 = vadd.f32 %v1624_v57, %v1556_v17  ;;  %v1723_v3 = vmul.f32 %v3905_v53, %v1389_v4  ;;  %3352 = vpow2.f32 %v4166_v14  ;;  %v3347_v45 = vpop.eup %3346  ;;  %v2094_v62 = vmul.f32 %v3985_v2, %v2055_v20  ;;  %v4296_v14 = vld [vmem:[#allocation2 + $0xa9] sm:$0xff] }
 0x163   : > { %3354 = vrcp.f32 %v2256_v49  ;;  %v4288_v1 = vadd.f32 %v3999_v22, %v2093_v46  ;;  %v1020_v25 = vadd.f32 1.0, %v4202_v8  ;;  %v1457_v16 = vadd.f32 %v1425_v51, %v1357_v26  ;;  %v4316_v49 = vld [vmem:[#allocation2 + $0xb2] sm:$0xff] }
 0x164   : > { %3356 = vpow2.f32 %v2202_v41  ;;  %v1755_v18 = vadd.f32 %v1723_v3, %v1655_v29  ;;  %v1525_v57 = vmul.f32 %v3899_v44, %v4279_v30  ;;  %v2352_v4 = vadd.f32 %v2351_v37, %v4246_v15 }
 0x165   : > { %v1458_v10 = vadd.f32 %v1426_v23, %v1358_v52  ;;  %v1526_v20 = vmul.f32 %v3899_v44, %v4283_v35  ;;  %v5467_v7 = vsub.f32 0.0, %v4171_v12  ;;  %v2257_v8 = vadd.f32 1.0, %v3347_v45 }
 0x166   : > { %v1756_v27 = vadd.f32 %v1724_v28, %v1656_v13  ;;  %v1824_v5 = vmul.f32 %v3922_v6, %v4279_v30  ;;  %v1825_v39 = vmul.f32 %v3922_v6, %v4283_v35  ;;  %v4307_v50 = vadd.f32 %v3999_v22, %v2094_v62 }
 0x167   : > { %v981_v54 = vmul.f32 1.442695, %v5467_v7  ;;  %v2164_v15 = vsub.f32 0.0, %v4288_v1  ;;  %v1925_v23 = vmul.f32 %v3914_v59, %v4291_v38  ;;  %3358 = vrcp.f32 %v1020_v25 }
 0x168   : > { %v1557_v24 = vadd.f32 %v1525_v57, %v1457_v16  ;;  %v1856_v17 = vadd.f32 %v1824_v5, %v1755_v18  ;;  %v1857_v28 = vadd.f32 %v1825_v39, %v1756_v27  ;;  %v1924_v33 = vmul.f32 %v3914_v59, %v4296_v14 }
 0x169   : > { %v1558_v36 = vadd.f32 %v1526_v20, %v1458_v10  ;;  %3360 = vpow2.f32 %v4168_v11  ;;  %v5468_v41 = vsub.f32 0.0, %v4174_v55  ;;  %v930_v29 = vsub.f32 0.0, %v4239_v42 }
 0x16a   : > { %v4322_v37 = vpop.eup %3348  ;;  %3362 = vrcp.f32 %v2257_v8  ;;  %v1625_v52 = vmul.f32 %v3896_v43, %v4296_v14  ;;  %v1956_v46 = vadd.f32 %v1924_v33, %v1856_v17  ;;  %v1957_v51 = vadd.f32 %v1925_v23, %v1857_v28 }
 0x16b   : > { %v979_v26 = vmul.f32 1.442695, %v5468_v41  ;;  %v3351_v13 = vpop.eup %3350  ;;  %v2165_v3 = vsub.f32 0.0, %v4307_v50  ;;  %v2204_v45 = vmul.f32 1.442695, %v2164_v15  ;;  %v1626_v11 = vmul.f32 %v3896_v43, %v4291_v38  ;;  %v5469_v41 = vld [vmem:[#allocation6_spill] sm:$0xff] }
 0x16c   : > { %v2024_v62 = vmul.f32 %v3917_v61, %v4312_v34  ;;  %v4331_v25 = vpop.eup %3352  ;;  %v2353_v16 = vsel %vm1099_vm2, %v4273_v32, 0.0  ;;  %v2025_v18 = vmul.f32 %v3917_v61, %v4316_v49  ;;  %v1657_v57 = vadd.f32 %v1625_v52, %v1557_v24  ;;  %v4342_v24 = vld [vmem:[#allocation2 + $0xc0] sm:$0xff]  ;;  %v5470_v52 = vld [vmem:[#allocation7_spill] sm:$0xff] }
 0x16d   : > { %3364 = vpow2.f32 %v981_v54  ;;  %v3355_v10 = vpop.eup %3354  ;;  %v2354_v20 = vadd.f32 %v2353_v16, %v2352_v4  ;;  %v1658_v7 = vadd.f32 %v1626_v11, %v1558_v36  ;;  %v2258_v5 = vadd.f32 1.0, %v3351_v13  ;;  %v4344_v54 = vld [vmem:[#allocation2 + $0xc8] sm:$0xff]  ;;  %v4351_v36 = vld [vmem:[%s5403_s2] ss:$0 sm:$0xff] }
 0x16e   : > { %v2056_v8 = vadd.f32 %v2024_v62, %v1956_v46  ;;  %3366 = vpow2.f32 %v979_v26  ;;  %v3357_v27 = vpop.eup %3356  ;;  %v1725_v39 = vmul.f32 %v3905_v53, %v4312_v34  ;;  %v2057_v15 = vadd.f32 %v2025_v18, %v1957_v51  ;;  %v5471_v51 = vld [vmem:[#allocation8_spill] sm:$0xff]  ;;  %v4369_v62 = vld [vmem:[#allocation2 + $0xc9] sm:$0xff] }
 0x16f   : > { %3368 = vpow2.f32 %v2204_v45  ;;  %v2206_v17 = vmul.f32 1.442695, %v2165_v3  ;;  %v1726_v28 = vmul.f32 %v3905_v53, %v4316_v49  ;;  %v4346_v4 = vmul.f32 1.442695, %v930_v29 }
 0x170   : > { %v1757_v33 = vadd.f32 %v1725_v39, %v1657_v57  ;;  %v4355_v26 = vmul.f32 %v4351_v36, %v5469_v41  ;;  %v4359_v46 = vmul.f32 %v4351_v36, %v5470_v52  ;;  %v4363_v13 = vmul.f32 %v4351_v36, %v5471_v51 }
 0x171   : > { %v3359_v29 = vpop.eup %3358  ;;  %v4366_v3 = vmul.f32 %v3355_v10, %v4156_v21  ;;  %v2259_v45 = vadd.f32 1.0, %v3357_v27  ;;  %v2095_v11 = vmul.f32 %v3985_v2, %v2056_v8  ;;  %v1758_v16 = vadd.f32 %v1726_v28, %v1658_v7  ;;  %v4382_v8 = vld [vmem:[#allocation2 + $0xc1] sm:$0xff] }
 0x172   : > { %3370 = vrcp.f32 %v2258_v5  ;;  %v2096_v18 = vmul.f32 %v3985_v2, %v2057_v15  ;;  %v1826_v57 = vmul.f32 %v3922_v6, %v4342_v24  ;;  %v1827_v39 = vmul.f32 %v3922_v6, %v4344_v54  ;;  %v4386_v15 = vld [vmem:[#allocation2 + $0xca] sm:$0xff] }
 0x173   : > { %5472 = vst [vmem:[#allocation6_spill] sm:$0xff] %v4366_v3  ;;  %v3361_v41 = vpop.eup %3360  ;;  %3372 = vpow2.f32 %v2206_v17  ;;  %v1328_v21 = vmul.f32 %v3848_v47, %v4291_v38  ;;  %v1227_v10 = vmul.f32 %v3851_v48, %v4279_v30  ;;  %v1327_v7 = vmul.f32 %v3848_v47, %v4296_v14 }
 0x174   : > { %v3363_v27 = vpop.eup %3362  ;;  %v1228_v5 = vmul.f32 %v3851_v48, %v4283_v35  ;;  %v1927_v17 = vmul.f32 %v3914_v59, %v4369_v62  ;;  %v1858_v28 = vadd.f32 %v1826_v57, %v1757_v33  ;;  %v1859_v52 = vadd.f32 %v1827_v39, %v1758_v16  ;;  %v4407_v39 = vld [vmem:[#allocation2 + $0xc2] sm:$0xff] }
 0x175   : > { %v2355_v38 = vsel %vm1099_vm2, %v4366_v3, 0.0  ;;  %3374 = vrcp.f32 %v2259_v45  ;;  %v4393_v30 = vadd.f32 %v3999_v22, %v2095_v11  ;;  %v1084_v14 = vmul.f32 %v3359_v29, %v4069_v58 }
 0x176   : > { %v4397_v23 = vadd.f32 %v3999_v22, %v2096_v18  ;;  %v1926_v35 = vmul.f32 %v3914_v59, %v4382_v8  ;;  %v1959_v32 = vadd.f32 %v1927_v17, %v1859_v52  ;;  %v1019_v33 = vadd.f32 1.0, %v4322_v37 }
 0x177   : > { %5473 = vst [vmem:[#allocation7_spill] sm:$0xff] %v4393_v30  ;;  %v3365_v51 = vpop.eup %3364  ;;  %v4403_v57 = vmul.f32 %v3363_v27, %v4190_v19  ;;  %v1359_v45 = vadd.f32 %v1327_v7, %v1227_v10  ;;  %v2027_v11 = vmul.f32 %v3917_v61, %v4386_v15  ;;  %1159 = vst.msk [vmem:[#allocation2 + $0xe1] sm:$0xff] %vm1099_vm2, %v1084_v14  ;;  %v1022_v58 = vadd.f32 1.0, %v4331_v25 }
 0x178   : > { %5474 = vst [vmem:[#allocation8_spill] sm:$0xff] %v4397_v23  ;;  %v3367_v16 = vpop.eup %3366  ;;  %v2356_v29 = vadd.f32 %v2355_v38, %v2354_v20  ;;  %v1428_v18 = vmul.f32 %v3858_v0, %v4316_v49  ;;  %v1958_v17 = vadd.f32 %v1926_v35, %v1858_v28  ;;  %v1021_v37 = vadd.f32 1.0, %v3361_v41 }
 0x179   : > { %5475 = vst [vmem:[#allocation18_spill] sm:$0xff] %v4403_v57  ;;  %v3369_v52 = vpop.eup %3368  ;;  %v1427_v19 = vmul.f32 %v3858_v0, %v4312_v34  ;;  %v2166_v10 = vsub.f32 0.0, %v4393_v30  ;;  %v2059_v7 = vadd.f32 %v2027_v11, %v1959_v32  ;;  %v1024_v27 = vadd.f32 1.0, %v3365_v51 }
 0x17a   : > { %v2167_v3 = vsub.f32 0.0, %v4397_v23  ;;  %v2026_v14 = vmul.f32 %v3917_v61, %v4407_v39  ;;  %3376 = vrcp.f32 %v1019_v33  ;;  %v1023_v25 = vadd.f32 1.0, %v3367_v16 }
 0x17b   : > { %v2357_v49 = vsel %vm1099_vm2, %v4403_v57, 0.0  ;;  %v1360_v20 = vadd.f32 %v1328_v21, %v1228_v5  ;;  %v1459_v41 = vadd.f32 %v1427_v19, %v1359_v45  ;;  %3378 = vrcp.f32 %v1022_v58 }
 0x17c   : > { %v3371_v28 = vpop.eup %3370  ;;  %v2358_v38 = vadd.f32 %v2357_v49, %v2356_v29  ;;  %v2260_v34 = vadd.f32 1.0, %v3369_v52  ;;  %v2058_v35 = vadd.f32 %v2026_v14, %v1958_v17  ;;  %3380 = vrcp.f32 %v1021_v37 }
 0x17d   : > { %v3373_v32 = vpop.eup %3372  ;;  %v2208_v51 = vmul.f32 1.442695, %v2166_v10  ;;  %v1330_v11 = vmul.f32 %v3848_v47, %v4369_v62  ;;  %v2098_v9 = vmul.f32 %v3985_v2, %v2059_v7  ;;  %3382 = vrcp.f32 %v1024_v27 }
 0x17e   : > { %v2210_v33 = vmul.f32 1.442695, %v2167_v3  ;;  %v1229_v16 = vmul.f32 %v3851_v48, %v4342_v24  ;;  %v1527_v21 = vmul.f32 %v3899_v44, %v4342_v24  ;;  %3384 = vrcp.f32 %v1023_v25 }
 0x17f   : > { %v3375_v5 = vpop.eup %3374  ;;  %v4429_v45 = vmul.f32 %v3371_v28, %v4232_v60  ;;  %v1329_v58 = vmul.f32 %v3848_v47, %v4382_v8  ;;  %v1460_v29 = vadd.f32 %v1428_v18, %v1360_v20  ;;  %v1528_v17 = vmul.f32 %v3899_v44, %v4344_v54 }
 0x180   : > { %v2261_v37 = vadd.f32 1.0, %v3373_v32  ;;  %3386 = vrcp.f32 %v2260_v34  ;;  %v1430_v3 = vmul.f32 %v3858_v0, %v4386_v15  ;;  %v2097_v52 = vmul.f32 %v3985_v2, %v2058_v35 }
 0x181   : > { %5476 = vst [vmem:[#allocation19_spill] sm:$0xff] %v4429_v45  ;;  %3388 = vpow2.f32 %v2208_v51  ;;  %v1628_v24 = vmul.f32 %v3896_v43, %v4369_v62  ;;  %v1230_v60 = vmul.f32 %v3851_v48, %v4344_v54  ;;  %v4443_v19 = vadd.f32 %v3999_v22, %v2098_v9 }
 0x182   : > { %v4446_v18 = vmul.f32 %v3375_v5, %v4249_v56  ;;  %3390 = vpow2.f32 %v2210_v33  ;;  %v1728_v10 = vmul.f32 %v3905_v53, %v4386_v15  ;;  %v1559_v7 = vadd.f32 %v1527_v21, %v1459_v41  ;;  %v4462_v15 = vld [vmem:[%s5404_s3] ss:$0 sm:$0xff] }
 0x183   : > { %5477 = vst [vmem:[#allocation20_spill] sm:$0xff] %v4443_v19  ;;  %v2359_v2 = vsel %vm1099_vm2, %v4429_v45, 0.0  ;;  %v1361_v27 = vadd.f32 %v1329_v58, %v1229_v16  ;;  %v1429_v62 = vmul.f32 %v3858_v0, %v4407_v39  ;;  %v1560_v14 = vadd.f32 %v1528_v17, %v1460_v29  ;;  %v5481_v21 = vld [vmem:[#allocation9_spill] sm:$0xff] }
 0x184   : > { %5478 = vst [vmem:[#allocation21_spill] sm:$0xff] %v4446_v18  ;;  %v3377_v54 = vpop.eup %3376  ;;  %3392 = vrcp.f32 %v2261_v37  ;;  %v1627_v9 = vmul.f32 %v3896_v43, %v4382_v8  ;;  %v4457_v56 = vadd.f32 %v3999_v22, %v2097_v52  ;;  %v4466_v25 = vadd.f32 %v4462_v15, %v4355_v26  ;;  %v5482_v37 = vld [vmem:[#allocation10_spill] sm:$0xff] }
 0x185   : > { %v3379_v49 = vpop.eup %3378  ;;  %v1362_v20 = vadd.f32 %v1330_v11, %v1230_v60  ;;  %v1727_v41 = vmul.f32 %v3905_v53, %v4407_v39  ;;  %v2169_v28 = vsub.f32 0.0, %v4443_v19  ;;  %v1083_v8 = vmul.f32 %v3377_v54, %v4072_v40  ;;  %v5480_v11 = vld [vmem:[#allocation16_spill] sm:$0xff] }
 0x186   : > { %5479 = vst [vmem:[#allocation22_spill] sm:$0xff] %v4457_v56  ;;  %v3381_v22 = vpop.eup %3380  ;;  %v2360_v34 = vadd.f32 %v2359_v2, %v2358_v38  ;;  %v2361_v35 = vsel %vm1099_vm2, %v4446_v18, 0.0  ;;  %v1659_v32 = vadd.f32 %v1627_v9, %v1559_v7  ;;  %v1086_v51 = vmul.f32 %v3379_v49, %v4118_v63 }
 0x187   : > { %v3383_v33 = vpop.eup %3382  ;;  %v1660_v26 = vadd.f32 %v1628_v24, %v1560_v14  ;;  %1158 = vst.msk [vmem:[#allocation2 + $0xd9] sm:$0xff] %vm1099_vm2, %v1083_v8  ;;  %v1085_v16 = vmul.f32 %v3381_v22, %v5480_v11  ;;  %v4479_v39 = vadd.f32 %v4462_v15, %v4359_v46  ;;  %v862_v40 = vmul.f32 %v4351_v36, %v5481_v21  ;;  %v1396_v14 = vld [vmem:[#allocation2 + $0xe2] sm:$0xff] }
 0x188   : > { %v3385_v38 = vpop.eup %3384  ;;  %v2168_v5 = vsub.f32 0.0, %v4457_v56  ;;  %1161 = vst.msk [vmem:[#allocation2 + $0xf9] sm:$0xff] %vm1099_vm2, %v1086_v51  ;;  %v1088_v63 = vmul.f32 %v3383_v33, %v4171_v12  ;;  %v932_v58 = vsub.f32 0.0, %v4466_v25  ;;  %v4489_v29 = vadd.f32 %v4462_v15, %v4363_v13  ;;  %v1296_v13 = vld [vmem:[#allocation2 + $0xe1] sm:$0xff] }
 0x189   : > { %v2214_v17 = vmul.f32 1.442695, %v2169_v28  ;;  %1160 = vst.msk [vmem:[#allocation2 + $0xf1] sm:$0xff] %vm1099_vm2, %v1085_v16  ;;  %v1087_v46 = vmul.f32 %v3385_v38, %v4174_v55  ;;  %3394 = vpow2.f32 %v4346_v4  ;;  %v865_v52 = vmul.f32 %v4351_v36, %v5482_v37  ;;  %v5485_v38 = vld [vmem:[#allocation12_spill] sm:$0xff] }
 0x18a   : > { %v3387_v24 = vpop.eup %3386  ;;  %v2362_v60 = vadd.f32 %v2361_v35, %v2360_v34  ;;  %v4496_v7 = vadd.f32 %v1429_v62, %v1361_v27  ;;  %1163 = vst.msk [vmem:[#allocation2 + $0x111] sm:$0xff] %vm1099_vm2, %v1088_v63  ;;  %v4499_v2 = vadd.f32 %v1727_v41, %v1659_v32  ;;  %v4501_v54 = vadd.f32 %v1430_v3, %v1362_v20 }
 0x18b   : > { %v3389_v12 = vpop.eup %3388  ;;  %v4503_v9 = vadd.f32 %v1728_v10, %v1660_v26  ;;  %1162 = vst.msk [vmem:[#allocation2 + $0x109] sm:$0xff] %vm1099_vm2, %v1087_v46  ;;  %v4507_v55 = vadd.f32 %v4462_v15, %v862_v40  ;;  %v2212_v49 = vmul.f32 1.442695, %v2168_v5  ;;  %v5483_v27 = vsub.f32 0.0, %v4244_v31 }
 0x18c   : > { %v3391_v4 = vpop.eup %3390  ;;  %v931_v28 = vsub.f32 0.0, %v4479_v39  ;;  %v934_v41 = vsub.f32 0.0, %v4489_v29  ;;  %v4514_v8 = vmul.f32 %v3387_v24, %v4288_v1  ;;  %3396 = vpow2.f32 %v2214_v17 }
 0x18d   : > { %v983_v62 = vmul.f32 1.442695, %v5483_v27  ;;  %v989_v3 = vmul.f32 1.442695, %v932_v58  ;;  %v4517_v10 = vadd.f32 %v4462_v15, %v865_v52  ;;  %v2262_v22 = vadd.f32 1.0, %v3389_v12  ;;  %v5487_v52 = vld [vmem:[#allocation14_spill] sm:$0xff] }
 0x18e   : > { %5484 = vst [vmem:[#allocation16_spill] sm:$0xff] %v4514_v8  ;;  %v3393_v20 = vpop.eup %3392  ;;  %v1332_v34 = vmul.f32 %v3848_v47, %v1296_v13  ;;  %v4521_v35 = vmul.f32 %v3858_v0, %v1396_v14  ;;  %v4524_v32 = vmul.f32 %v3896_v43, %v1296_v13  ;;  %v2263_v51 = vadd.f32 1.0, %v3391_v4  ;;  %v1195_v16 = vld [vmem:[#allocation2 + $0xd8] sm:$0xff]  ;;  %v1196_v17 = vld [vmem:[#allocation2 + $0xe0] sm:$0xff]  ;;  %v5488_v12 = vld [vmem:[#allocation15_spill] sm:$0xff] }
 0x18f   : > { %v4527_v33 = vmul.f32 %v3905_v53, %v1396_v14  ;;  %v4530_v1 = vmul.f32 %v3914_v59, %v1296_v13  ;;  %v933_v26 = vsub.f32 0.0, %v4507_v55  ;;  %3398 = vpow2.f32 %v2212_v49  ;;  %v1295_v21 = vld [vmem:[#allocation2 + $0xd9] sm:$0xff] }
 0x190   : > { %v4534_v11 = vmul.f32 %v3917_v61, %v1396_v14  ;;  %v987_v40 = vmul.f32 1.442695, %v931_v28  ;;  %v864_v5 = vmul.f32 %v4351_v36, %v5485_v38  ;;  %v4539_v63 = vmul.f32 %v3393_v20, %v4307_v50  ;;  %v1395_v38 = vld [vmem:[#allocation2 + $0xda] sm:$0xff] }
 0x191   : > { %v2363_v58 = vsel %vm1099_vm2, %v4514_v8, 0.0  ;;  %3400 = vpow2.f32 %v983_v62  ;;  %v936_v46 = vsub.f32 0.0, %v4517_v10  ;;  %v993_v37 = vmul.f32 1.442695, %v934_v41  ;;  %v1808_v41 = vld [vmem:[#allocation2 + $0x198] sm:$0xff] }
 0x192   : > { %5486 = vst [vmem:[#allocation9_spill] sm:$0xff] %v4539_v63  ;;  %3402 = vrcp.f32 %v2262_v22  ;;  %v867_v24 = vmul.f32 %v4351_v36, %v5487_v52  ;;  %v866_v13 = vmul.f32 %v4351_v36, %v5488_v12  ;;  %v1231_v50 = vmul.f32 %v3851_v48, %v1195_v16 }
 0x193   : > { %v3395_v14 = vpop.eup %3394  ;;  %3404 = vrcp.f32 %v2263_v51  ;;  %v1331_v4 = vmul.f32 %v3848_v47, %v1295_v21  ;;  %v991_v49 = vmul.f32 1.442695, %v933_v26  ;;  %v4550_v27 = vadd.f32 %v2363_v58, %v2362_v60  ;;  %v1809_v51 = vld [vmem:[#allocation2 + $0x1a0] sm:$0xff] }
 0x194   : > { %v1232_v62 = vmul.f32 %v3851_v48, %v1196_v17  ;;  %3406 = vpow2.f32 %v989_v3  ;;  %v4554_v28 = vadd.f32 %v4462_v15, %v864_v5  ;;  %v4558_v20 = vsel %vm1099_vm2, %v4539_v63, 0.0  ;;  %v4572_v63 = vld [vmem:[#allocation2 + $0xf0] sm:$0xff] }
 0x195   : > { %5489 = vst [vmem:[#allocation10_spill] sm:$0xff] %v4550_v27  ;;  %5490 = vst [vmem:[#allocation12_spill] sm:$0xff] %v4558_v20  ;;  %v1529_v36 = vmul.f32 %v3899_v44, %v1195_v16  ;;  %3408 = vpow2.f32 %v987_v40  ;;  %v997_v22 = vmul.f32 1.442695, %v936_v46  ;;  %v1026_v26 = vadd.f32 1.0, %v3395_v14  ;;  %v4581_v14 = vld [vmem:[#allocation2 + $0xf8] sm:$0xff] }
 0x196   : > { %3410 = vpow2.f32 %v993_v37  ;;  %v4562_v60 = vadd.f32 %v4462_v15, %v867_v24  ;;  %v4565_v3 = vadd.f32 %v4462_v15, %v866_v13  ;;  %v3397_v5 = vpop.eup %3396  ;;  %v1363_v58 = vadd.f32 %v1331_v4, %v1231_v50  ;;  %v1297_v20 = vld [vmem:[#allocation2 + $0xf1] sm:$0xff] }
 0x197   : > { %v1828_v52 = vmul.f32 %v3922_v6, %v1195_v16  ;;  %3412 = vpow2.f32 %v991_v49  ;;  %v4569_v12 = vmul.f32 %v3922_v6, %v1808_v41  ;;  %v1364_v40 = vadd.f32 %v1332_v34, %v1232_v62  ;;  %v1908_v62 = vld [vmem:[#allocation2 + $0x199] sm:$0xff] }
 0x198   : > { %v1530_v46 = vmul.f32 %v3899_v44, %v1196_v17  ;;  %v935_v37 = vsub.f32 0.0, %v4554_v28  ;;  %v4576_v24 = vmul.f32 %v3922_v6, %v1809_v51  ;;  %v1431_v15 = vmul.f32 %v3858_v0, %v1395_v38 }
 0x199   : > { %5491 = vst [vmem:[#allocation14_spill] sm:$0xff] %v4569_v12  ;;  %v1561_v13 = vadd.f32 %v1529_v36, %v4496_v7  ;;  %v1860_v16 = vadd.f32 %v1828_v52, %v4499_v2  ;;  %3414 = vpow2.f32 %v997_v22  ;;  %v3399_v50 = vpop.eup %3398  ;;  %v2265_v34 = vadd.f32 1.0, %v3397_v5  ;;  %v1909_v36 = vld [vmem:[#allocation2 + $0x1a1] sm:$0xff] }
 0x19a   : > { %5492 = vst [vmem:[#allocation15_spill] sm:$0xff] %v4576_v24  ;;  %3416 = vrcp.f32 %v1026_v26  ;;  %v938_v4 = vsub.f32 0.0, %v4562_v60  ;;  %v937_v49 = vsub.f32 0.0, %v4565_v3  ;;  %v1463_v51 = vadd.f32 %v1431_v15, %v1363_v58  ;;  %v2008_v22 = vld [vmem:[#allocation2 + $0x19a] sm:$0xff] }
 0x19b   : > { %v4585_v41 = vpop.eup %3400  ;;  %v1629_v8 = vmul.f32 %v3896_v43, %v1295_v21  ;;  %v1928_v7 = vmul.f32 %v3914_v59, %v1295_v21  ;;  %v1531_v2 = vmul.f32 %v3899_v44, %v4572_v63  ;;  %v1562_v26 = vadd.f32 %v1530_v46, %v4501_v54 }
 0x19c   : > { %v4591_v52 = vpop.eup %3402  ;;  %v1829_v5 = vmul.f32 %v3922_v6, %v1196_v17  ;;  %v1464_v18 = vadd.f32 %v4521_v35, %v1364_v40  ;;  %v1532_v58 = vmul.f32 %v3899_v44, %v4581_v14  ;;  %v2264_v45 = vadd.f32 1.0, %v3399_v50 }
 0x19d   : > { %5493 = vst [vmem:[#allocation23_spill] sm:$0xff] %v4591_v52  ;;  %v4598_v15 = vpop.eup %3404  ;;  %v1661_v21 = vadd.f32 %v1629_v8, %v1561_v13  ;;  %v1960_v57 = vadd.f32 %v1928_v7, %v1860_v16  ;;  %v4601_v19 = vmul.f32 %v3914_v59, %v1908_v62  ;;  %v4604_v54 = vmul.f32 1.442695, %v935_v37  ;;  %v1298_v13 = vld [vmem:[#allocation2 + $0xf9] sm:$0xff] }
 0x19e   : > { %5494 = vst [vmem:[#allocation24_spill] sm:$0xff] %v4598_v15  ;;  %v3407_v56 = vpop.eup %3406  ;;  %v1861_v23 = vadd.f32 %v1829_v5, %v4503_v9  ;;  %v4607_v17 = vmul.f32 %v3914_v59, %v1909_v36  ;;  %v4610_v35 = vmul.f32 %v3917_v61, %v2008_v22  ;;  %v1729_v46 = vmul.f32 %v3905_v53, %v1395_v38  ;;  %v1398_v15 = vld [vmem:[#allocation2 + $0xfa] sm:$0xff] }
 0x19f   : > { %5495 = vst [vmem:[#allocation25_spill] sm:$0xff] %v4601_v19  ;;  %v3409_v40 = vpop.eup %3408  ;;  %v2028_v8 = vmul.f32 %v3917_v61, %v1395_v38  ;;  %v1563_v16 = vadd.f32 %v1531_v2, %v1463_v51  ;;  %v4614_v50 = vmul.f32 1.442695, %v938_v4  ;;  %3418 = vrcp.f32 %v2265_v34  ;;  %v1200_v19 = vld [vmem:[#allocation2 + $0x110] sm:$0xff] }
 0x1a0   : > { %5496 = vst [vmem:[#allocation26_spill] sm:$0xff] %v4607_v17  ;;  %5497 = vst [vmem:[#allocation27_spill] sm:$0xff] %v4610_v35  ;;  %v3411_v62 = vpop.eup %3410  ;;  %v1662_v9 = vadd.f32 %v4524_v32, %v1562_v26  ;;  %v1564_v37 = vadd.f32 %v1532_v58, %v1464_v18  ;;  %v4617_v7 = vmul.f32 1.442695, %v937_v49  ;;  %3420 = vrcp.f32 %v2264_v45  ;;  %v1397_v32 = vld [vmem:[#allocation2 + $0xf2] sm:$0xff] }
 0x1a1   : > { %v3413_v36 = vpop.eup %3412  ;;  %v1761_v22 = vadd.f32 %v1729_v46, %v1661_v21  ;;  %v2060_v5 = vadd.f32 %v2028_v8, %v1960_v57  ;;  %v1631_v27 = vmul.f32 %v3896_v43, %v1297_v20  ;;  %v1961_v38 = vadd.f32 %v4530_v1, %v1861_v23  ;;  %v4636_v46 = vld [vmem:[%s5406_s5] ss:$0 sm:$0xff] }
 0x1a2   : > { %v1334_v51 = vmul.f32 %v3848_v47, %v1298_v13  ;;  %v1632_v4 = vmul.f32 %v3896_v43, %v1298_v13  ;;  %v1233_v34 = vmul.f32 %v3851_v48, %v4572_v63  ;;  %v1234_v49 = vmul.f32 %v3851_v48, %v4581_v14  ;;  %5498 = vst [vmem:[#allocation28_spill] sm:$0xff] %v4636_v46 }
 0x1a3   : > { %v3415_v18 = vpop.eup %3414  ;;  %v1333_v45 = vmul.f32 %v3848_v47, %v1297_v20  ;;  %v1663_v57 = vadd.f32 %v1631_v27, %v1563_v16  ;;  %v1830_v2 = vmul.f32 %v3922_v6, %v4572_v63  ;;  %v1434_v23 = vmul.f32 %v3858_v0, %v1398_v15 }
 0x1a4   : > { %v3417_v26 = vpop.eup %3416  ;;  %v1732_v1 = vmul.f32 %v3905_v53, %v1398_v15  ;;  %v1664_v58 = vadd.f32 %v1632_v4, %v1564_v37  ;;  %v1762_v21 = vadd.f32 %v4527_v33, %v1662_v9  ;;  %v2099_v8 = vmul.f32 %v4636_v46, %v2060_v5  ;;  %v1199_v9 = vld [vmem:[#allocation2 + $0x108] sm:$0xff] }
 0x1a5   : > { %v1931_v27 = vmul.f32 %v3914_v59, %v1298_v13  ;;  %v1731_v16 = vmul.f32 %v3905_v53, %v1397_v32  ;;  %v1862_v63 = vadd.f32 %v1830_v2, %v1761_v22  ;;  %v2061_v35 = vadd.f32 %v4534_v11, %v1961_v38  ;;  %v1300_v2 = vld [vmem:[#allocation2 + $0x111] sm:$0xff] }
 0x1a6   : > { %v2031_v17 = vmul.f32 %v3917_v61, %v1398_v15  ;;  %v1433_v37 = vmul.f32 %v3858_v0, %v1397_v32  ;;  %v1831_v33 = vmul.f32 %v3922_v6, %v4581_v14  ;;  %v1365_v4 = vadd.f32 %v1333_v45, %v1233_v34  ;;  %v4652_v15 = vld [vmem:[%s5407_s6] ss:$0 sm:$0xff]  ;;  %v1299_v45 = vld [vmem:[#allocation2 + $0x109] sm:$0xff] }
 0x1a7   : > { %v1366_v52 = vadd.f32 %v1334_v51, %v1234_v49  ;;  %v1763_v30 = vadd.f32 %v1731_v16, %v1663_v57  ;;  %v1930_v5 = vmul.f32 %v3914_v59, %v1297_v20  ;;  %v1764_v24 = vadd.f32 %v1732_v1, %v1664_v58  ;;  %5499 = vst [vmem:[#allocation29_spill] sm:$0xff] %v4652_v15 }
 0x1a8   : > { %v1863_v13 = vadd.f32 %v1831_v33, %v1762_v21  ;;  %v1090_v22 = vmul.f32 %v3417_v26, %v4239_v42  ;;  %v1025_v11 = vadd.f32 1.0, %v4585_v41  ;;  %v4655_v14 = vadd.f32 %v4652_v15, %v2099_v8 }
 0x1a9   : > { %v1962_v38 = vadd.f32 %v1930_v5, %v1862_v63  ;;  %v1832_v51 = vmul.f32 %v3922_v6, %v1199_v9  ;;  %v1028_v34 = vadd.f32 1.0, %v3407_v56  ;;  %v4658_v20 = vpop.eup %3418  ;;  %v2030_v49 = vmul.f32 %v3917_v61, %v1397_v32  ;;  %v1400_v5 = vld [vmem:[#allocation2 + $0x112] sm:$0xff] }
 0x1aa   : > { %5500 = vst [vmem:[#allocation30_spill] sm:$0xff] %v4655_v14  ;;  %5501 = vst [vmem:[#allocation31_spill] sm:$0xff] %v4658_v20  ;;  %v1833_v42 = vmul.f32 %v3922_v6, %v1200_v19  ;;  %3422 = vrcp.f32 %v1025_v11  ;;  %v1027_v41 = vadd.f32 1.0, %v3409_v40  ;;  %v4663_v57 = vpop.eup %3420  ;;  %v1030_v1 = vadd.f32 1.0, %v3411_v62 }
 0x1ab   : > { %1165 = vst.msk [vmem:[#allocation2 + $0x129] sm:$0xff] %vm1099_vm2, %v1090_v22  ;;  %5502 = vst [vmem:[#allocation32_spill] sm:$0xff] %v4663_v57  ;;  %v1864_v26 = vadd.f32 %v1832_v51, %v1763_v30  ;;  %3424 = vrcp.f32 %v1028_v34  ;;  %v1029_v58 = vadd.f32 1.0, %v3413_v36  ;;  %v1963_v21 = vadd.f32 %v1931_v27, %v1863_v13  ;;  %v1399_v22 = vld [vmem:[#allocation2 + $0x10a] sm:$0xff] }
 0x1ac   : > { %v1865_v56 = vadd.f32 %v1833_v42, %v1764_v24  ;;  %3426 = vrcp.f32 %v1027_v41  ;;  %v1032_v8 = vadd.f32 1.0, %v3415_v18  ;;  %v2100_v32 = vmul.f32 %v4636_v46, %v2061_v35 }
 0x1ad   : > { %v2062_v16 = vadd.f32 %v2030_v49, %v1962_v38  ;;  %v1932_v63 = vmul.f32 %v3914_v59, %v1299_v45  ;;  %3428 = vrcp.f32 %v1030_v1  ;;  %v1465_v33 = vadd.f32 %v1433_v37, %v1365_v4 }
 0x1ae   : > { %v1933_v40 = vmul.f32 %v3914_v59, %v1300_v2  ;;  %v1466_v11 = vadd.f32 %v1434_v23, %v1366_v52  ;;  %3430 = vrcp.f32 %v1029_v58  ;;  %v1533_v30 = vmul.f32 %v3899_v44, %v1199_v9 }
 0x1af   : > { %v1534_v62 = vmul.f32 %v3899_v44, %v1200_v19  ;;  %v1964_v24 = vadd.f32 %v1932_v63, %v1864_v26  ;;  %3432 = vrcp.f32 %v1032_v8  ;;  %v2170_v36 = vsub.f32 0.0, %v4655_v14 }
 0x1b0   : > { %v2063_v35 = vadd.f32 %v2031_v17, %v1963_v21  ;;  %v1336_v18 = vmul.f32 %v3848_v47, %v1300_v2  ;;  %v1965_v27 = vadd.f32 %v1933_v40, %v1865_v56  ;;  %v2101_v37 = vmul.f32 %v4636_v46, %v2062_v16 }
 0x1b1   : > { %v1436_v4 = vmul.f32 %v3858_v0, %v1400_v5  ;;  %v2032_v13 = vmul.f32 %v3917_v61, %v1399_v22  ;;  %3434 = vpow2.f32 %v4604_v54  ;;  %v2033_v52 = vmul.f32 %v3917_v61, %v1400_v5 }
 0x1b2   : > { %v1235_v23 = vmul.f32 %v3851_v48, %v1199_v9  ;;  %v1236_v38 = vmul.f32 %v3851_v48, %v1200_v19  ;;  %v1335_v51 = vmul.f32 %v3848_v47, %v1299_v45  ;;  %v1634_v17 = vmul.f32 %v3896_v43, %v1300_v2 }
 0x1b3   : > { %v1565_v34 = vadd.f32 %v1533_v30, %v1465_v33  ;;  %v1566_v49 = vadd.f32 %v1534_v62, %v1466_v11  ;;  %v2064_v42 = vadd.f32 %v2032_v13, %v1964_v24  ;;  %v1734_v26 = vmul.f32 %v3905_v53, %v1400_v5  ;;  %v1302_v13 = vld [vmem:[#allocation2 + $0x129] sm:$0xff] }
 0x1b4   : > { %v3423_v41 = vpop.eup %3422  ;;  %v1633_v1 = vmul.f32 %v3896_v43, %v1299_v45  ;;  %v2065_v58 = vadd.f32 %v2033_v52, %v1965_v27  ;;  %v2102_v54 = vmul.f32 %v4636_v46, %v2063_v35  ;;  %3436 = vpow2.f32 %v4614_v50  ;;  %v2009_v50 = vld [vmem:[#allocation2 + $0x1a2] sm:$0xff] }
 0x1b5   : > { %v3425_v21 = vpop.eup %3424  ;;  %v1089_v9 = vmul.f32 %v3423_v41, %v4244_v31  ;;  %v4687_v19 = vadd.f32 %v4652_v15, %v2100_v32  ;;  %v4690_v2 = vadd.f32 %v4652_v15, %v2101_v37  ;;  %v2216_v8 = vmul.f32 1.442695, %v2170_v36 }
 0x1b6   : > { %v3427_v56 = vpop.eup %3426  ;;  %v1367_v16 = vadd.f32 %v1335_v51, %v1235_v23  ;;  %v1368_v63 = vadd.f32 %v1336_v18, %v1236_v38  ;;  %v1092_v45 = vmul.f32 %v3425_v21, %v4466_v25  ;;  %v1665_v5 = vadd.f32 %v1633_v1, %v1565_v34 }
 0x1b7   : > { %5503 = vst [vmem:[#allocation33_spill] sm:$0xff] %v4687_v19  ;;  %5504 = vst [vmem:[#allocation34_spill] sm:$0xff] %v4690_v2  ;;  %v3429_v33 = vpop.eup %3428  ;;  %v1666_v40 = vadd.f32 %v1634_v17, %v1566_v49  ;;  %v1091_v31 = vmul.f32 %v3427_v56, %v4479_v39  ;;  %v2103_v32 = vmul.f32 %v4636_v46, %v2064_v42  ;;  %v2171_v18 = vsub.f32 0.0, %v4687_v19 }
 0x1b8   : > { %1164 = vst.msk [vmem:[#allocation2 + $0x121] sm:$0xff] %vm1099_vm2, %v1089_v9  ;;  %v3431_v11 = vpop.eup %3430  ;;  %v1435_v30 = vmul.f32 %v3858_v0, %v1399_v22  ;;  %1167 = vst.msk [vmem:[#allocation2 + $0x141] sm:$0xff] %vm1099_vm2, %v1092_v45  ;;  %v1094_v62 = vmul.f32 %v3429_v33, %v4489_v29  ;;  %v2104_v24 = vmul.f32 %v4636_v46, %v2065_v58  ;;  %v2172_v27 = vsub.f32 0.0, %v4690_v2  ;;  %v1402_v29 = vld [vmem:[#allocation2 + $0x12a] sm:$0xff] }
 0x1b9   : > { %v4701_v25 = vadd.f32 %v4652_v15, %v2102_v54  ;;  %v3433_v36 = vpop.eup %3432  ;;  %v1733_v35 = vmul.f32 %v3905_v53, %v1399_v22  ;;  %1166 = vst.msk [vmem:[#allocation2 + $0x139] sm:$0xff] %vm1099_vm2, %v1091_v31  ;;  %v1093_v39 = vmul.f32 %v3431_v11, %v4507_v55  ;;  %3438 = vpow2.f32 %v2216_v8 }
 0x1ba   : > { %v1467_v37 = vadd.f32 %v1435_v30, %v1367_v16  ;;  %1169 = vst.msk [vmem:[#allocation2 + $0x159] sm:$0xff] %vm1099_vm2, %v1094_v62  ;;  %v1096_v52 = vmul.f32 %v3433_v36, %v4517_v10  ;;  %v4711_v23 = vmul.f32 %v3917_v61, %v2009_v50  ;;  %v1468_v51 = vadd.f32 %v1436_v4, %v1368_v63 }
 0x1bb   : > { %5505 = vst [vmem:[#allocation35_spill] sm:$0xff] %v4701_v25  ;;  %v3435_v22 = vpop.eup %3434  ;;  %v1765_v38 = vadd.f32 %v1733_v35, %v1665_v5  ;;  %v1766_v17 = vadd.f32 %v1734_v26, %v1666_v40  ;;  %1168 = vst.msk [vmem:[#allocation2 + $0x151] sm:$0xff] %vm1099_vm2, %v1093_v39  ;;  %v4715_v55 = vadd.f32 %v4652_v15, %v2103_v32  ;;  %3440 = vpow2.f32 %v4617_v7 }
 0x1bc   : > { %5506 = vst [vmem:[#allocation36_spill] sm:$0xff] %v4711_v23  ;;  %1171 = vst.msk [vmem:[#allocation2 + $0x171] sm:$0xff] %vm1099_vm2, %v1096_v52  ;;  %v1031_v34 = vadd.f32 1.0, %v3435_v22  ;;  %v4720_v49 = vadd.f32 %v4652_v15, %v2104_v24  ;;  %v2173_v10 = vsub.f32 0.0, %v4701_v25  ;;  %v1338_v42 = vmul.f32 %v3848_v47, %v1302_v13 }
 0x1bd   : > { %5507 = vst [vmem:[#allocation37_spill] sm:$0xff] %v4715_v55  ;;  %v4725_v4 = vmul.f32 %v3858_v0, %v1402_v29  ;;  %v4727_v41 = vmul.f32 1.442695, %v2171_v18  ;;  %v4729_v26 = vmul.f32 1.442695, %v2172_v27  ;;  %v4732_v1 = vmul.f32 %v3896_v43, %v1302_v13 }
 0x1be   : > { %5508 = vst [vmem:[#allocation38_spill] sm:$0xff] %v4720_v49  ;;  %v4735_v58 = vmul.f32 %v3905_v53, %v1402_v29  ;;  %v4738_v7 = vmul.f32 %v3914_v59, %v1302_v13  ;;  %3442 = vrcp.f32 %v1031_v34  ;;  %v3437_v56 = vpop.eup %3436  ;;  %v4745_v5 = vmul.f32 %v3917_v61, %v1402_v29 }
 0x1bf   : > { %5509 = vst [vmem:[#allocation39_spill] sm:$0xff] %v4727_v41  ;;  %5510 = vst [vmem:[#allocation40_spill] sm:$0xff] %v4729_v26  ;;  %v1201_v54 = vld [vmem:[#allocation2 + $0x120] sm:$0xff]  ;;  %v1202_v21 = vld [vmem:[#allocation2 + $0x128] sm:$0xff]  ;;  %v1034_v27 = vadd.f32 1.0, %v3437_v56 }
 0x1c0   : > { %v1301_v9 = vld [vmem:[#allocation2 + $0x121] sm:$0xff]  ;;  %v1237_v8 = vmul.f32 %v3851_v48, %v1201_v54  ;;  %v1238_v16 = vmul.f32 %v3851_v48, %v1202_v21  ;;  %v1535_v33 = vmul.f32 %v3899_v44, %v1201_v54  ;;  %5511 = vst [vmem:[#allocation41_spill] sm:$0xff] %v4745_v5  ;;  %v1536_v40 = vmul.f32 %v3899_v44, %v1202_v21  ;;  %v1203_v24 = vld [vmem:[#allocation2 + $0x138] sm:$0xff] }
 0x1c1   : > { %v1337_v63 = vmul.f32 %v3848_v47, %v1301_v9  ;;  %v1401_v45 = vld [vmem:[#allocation2 + $0x122] sm:$0xff]  ;;  %v1635_v30 = vmul.f32 %v3896_v43, %v1301_v9  ;;  %v1834_v62 = vmul.f32 %v3922_v6, %v1201_v54  ;;  %v1303_v18 = vld [vmem:[#allocation2 + $0x139] sm:$0xff]  ;;  %v4756_v13 = vmul.f32 1.442695, %v2173_v10 }
 0x1c2   : > { %v1567_v11 = vadd.f32 %v1535_v33, %v1467_v37  ;;  %v1437_v36 = vmul.f32 %v3858_v0, %v1401_v45  ;;  %v1735_v35 = vmul.f32 %v3905_v53, %v1401_v45  ;;  %v4754_v39 = vld [vmem:[#allocation2 + $0x141] sm:$0xff]  ;;  %v1370_v29 = vadd.f32 %v1338_v42, %v1238_v16  ;;  %v4792_v31 = vld [vmem:[#allocation2 + $0x159] sm:$0xff] }
 0x1c3   : > { %v1369_v32 = vadd.f32 %v1337_v63, %v1237_v8  ;;  %5512 = vst [vmem:[#allocation42_spill] sm:$0xff] %v4756_v13  ;;  %v1835_v22 = vmul.f32 %v3922_v6, %v1202_v21  ;;  %v1866_v37 = vadd.f32 %v1834_v62, %v1765_v38  ;;  %v4759_v34 = vld [vmem:[#allocation2 + $0x142] sm:$0xff]  ;;  %v4761_v54 = vpop.eup %3438  ;;  %v1568_v63 = vadd.f32 %v1536_v40, %v1468_v51  ;;  %v4768_v10 = vld [vmem:[#allocation2 + $0x13a] sm:$0xff]  ;;  %v4777_v51 = vld [vmem:[#allocation2 + $0x151] sm:$0xff] }
 0x1c4   : > { %v1667_v52 = vadd.f32 %v1635_v30, %v1567_v11  ;;  %v1204_v8 = vld [vmem:[#allocation2 + $0x140] sm:$0xff]  ;;  %5513 = vst [vmem:[#allocation43_spill] sm:$0xff] %v4761_v54  ;;  %v1934_v33 = vmul.f32 %v3914_v59, %v1301_v9  ;;  %v4765_v50 = vmul.f32 %v3917_v61, %v1401_v45  ;;  %v1239_v56 = vmul.f32 %v3851_v48, %v1203_v24  ;;  %v4775_v11 = vld [vmem:[#allocation2 + $0x150] sm:$0xff] }
 0x1c5   : > { %v1469_v42 = vadd.f32 %v1437_v36, %v1369_v32  ;;  %v4770_v16 = vadd.f32 %v1835_v22, %v1766_v17  ;;  %v1340_v38 = vmul.f32 %v3848_v47, %v4754_v39  ;;  %v1339_v21 = vmul.f32 %v3848_v47, %v1303_v18  ;;  %v3441_v9 = vpop.eup %3440  ;;  %v4804_v57 = vld [vmem:[#allocation2 + $0x152] sm:$0xff] }
 0x1c6   : > { %5514 = vst [vmem:[#allocation44_spill] sm:$0xff] %v4765_v50  ;;  %v4779_v40 = vadd.f32 %v1735_v35, %v1667_v52  ;;  %v1440_v45 = vmul.f32 %v3858_v0, %v4759_v34  ;;  %v1638_v32 = vmul.f32 %v3896_v43, %v4754_v39  ;;  %v1240_v17 = vmul.f32 %v3851_v48, %v1204_v8  ;;  %v4794_v35 = vld [vmem:[#allocation2 + $0x158] sm:$0xff] }
 0x1c7   : > { %v4786_v30 = vadd.f32 %v1934_v33, %v1866_v37  ;;  %v1439_v62 = vmul.f32 %v3858_v0, %v4768_v10  ;;  %v1537_v36 = vmul.f32 %v3899_v44, %v1203_v24  ;;  %v1538_v22 = vmul.f32 %v3899_v44, %v1204_v8  ;;  %v4823_v15 = vld [vmem:[#allocation2 + $0x172] sm:$0xff] }
 0x1c8   : > { %v3443_v52 = vpop.eup %3442  ;;  %v1371_v25 = vadd.f32 %v1339_v21, %v1239_v56  ;;  %v1637_v2 = vmul.f32 %v3896_v43, %v1303_v18  ;;  %v1241_v19 = vmul.f32 %v3851_v48, %v4775_v11  ;;  %v1341_v37 = vmul.f32 %v3848_v47, %v4777_v51  ;;  %5516 = vst [vmem:[#allocation46_spill] sm:$0xff] %v4823_v15 }
 0x1c9   : > { %5515 = vst [vmem:[#allocation45_spill] sm:$0xff] %v4786_v30  ;;  %v1737_v33 = vmul.f32 %v3905_v53, %v4768_v10  ;;  %v1095_v14 = vmul.f32 %v3443_v52, %v4554_v28  ;;  %3444 = vrcp.f32 %v1034_v27  ;;  %v1033_v20 = vadd.f32 1.0, %v3441_v9  ;;  %v4819_v28 = vld [vmem:[#allocation2 + $0x171] sm:$0xff]  ;;  %v4821_v9 = vld [vmem:[#allocation2 + $0x15a] sm:$0xff] }
 0x1ca   : > { %v1539_v56 = vmul.f32 %v3899_v44, %v4775_v11  ;;  %v1242_v21 = vmul.f32 %v3851_v48, %v4794_v35  ;;  %v1342_v23 = vmul.f32 %v3848_v47, %v4792_v31  ;;  %v1372_v54 = vadd.f32 %v1340_v38, %v1240_v17 }
 0x1cb   : > { %v4813_v13 = vmul.f32 %v3922_v6, %v1203_v24  ;;  %v4816_v49 = vmul.f32 %v3922_v6, %v1204_v8  ;;  %1170 = vst.msk [vmem:[#allocation2 + $0x169] sm:$0xff] %vm1099_vm2, %v1095_v14  ;;  %3446 = vrcp.f32 %v1033_v20  ;;  %v1373_v27 = vadd.f32 %v1341_v37, %v1241_v19 }
 0x1cc   : > { %v1569_v52 = vadd.f32 %v1537_v36, %v1469_v42  ;;  %v1374_v26 = vadd.f32 %v1342_v23, %v1242_v21  ;;  %v1470_v38 = vadd.f32 %v4725_v4, %v1370_v29  ;;  %v1471_v17 = vadd.f32 %v1439_v62, %v1371_v25 }
 0x1cd   : > { %v4827_v24 = vmul.f32 %v3914_v59, %v1303_v18  ;;  %v1441_v8 = vmul.f32 %v3858_v0, %v4804_v57  ;;  %v1472_v14 = vadd.f32 %v1440_v45, %v1372_v54  ;;  %v1540_v20 = vmul.f32 %v3899_v44, %v4794_v35 }
 0x1ce   : > { %v1344_v19 = vmul.f32 %v3848_v47, %v4819_v28  ;;  %v1442_v23 = vmul.f32 %v3858_v0, %v4821_v9  ;;  %v1570_v42 = vadd.f32 %v1538_v22, %v1470_v38  ;;  %v1571_v36 = vadd.f32 %v1539_v56, %v1471_v17 }
 0x1cf   : > { %v1444_v25 = vmul.f32 %v3858_v0, %v4823_v15  ;;  %v1473_v4 = vadd.f32 %v1441_v8, %v1373_v27  ;;  %v1572_v18 = vadd.f32 %v1540_v20, %v1472_v14  ;;  %v1639_v29 = vmul.f32 %v3896_v43, %v4777_v51 }
 0x1d0   : > { %v1474_v54 = vadd.f32 %v1442_v23, %v1374_v26  ;;  %v1640_v45 = vmul.f32 %v3896_v43, %v4792_v31  ;;  %v1668_v62 = vadd.f32 %v4732_v1, %v1568_v63  ;;  %v1669_v37 = vadd.f32 %v1637_v2, %v1569_v52 }
 0x1d1   : > { %v1642_v21 = vmul.f32 %v3896_v43, %v4819_v28  ;;  %v1670_v22 = vadd.f32 %v1638_v32, %v1570_v42  ;;  %v1671_v56 = vadd.f32 %v1639_v29, %v1571_v36  ;;  %v1738_v38 = vmul.f32 %v3905_v53, %v4759_v34 }
 0x1d2   : > { %v1207_v27 = vld [vmem:[#allocation2 + $0x168] sm:$0xff]  ;;  %v1208_v17 = vld [vmem:[#allocation2 + $0x170] sm:$0xff]  ;;  %v1672_v14 = vadd.f32 %v1640_v45, %v1572_v18  ;;  %v1739_v26 = vmul.f32 %v3905_v53, %v4804_v57  ;;  %v1740_v20 = vmul.f32 %v3905_v53, %v4821_v9  ;;  %v1742_v2 = vmul.f32 %v3905_v53, %v4823_v15 }
 0x1d3   : > { %v1307_v8 = vld [vmem:[#allocation2 + $0x169] sm:$0xff]  ;;  %v3445_v1 = vpop.eup %3444  ;;  %v1243_v63 = vmul.f32 %v3851_v48, %v1207_v27  ;;  %v1244_v32 = vmul.f32 %v3851_v48, %v1208_v17  ;;  %v1541_v23 = vmul.f32 %v3899_v44, %v1207_v27  ;;  %v1542_v18 = vmul.f32 %v3899_v44, %v1208_v17 }
 0x1d4   : > { %v1343_v52 = vmul.f32 %v3848_v47, %v1307_v8  ;;  %v1098_v42 = vmul.f32 %v3445_v1, %v4562_v60  ;;  %v4859_v36 = vld [vmem:[#allocation2 + $0x16a] sm:$0xff]  ;;  %v1768_v29 = vadd.f32 %v4735_v58, %v1668_v62  ;;  %v1769_v45 = vadd.f32 %v1737_v33, %v1669_v37 }
 0x1d5   : > { %v3447_v55 = vpop.eup %3446  ;;  %v1573_v41 = vadd.f32 %v1541_v23, %v1473_v4  ;;  %v1641_v12 = vmul.f32 %v3896_v43, %v1307_v8  ;;  %v1770_v46 = vadd.f32 %v1738_v38, %v1670_v22  ;;  %v1771_v15 = vadd.f32 %v1739_v26, %v1671_v56 }
 0x1d6   : > { %1173 = vst.msk [vmem:[#allocation2 + $0x189] sm:$0xff] %vm1099_vm2, %v1098_v42  ;;  %v1097_v47 = vmul.f32 %v3447_v55, %v4565_v3  ;;  %v1375_v48 = vadd.f32 %v1343_v52, %v1243_v63  ;;  %v1574_v5 = vadd.f32 %v1542_v18, %v1474_v54  ;;  %v1772_v60 = vadd.f32 %v1740_v20, %v1672_v14 }
 0x1d7   : > { %v1376_v1 = vadd.f32 %v1344_v19, %v1244_v32  ;;  %v1443_v50 = vmul.f32 %v3858_v0, %v4859_v36  ;;  %v1673_v30 = vadd.f32 %v1641_v12, %v1573_v41  ;;  %v1838_v58 = vmul.f32 %v3922_v6, %v4775_v11 }
 0x1d8   : > { %1172 = vst.msk [vmem:[#allocation2 + $0x181] sm:$0xff] %vm1099_vm2, %v1097_v47  ;;  %v1674_v33 = vadd.f32 %v1642_v21, %v1574_v5  ;;  %v1839_v4 = vmul.f32 %v3922_v6, %v4794_v35  ;;  %v1840_v62 = vmul.f32 %v3922_v6, %v1207_v27  ;;  %v1841_v3 = vmul.f32 %v3922_v6, %v1208_v17 }
 0x1d9   : > { %v1741_v55 = vmul.f32 %v3905_v53, %v4859_v36  ;;  %v1868_v0 = vadd.f32 %v4813_v13, %v4779_v40  ;;  %v1869_v12 = vadd.f32 %v4816_v49, %v1768_v29  ;;  %v1870_v41 = vadd.f32 %v1838_v58, %v1769_v45  ;;  %v5518_v45 = vld [vmem:[#allocation44_spill] sm:$0xff] }
 0x1da   : > { %v1475_v11 = vadd.f32 %v1443_v50, %v1375_v48  ;;  %v1871_v19 = vadd.f32 %v1839_v4, %v1770_v46  ;;  %v1872_v54 = vadd.f32 %v1840_v62, %v1771_v15  ;;  %v1873_v5 = vadd.f32 %v1841_v3, %v1772_v60  ;;  %v5519_v60 = vld [vmem:[#allocation41_spill] sm:$0xff]  ;;  %v5520_v62 = vld [vmem:[#allocation46_spill] sm:$0xff] }
 0x1db   : > { %v1476_v37 = vadd.f32 %v1444_v25, %v1376_v1  ;;  %v1773_v21 = vadd.f32 %v1741_v55, %v1673_v30  ;;  %v1937_v35 = vmul.f32 %v3914_v59, %v4754_v39  ;;  %v1938_v22 = vmul.f32 %v3914_v59, %v4777_v51 }
 0x1dc   : > { %v1774_v56 = vadd.f32 %v1742_v2, %v1674_v33  ;;  %v1939_v38 = vmul.f32 %v3914_v59, %v4792_v31  ;;  %v1940_v13 = vmul.f32 %v3914_v59, %v1307_v8  ;;  %v1941_v49 = vmul.f32 %v3914_v59, %v4819_v28 }
 0x1dd   : > { %v1608_v46 = vld [vmem:[#allocation2 + $0x189] sm:$0xff]  ;;  %v1967_v50 = vadd.f32 %v4738_v7, %v4770_v16  ;;  %v1968_v40 = vadd.f32 %v4827_v24, %v1868_v0  ;;  %v1969_v39 = vadd.f32 %v1937_v35, %v1869_v12  ;;  %v1970_v30 = vadd.f32 %v1938_v22, %v1870_v41 }
 0x1de   : > { %v1708_v15 = vld [vmem:[#allocation2 + $0x18a] sm:$0xff]  ;;  %v1971_v25 = vadd.f32 %v1939_v38, %v1871_v19  ;;  %v1972_v51 = vadd.f32 %v1940_v13, %v1872_v54  ;;  %v1973_v27 = vadd.f32 %v1941_v49, %v1873_v5  ;;  %v2036_v31 = vmul.f32 %v3917_v61, %v4768_v10 }
 0x1df   : > { %v1507_v17 = vld [vmem:[#allocation2 + $0x180] sm:$0xff]  ;;  %v1508_v8 = vld [vmem:[#allocation2 + $0x188] sm:$0xff]  ;;  %v1644_v28 = vmul.f32 %v3896_v43, %v1608_v46  ;;  %v1744_v26 = vmul.f32 %v3905_v53, %v1708_v15  ;;  %v1943_v20 = vmul.f32 %v3914_v59, %v1608_v46  ;;  %v2037_v7 = vmul.f32 %v3917_v61, %v4759_v34 }
 0x1e0   : > { %v1607_v14 = vld [vmem:[#allocation2 + $0x181] sm:$0xff]  ;;  %v1543_v16 = vmul.f32 %v3899_v44, %v1507_v17  ;;  %v1544_v24 = vmul.f32 %v3899_v44, %v1508_v8  ;;  %v1842_v2 = vmul.f32 %v3922_v6, %v1507_v17  ;;  %v2038_v10 = vmul.f32 %v3917_v61, %v4804_v57  ;;  %v5517_v44 = vld [vmem:[#allocation45_spill] sm:$0xff]  ;;  %v5523_v49 = vld [vmem:[#allocation39_spill] sm:$0xff] }
 0x1e1   : > { %v1643_v63 = vmul.f32 %v3896_v43, %v1607_v14  ;;  %v1707_v32 = vld [vmem:[#allocation2 + $0x182] sm:$0xff]  ;;  %v1843_v52 = vmul.f32 %v3922_v6, %v1508_v8  ;;  %v2039_v23 = vmul.f32 %v3917_v61, %v4821_v9  ;;  %v2040_v34 = vmul.f32 %v3917_v61, %v4859_v36  ;;  %v5524_v46 = vld [vmem:[#allocation37_spill] sm:$0xff] }
 0x1e2   : > { %v1575_v42 = vadd.f32 %v1543_v16, %v1475_v11  ;;  %v1576_v18 = vadd.f32 %v1544_v24, %v1476_v37  ;;  %v1874_v29 = vadd.f32 %v1842_v2, %v1773_v21  ;;  %v2066_v47 = vadd.f32 %v5518_v45, %v5517_v44  ;;  %v5521_v11 = vld [vmem:[#allocation28_spill] sm:$0xff]  ;;  %v5522_v21 = vld [vmem:[#allocation14_spill] sm:$0xff]  ;;  %v5535_v45 = vld [vmem:[#allocation43_spill] sm:$0xff] }
 0x1e3   : > { %v1875_v48 = vadd.f32 %v1843_v52, %v1774_v56  ;;  %v1942_v57 = vmul.f32 %v3914_v59, %v1607_v14  ;;  %v2067_v43 = vadd.f32 %v5519_v60, %v1967_v50  ;;  %v2068_v1 = vadd.f32 %v2036_v31, %v1968_v40  ;;  %v5527_v31 = vld [vmem:[#allocation40_spill] sm:$0xff]  ;;  %v5528_v17 = vld [vmem:[#allocation38_spill] sm:$0xff] }
 0x1e4   : > { %v1675_v58 = vadd.f32 %v1643_v63, %v1575_v42  ;;  %v1676_v6 = vadd.f32 %v1644_v28, %v1576_v18  ;;  %v1743_v33 = vmul.f32 %v3905_v53, %v1707_v32  ;;  %v2069_v9 = vadd.f32 %v2037_v7, %v1969_v39  ;;  %v5526_v39 = vld [vmem:[#allocation29_spill] sm:$0xff]  ;;  %v5530_v28 = vld [vmem:[#allocation15_spill] sm:$0xff]  ;;  %v5532_v42 = vld [vmem:[#allocation42_spill] sm:$0xff] }
 0x1e5   : > { %v1974_v4 = vadd.f32 %v1942_v57, %v1874_v29  ;;  %v2041_v36 = vmul.f32 %v3917_v61, %v5520_v62  ;;  %v2043_v3 = vmul.f32 %v3917_v61, %v1708_v15  ;;  %v2070_v55 = vadd.f32 %v2038_v10, %v1970_v30  ;;  %v5533_v18 = vld [vmem:[#allocation7_spill] sm:$0xff]  ;;  %v5536_v57 = vld [vmem:[#allocation26_spill] sm:$0xff] }
 0x1e6   : > { %v1775_v0 = vadd.f32 %v1743_v33, %v1675_v58  ;;  %v1975_v12 = vadd.f32 %v1943_v20, %v1875_v48  ;;  %v2071_v41 = vadd.f32 %v2039_v23, %v1971_v25  ;;  %v2105_v59 = vmul.f32 %v5521_v11, %v2066_v47  ;;  %v5531_v20 = vld [vmem:[#allocation25_spill] sm:$0xff]  ;;  %v5534_v29 = vld [vmem:[#allocation23_spill] sm:$0xff] }
 0x1e7   : > { %v2042_v19 = vmul.f32 %v3917_v61, %v1707_v32  ;;  %v2072_v54 = vadd.f32 %v2040_v34, %v1972_v51  ;;  %v2106_v5 = vmul.f32 %v5521_v11, %v2067_v43  ;;  %v2107_v53 = vmul.f32 %v5521_v11, %v2068_v1  ;;  %v5537_v43 = vld [vmem:[#allocation27_spill] sm:$0xff] }
 0x1e8   : > { %v1776_v37 = vadd.f32 %v1744_v26, %v1676_v6  ;;  %v1876_v35 = vadd.f32 %v5522_v21, %v1775_v0  ;;  %v2073_v22 = vadd.f32 %v2041_v36, %v1973_v27  ;;  %v2108_v56 = vmul.f32 %v5521_v11, %v2069_v9 }
 0x1e9   : > { %v2074_v38 = vadd.f32 %v2042_v19, %v1974_v4  ;;  %v2109_v13 = vmul.f32 %v5521_v11, %v2070_v55  ;;  %3448 = vpow2.f32 %v5523_v49  ;;  %v5525_v15 = vsub.f32 0.0, %v5524_v46 }
 0x1ea   : > { %v2075_v61 = vadd.f32 %v2043_v3, %v1975_v12  ;;  %v2110_v40 = vmul.f32 %v5521_v11, %v2071_v41  ;;  %v4930_v30 = vadd.f32 %v5526_v39, %v2105_v59  ;;  %v4933_v25 = vadd.f32 %v5526_v39, %v2106_v5  ;;  %v5538_v12 = vld [vmem:[#allocation10_spill] sm:$0xff]  ;;  %v5539_v41 = vld [vmem:[#allocation12_spill] sm:$0xff] }
 0x1eb   : > { %v2224_v50 = vmul.f32 1.442695, %v5525_v15  ;;  %v2111_v51 = vmul.f32 %v5521_v11, %v2072_v54  ;;  %v4937_v27 = vadd.f32 %v5526_v39, %v2107_v53  ;;  %3450 = vpow2.f32 %v5527_v31  ;;  %v5540_v5 = vld [vmem:[#allocation36_spill] sm:$0xff] }
 0x1ec   : > { %v5529_v8 = vsub.f32 0.0, %v5528_v17  ;;  %v1877_v26 = vadd.f32 %v5530_v28, %v1776_v37  ;;  %v1976_v7 = vadd.f32 %v5531_v20, %v1876_v35  ;;  %v2112_v16 = vmul.f32 %v5521_v11, %v2073_v22  ;;  %v5541_v15 = vld [vmem:[#allocation8_spill] sm:$0xff] }
 0x1ed   : > { %v4946_v24 = vadd.f32 %v5526_v39, %v2108_v56  ;;  %v2113_v2 = vmul.f32 %v5521_v11, %v2074_v38  ;;  %v4950_v10 = vadd.f32 %v5526_v39, %v2109_v13  ;;  %v2176_v63 = vsub.f32 0.0, %v4930_v30 }
 0x1ee   : > { %v2226_v14 = vmul.f32 1.442695, %v5529_v8  ;;  %v2177_v32 = vsub.f32 0.0, %v4933_v25  ;;  %v2114_v52 = vmul.f32 %v5521_v11, %v2075_v61  ;;  %v4956_v23 = vadd.f32 %v5526_v39, %v2110_v40 }
 0x1ef   : > { %v2178_v34 = vsub.f32 0.0, %v4937_v27  ;;  %3452 = vpow2.f32 %v5532_v42  ;;  %v4962_v44 = vmul.f32 %v5534_v29, %v5533_v18  ;;  %v2266_v47 = vadd.f32 1.0, %v5535_v45 }
 0x1f0   : > { %v4966_v48 = vadd.f32 %v5526_v39, %v2111_v51  ;;  %3454 = vpow2.f32 %v2224_v50  ;;  %v1977_v60 = vadd.f32 %v5536_v57, %v1877_v26  ;;  %v2076_v1 = vadd.f32 %v5537_v43, %v1976_v7  ;;  %v5542_v50 = vld [vmem:[#allocation24_spill] sm:$0xff]  ;;  %v5543_v7 = vld [vmem:[#allocation22_spill] sm:$0xff] }
 0x1f1   : > { %v4971_v58 = vadd.f32 %v5526_v39, %v2112_v16  ;;  %v2179_v6 = vsub.f32 0.0, %v4946_v24  ;;  %v4975_v33 = vadd.f32 %v5526_v39, %v2113_v2  ;;  %v2180_v9 = vsub.f32 0.0, %v4950_v10  ;;  %v5544_v16 = vld [vmem:[#allocation32_spill] sm:$0xff] }
 0x1f2   : > { %v2228_v4 = vmul.f32 1.442695, %v2176_v63  ;;  %v2230_v62 = vmul.f32 1.442695, %v2177_v32  ;;  %v4979_v36 = vadd.f32 %v5526_v39, %v2114_v52  ;;  %v2181_v3 = vsub.f32 0.0, %v4956_v23 }
 0x1f3   : > { %3456 = vpow2.f32 %v2226_v14  ;;  %v2232_v55 = vmul.f32 1.442695, %v2178_v34  ;;  %v3449_v0 = vpop.eup %3448  ;;  %v2366_v59 = vadd.f32 %v5539_v41, %v5538_v12  ;;  %v2367_v19 = vsel %vm1099_vm2, %v4962_v44, 0.0 }
 0x1f4   : > { %v2182_v54 = vsub.f32 0.0, %v4966_v48  ;;  %3458 = vpow2.f32 %v2228_v4  ;;  %v2077_v53 = vadd.f32 %v5540_v5, %v1977_v60  ;;  %v2183_v37 = vsub.f32 0.0, %v4971_v58 }
 0x1f5   : > { %3460 = vrcp.f32 %v2266_v47  ;;  %v2234_v21 = vmul.f32 1.442695, %v2179_v6  ;;  %v3451_v35 = vpop.eup %3450  ;;  %v2115_v22 = vmul.f32 %v5521_v11, %v2076_v1  ;;  %v2184_v56 = vsub.f32 0.0, %v4975_v33 }
 0x1f6   : > { %3462 = vpow2.f32 %v2230_v62  ;;  %v2236_v38 = vmul.f32 1.442695, %v2180_v9  ;;  %v2185_v13 = vsub.f32 0.0, %v4979_v36  ;;  %v2238_v49 = vmul.f32 1.442695, %v2181_v3  ;;  %v5545_v62 = vld [vmem:[#allocation20_spill] sm:$0xff] }
 0x1f7   : > { %3464 = vpow2.f32 %v2232_v55  ;;  %v4994_v61 = vmul.f32 %v5542_v50, %v5541_v15  ;;  %v2240_v40 = vmul.f32 1.442695, %v2182_v54  ;;  %v2368_v31 = vadd.f32 %v2367_v19, %v2366_v59  ;;  %v5546_v3 = vld [vmem:[#allocation31_spill] sm:$0xff]  ;;  %v5547_v19 = vld [vmem:[#allocation30_spill] sm:$0xff] }
 0x1f8   : > { %3466 = vpow2.f32 %v2234_v21  ;;  %v2242_v8 = vmul.f32 1.442695, %v2183_v37  ;;  %v2116_v28 = vmul.f32 %v5521_v11, %v2077_v53  ;;  %v4998_v26 = vadd.f32 %v5526_v39, %v2115_v22 }
 0x1f9   : > { %v3453_v51 = vpop.eup %3452  ;;  %3468 = vpow2.f32 %v2236_v38  ;;  %v2244_v20 = vmul.f32 1.442695, %v2184_v56  ;;  %v5002_v2 = vmul.f32 %v5544_v16, %v5543_v7  ;;  %v2246_v63 = vmul.f32 1.442695, %v2185_v13 }
 0x1fa   : > { %v3455_v14 = vpop.eup %3454  ;;  %3470 = vpow2.f32 %v2238_v49  ;;  %v2267_v32 = vadd.f32 1.0, %v3449_v0  ;;  %v2369_v52 = vsel %vm1099_vm2, %v4994_v61, 0.0  ;;  %v2268_v42 = vadd.f32 1.0, %v3451_v35 }
 0x1fb   : > { %3472 = vpow2.f32 %v2240_v40  ;;  %v2370_v11 = vadd.f32 %v2369_v52, %v2368_v31  ;;  %v5007_v29 = vadd.f32 %v5526_v39, %v2116_v28  ;;  %v2186_v45 = vsub.f32 0.0, %v4998_v26  ;;  %v5548_v28 = vld [vmem:[#allocation33_spill] sm:$0xff] }
 0x1fc   : > { %3474 = vpow2.f32 %v2242_v8  ;;  %v2269_v47 = vadd.f32 1.0, %v3453_v51  ;;  %v2270_v60 = vadd.f32 1.0, %v3455_v14  ;;  %v2371_v43 = vsel %vm1099_vm2, %v5002_v2, 0.0 }
 0x1fd   : > { %v3457_v34 = vpop.eup %3456  ;;  %3476 = vpow2.f32 %v2244_v20  ;;  %v5014_v39 = vmul.f32 %v5546_v3, %v5545_v62  ;;  %v2187_v55 = vsub.f32 0.0, %v5007_v29  ;;  %v2248_v0 = vmul.f32 1.442695, %v2186_v45 }
 0x1fe   : > { %v3459_v18 = vpop.eup %3458  ;;  %3478 = vpow2.f32 %v2246_v63  ;;  %v2271_v6 = vadd.f32 1.0, %v3457_v34  ;;  %v2372_v12 = vadd.f32 %v2371_v43, %v2370_v11  ;;  %v5549_v63 = vld [vmem:[#allocation34_spill] sm:$0xff]  ;;  %v5550_v34 = vld [vmem:[#allocation35_spill] sm:$0xff] }
 0x1ff   : > { %v3461_v57 = vpop.eup %3460  ;;  %3480 = vrcp.f32 %v2267_v32  ;;  %v2272_v4 = vadd.f32 1.0, %v3459_v18  ;;  %v2373_v21 = vsel %vm1099_vm2, %v5014_v39, 0.0  ;;  %v2250_v22 = vmul.f32 1.442695, %v2187_v55 }
 0x200   : > { %v3463_v1 = vpop.eup %3462  ;;  %3482 = vrcp.f32 %v2268_v42  ;;  %v5018_v54 = vmul.f32 %v3461_v57, %v5547_v19  ;;  %v2374_v56 = vadd.f32 %v2373_v21, %v2372_v12 }
 0x201   : > { %v3465_v9 = vpop.eup %3464  ;;  %3484 = vrcp.f32 %v2269_v47  ;;  %v2273_v59 = vadd.f32 1.0, %v3463_v1 }
 0x202   : > { %v3467_v41 = vpop.eup %3466  ;;  %3486 = vrcp.f32 %v2270_v60  ;;  %v2274_v53 = vadd.f32 1.0, %v3465_v9  ;;  %v2375_v49 = vsel %vm1099_vm2, %v5018_v54, 0.0 }
 0x203   : > { %v3469_v5 = vpop.eup %3468  ;;  %3488 = vrcp.f32 %v2271_v6  ;;  %v2275_v13 = vadd.f32 1.0, %v3467_v41  ;;  %v2376_v31 = vadd.f32 %v2375_v49, %v2374_v56 }
 0x204   : > { %v3471_v37 = vpop.eup %3470  ;;  %3490 = vrcp.f32 %v2272_v4  ;;  %v2276_v50 = vadd.f32 1.0, %v3469_v5 }
 0x205   : > { %v3473_v35 = vpop.eup %3472  ;;  %3492 = vpow2.f32 %v2248_v0  ;;  %v2277_v14 = vadd.f32 1.0, %v3471_v37 }
 0x206   : > { %v3475_v38 = vpop.eup %3474  ;;  %3494 = vrcp.f32 %v2273_v59  ;;  %v2278_v16 = vadd.f32 1.0, %v3473_v35 }
 0x207   : > { %v3477_v15 = vpop.eup %3476  ;;  %3496 = vrcp.f32 %v2274_v53  ;;  %v2279_v43 = vadd.f32 1.0, %v3475_v38 }
 0x208   : > { %v3479_v40 = vpop.eup %3478  ;;  %3498 = vpow2.f32 %v2250_v22  ;;  %v2280_v6 = vadd.f32 1.0, %v3477_v15 }
 0x209   : > { %v3481_v51 = vpop.eup %3480  ;;  %3500 = vrcp.f32 %v2275_v13  ;;  %v2281_v41 = vadd.f32 1.0, %v3479_v40 }
 0x20a   : > { %v3483_v8 = vpop.eup %3482  ;;  %v5025_v20 = vmul.f32 %v3481_v51, %v5548_v28  ;;  %3502 = vrcp.f32 %v2276_v50 }
 0x20b   : > { %v3485_v7 = vpop.eup %3484  ;;  %v5028_v32 = vmul.f32 %v3483_v8, %v5549_v63  ;;  %3504 = vrcp.f32 %v2277_v14 }
 0x20c   : > { %v3487_v52 = vpop.eup %3486  ;;  %v5031_v42 = vmul.f32 %v3485_v7, %v5550_v34  ;;  %v2377_v11 = vsel %vm1099_vm2, %v5025_v20, 0.0  ;;  %3506 = vrcp.f32 %v2278_v16 }
 0x20d   : > { %v3489_v18 = vpop.eup %3488  ;;  %v5036_v45 = vmul.f32 %v3487_v52, %v5524_v46  ;;  %v2378_v47 = vadd.f32 %v2377_v11, %v2376_v31  ;;  %v2379_v57 = vsel %vm1099_vm2, %v5028_v32, 0.0  ;;  %3508 = vrcp.f32 %v2279_v43 }
 0x20e   : > { %v3491_v60 = vpop.eup %3490  ;;  %v5041_v62 = vmul.f32 %v3489_v18, %v5528_v17  ;;  %v2381_v46 = vsel %vm1099_vm2, %v5031_v42, 0.0  ;;  %3510 = vrcp.f32 %v2280_v6 }
 0x20f   : > { %v3493_v1 = vpop.eup %3492  ;;  %v2380_v9 = vadd.f32 %v2379_v57, %v2378_v47  ;;  %v5044_v3 = vmul.f32 %v3491_v60, %v4930_v30  ;;  %v2383_v55 = vsel %vm1099_vm2, %v5036_v45, 0.0  ;;  %3512 = vrcp.f32 %v2281_v41 }
 0x210   : > { %v3495_v4 = vpop.eup %3494  ;;  %v2282_v19 = vadd.f32 1.0, %v3493_v1  ;;  %v2385_v37 = vsel %vm1099_vm2, %v5041_v62, 0.0 }
 0x211   : > { %v3497_v0 = vpop.eup %3496  ;;  %v2382_v12 = vadd.f32 %v2381_v46, %v2380_v9  ;;  %v5051_v17 = vmul.f32 %v3495_v4, %v4933_v25  ;;  %v2387_v21 = vsel %vm1099_vm2, %v5044_v3, 0.0 }
 0x212   : > { %v3499_v59 = vpop.eup %3498  ;;  %v5054_v30 = vmul.f32 %v3497_v0, %v4937_v27  ;;  %3514 = vrcp.f32 %v2282_v19 }
 0x213   : > { %v2384_v5 = vadd.f32 %v2383_v55, %v2382_v12  ;;  %v3501_v53 = vpop.eup %3500  ;;  %v2283_v56 = vadd.f32 1.0, %v3499_v59  ;;  %v2389_v27 = vsel %vm1099_vm2, %v5051_v17, 0.0 }
 0x214   : > { %v3503_v35 = vpop.eup %3502  ;;  %v5061_v49 = vmul.f32 %v3501_v53, %v4946_v24  ;;  %v2391_v15 = vsel %vm1099_vm2, %v5054_v30, 0.0 }
 0x215   : > { %v2386_v22 = vadd.f32 %v2385_v37, %v2384_v5  ;;  %v3505_v13 = vpop.eup %3504  ;;  %v5064_v25 = vmul.f32 %v3503_v35, %v4950_v10  ;;  %3516 = vrcp.f32 %v2283_v56  ;;  %v2423_v56 = vld [vmem:[#allocation3] sm:$0x1] }
 0x216   : > { %v3507_v50 = vpop.eup %3506  ;;  %v5071_v8 = vmul.f32 %v3505_v13, %v4956_v23  ;;  %v2393_v10 = vsel %vm1099_vm2, %v5061_v49, 0.0 }
 0x217   : > { %v2388_v38 = vadd.f32 %v2387_v21, %v2386_v22  ;;  %v3509_v31 = vpop.eup %3508  ;;  %v5074_v24 = vmul.f32 %v3507_v50, %v4966_v48  ;;  %v2395_v14 = vsel %vm1099_vm2, %v5064_v25, 0.0  ;;  %v3571_v22 = vmov 0  }
 0x218   : > { %v3511_v28 = vpop.eup %3510  ;;  %v5081_v52 = vmul.f32 %v3509_v31, %v4971_v58  ;;  %v2397_v23 = vsel %vm1099_vm2, %v5071_v8, 0.0  ;;  %3261 = vset.pattern.permute.xlu0 %v3571_v22 }
 0x219   : > { %v2390_v40 = vadd.f32 %v2389_v27, %v2388_v38  ;;  %v3513_v63 = vpop.eup %3512  ;;  %v5084_v34 = vmul.f32 %v3511_v28, %v4975_v33  ;;  %v2399_v48 = vsel %vm1099_vm2, %v5074_v24, 0.0  ;;  %v2439_v28 = vld [vmem:[%s5411_s10] sm:$0x1] }
 0x21a   : > { %v5091_v57 = vmul.f32 %v3513_v63, %v4979_v36  ;;  %v2401_v58 = vsel %vm1099_vm2, %v5081_v52, 0.0 }
 0x21b   : > { %v2392_v51 = vadd.f32 %v2391_v15, %v2390_v40  ;;  %v2403_v33 = vsel %vm1099_vm2, %v5084_v34, 0.0 }
 0x21c   : > { %v3515_v11 = vpop.eup %3514  ;;  %v2405_v4 = vsel %vm1099_vm2, %v5091_v57, 0.0 }
 0x21d   : > { %v2394_v7 = vadd.f32 %v2393_v10, %v2392_v51  ;;  %v5094_v60 = vmul.f32 %v3515_v11, %v4998_v26  ;;  %v2482_v10 = vld [vmem:[%s5412_s11] sm:$0xff] }
 0x21e   : > { %3201 = vmatprep.subr.mxu1 %v2482_v10 }
 0x21f   : > { %v2396_v16 = vadd.f32 %v2395_v14, %v2394_v7  ;;  %v3517_v43 = vpop.eup %3516  ;;  %v2407_v36 = vsel %vm1099_vm2, %v5094_v60, 0.0  ;;  %3202 = vmatpush3.msra.mxu1 %v2482_v10  ;;  %v2431_v14 = vld [vmem:[%s5410_s9] sm:$0x1]  ;;  %v3530_v10 = vld [vmem:[%s3669_s21 + $0x8] sm:$0xff] }
 0x220   : > { %v5101_v9 = vmul.f32 %v3517_v43, %v5007_v29  ;;  %v2418_v29 = vld [vmem:[%s5408_s7] sm:$0x1] }
 0x221   : > { %v2398_v18 = vadd.f32 %v2397_v23, %v2396_v16  ;;  %v5552_v43 = vld [vmem:[#allocation5_spill] sm:$0xff] }
 0x222   : > { %v2409_v55 = vsel %vm1099_vm2, %v5101_v9, 0.0 }
 0x223   : > { %v2400_v47 = vadd.f32 %v2399_v48, %v2398_v18 }
 0x225   : > { %v2402_v1 = vadd.f32 %v2401_v58, %v2400_v47  ;;  %v5551_v58 = vld [vmem:[#allocation4_spill] sm:$0xff] }
 0x227   : > { %v2404_v6 = vadd.f32 %v2403_v33, %v2402_v1 }
 0x229   : > { %v2406_v26 = vadd.f32 %v2405_v4, %v2404_v6  ;;  %v5553_v6 = vld [vmem:[#allocation11_spill] sm:$0xff] }
 0x22b   : > { %v2408_v46 = vadd.f32 %v2407_v36, %v2406_v26  ;;  %v5554_v36 = vld [vmem:[#allocation13_spill] sm:$0xff] }
 0x22d   : > { %v2410_v0 = vadd.f32 %v2409_v55, %v2408_v46  ;;  %v5555_v46 = vld [vmem:[#allocation17_spill] sm:$0xff] }
 0x22f   : > { %v2411_v12 = vrot.slane %v2410_v0, 4 }
 0x231   : > { %v2412_v41 = vadd.f32 %v2411_v12, %v2410_v0  ;;  %v5556_v0 = vld [vmem:[#allocation6_spill] sm:$0xff] }
 0x233   : > { %v2413_v59 = vrot.slane %v2412_v41, 2 }
 0x235   : > { %v2414_v19 = vadd.f32 %v2413_v59, %v2412_v41  ;;  %v5557_v41 = vld [vmem:[#allocation18_spill] sm:$0xff] }
 0x237   : > { %v2415_v5 = vrot.slane %v2414_v19, 1 }
 0x239   : > { %v2416_v53 = vadd.f32 %v2415_v5, %v2414_v19  ;;  %v5558_v19 = vld [vmem:[#allocation19_spill] sm:$0xff] }
 0x23b   : > { %v2417_v37 = vmul.f32 0.00390625, %v2416_v53  ;;  %v5559_v53 = vld [vmem:[#allocation21_spill] sm:$0xff] }
 0x23d   : > { %v2419_v21 = vmul.f32 %v2418_v29, %v2417_v37  ;;  %v5560_v37 = vld [vmem:[#allocation16_spill] sm:$0xff] }
 0x23f   : > { %v2420_v35 = vsel %vm1109_vm4, %v2419_v21, 0.0 }
 0x240   : > { %2421 = vadd.xlane.f32.xlu0 %v2420_v35  ;;  %v5561_v35 = vld [vmem:[#allocation9_spill] sm:$0xff] }
 0x2cd   : > { %v2422_v38 = vpop.xlane.xlu0 %2421 }
 0x2ce   : > { %v2424_v13 = vadd.f32 %v2423_v56, %v2422_v38 }
 0x2d0   : > { %v2425_v27 = vsub.f32 0.0, %v2424_v13 }
 0x2d2   : > { %v2426_v15 = vmul.f32 1.442695, %v2425_v27 }
 0x2d4   : > { %3518 = vpow2.f32 %v2426_v15 }
 0x2de   : > { %v3519_v50 = vpop.eup %3518 }
 0x2df   : > { %v2428_v40 = vadd.f32 1.0, %v3519_v50 }
 0x2e1   : > { %3520 = vrcp.f32 %v2428_v40 }
 0x2eb   : > { %v3521_v51 = vpop.eup %3520 }
 0x2ec   : > { %v2430_v31 = vmul.f32 %v3521_v51, %v2424_v13 }
 0x2ee   : > { %2434 = vperm.xlu0 %3261, %v2430_v31  }
 0x36d   : > { %v2435_v7 = vpop.permute.xlu0 %2434 }
 0x36e   : > { %v2437_v16 = vmul.f32 %v2435_v7, %v2431_v14 }
 0x370   : > { %v2440_v63 = vadd.f32 %v2439_v28, %v2437_v16  ;;  %v3531_v16 = vld [vmem:[%s3669_s21] sm:$0xff] }
 0x372   : > { %v2441_v23 = vsub.f32 0.0, %v2440_v63 }
 0x374   : > { %v2442_v48 = vmul.f32 1.442695, %v2441_v23 }
 0x376   : > { %3522 = vpow2.f32 %v2442_v48 }
 0x380   : > { %v3523_v11 = vpop.eup %3522 }
 0x381   : > { %v2444_v18 = vadd.f32 1.0, %v3523_v11 }
 0x383   : > { %3524 = vrcp.f32 %v2444_v18 }
 0x38d   : > { %v3525_v47 = vpop.eup %3524 }
 0x38e   : > { %v5123_v33 = vrot.slane %v3525_v47, %v5551_v58  ;;  %v3532_v47 = vld [vmem:[%s3669_s21 + $0x18] sm:$0xff] }
 0x390   : > { %v2450_v1 = vmul.f32 %v5123_v33, %v5552_v43  ;;  %v2451_v4 = vmul.f32 %v5123_v33, %v5553_v6  ;;  %v2452_v26 = vmul.f32 %v5123_v33, %v5554_v36  ;;  %v2453_v55 = vmul.f32 %v5123_v33, %v5555_v46 }
 0x391   : > { %v2454_v12 = vmul.f32 %v5123_v33, %v5556_v0  ;;  %v2455_v59 = vmul.f32 %v5123_v33, %v5557_v41  ;;  %v2456_v5 = vmul.f32 %v5123_v33, %v5558_v19  ;;  %v2457_v29 = vmul.f32 %v5123_v33, %v5559_v53 }
 0x392   : > { %3203 = vmatprep.mubr.msk.f32.mxu1 %vm1099_vm2, %v2450_v1  ;;  %v2458_v21 = vmul.f32 %v5123_v33, %v5560_v37  ;;  %v2459_v22 = vmul.f32 %v5123_v33, %v5561_v35  ;;  %v2460_v56 = vmul.f32 %v5123_v33, %v4962_v44  ;;  %v2461_v38 = vmul.f32 %v5123_v33, %v4994_v61  ;;  %v3533_v1 = vld [vmem:[%s3669_s21 + $0x10] sm:$0xff] }
 0x393   : > { %3204 = vmatmul.mubr.msk.f32.vlgmr.msra.gmra.mrb[0].mxu1 %vm1099_vm2, %v2451_v4  ;;  %v2462_v13 = vmul.f32 %v5123_v33, %v5002_v2  ;;  %v2463_v27 = vmul.f32 %v5123_v33, %v5014_v39  ;;  %v2464_v44 = vmul.f32 %v5123_v33, %v5018_v54  ;;  %v2465_v61 = vmul.f32 %v5123_v33, %v5025_v20 }
 0x394   : > { %3206 = vmatprep.mubr.msk.f32.mxu1 %vm1099_vm2, %v2452_v26  ;;  %v2466_v2 = vmul.f32 %v5123_v33, %v5028_v32  ;;  %v2467_v39 = vmul.f32 %v5123_v33, %v5031_v42  ;;  %v2468_v54 = vmul.f32 %v5123_v33, %v5036_v45  ;;  %v2469_v20 = vmul.f32 %v5123_v33, %v5041_v62 }
 0x395   : > { %v2470_v32 = vmul.f32 %v5123_v33, %v5044_v3  ;;  %v2471_v42 = vmul.f32 %v5123_v33, %v5051_v17  ;;  %v2472_v45 = vmul.f32 %v5123_v33, %v5054_v30  ;;  %v2473_v62 = vmul.f32 %v5123_v33, %v5061_v49 }
 0x396   : > { %v2474_v3 = vmul.f32 %v5123_v33, %v5064_v25  ;;  %v2475_v17 = vmul.f32 %v5123_v33, %v5071_v8  ;;  %v2476_v30 = vmul.f32 %v5123_v33, %v5074_v24  ;;  %v2477_v49 = vmul.f32 %v5123_v33, %v5081_v52 }
 0x397   : > { %3207 = vmatmul.mubr.msk.f32.gmra.mrb[2].mxu1 %vm1099_vm2, %v2453_v55  ;;  %v2478_v25 = vmul.f32 %v5123_v33, %v5084_v34  ;;  %v2479_v8 = vmul.f32 %v5123_v33, %v5091_v57  ;;  %v2480_v24 = vmul.f32 %v5123_v33, %v5094_v60  ;;  %v2481_v52 = vmul.f32 %v5123_v33, %v5101_v9  ;;  %v5224_v34 = vld [vmem:[%s5413_s12] ss:$0 sm:$0xff]  ;;  %v3534_v55 = vld [vmem:[%s3669_s21 + $0x28] sm:$0xff] }
 0x398   : > { %3209 = vmatprep.mubr.msk.f32.mxu1 %vm1099_vm2, %v2454_v12  ;;  %v5229_v60 = vld [vmem:[%s5414_s13] ss:$0 sm:$0xff] }
 0x39b   : > { %3210 = vmatmul.mubr.msk.f32.gmra.mrb[4].mxu1 %vm1099_vm2, %v2455_v59  ;;  %v3535_v59 = vld [vmem:[%s3669_s21 + $0x20] sm:$0xff] }
 0x39c   : > { %3212 = vmatprep.mubr.msk.f32.mxu1 %vm1099_vm2, %v2456_v5 }
 0x39f   : > { %3213 = vmatmul.mubr.msk.f32.gmra.mrb[6].mxu1 %vm1099_vm2, %v2457_v29 }
 0x3a0   : > { %3215 = vmatprep.mubr.msk.f32.mxu1 %vm1099_vm2, %v2458_v21  ;;  %v3536_v21 = vld [vmem:[%s3669_s21 + $0x38] sm:$0xff] }
 0x3a3   : > { %3216 = vmatmul.mubr.msk.f32.gmra.mrb[8].mxu1 %vm1099_vm2, %v2459_v22 }
 0x3a4   : > { %3218 = vmatprep.mubr.msk.f32.mxu1 %vm1099_vm2, %v2460_v56 }
 0x3a7   : > { %3219 = vmatmul.mubr.msk.f32.gmra.mrb[10].mxu1 %vm1099_vm2, %v2461_v38  ;;  %v3537_v38 = vld [vmem:[%s3669_s21 + $0x30] sm:$0xff] }
 0x3a8   : > { %3221 = vmatprep.mubr.msk.f32.mxu1 %vm1099_vm2, %v2462_v13 }
 0x3ab   : > { %3222 = vmatmul.mubr.msk.f32.gmra.mrb[12].mxu1 %vm1099_vm2, %v2463_v27 }
 0x3ac   : > { %3224 = vmatprep.mubr.msk.f32.mxu1 %vm1099_vm2, %v2464_v44 }
 0x3af   : > { %3225 = vmatmul.mubr.msk.f32.gmra.mrb[14].mxu1 %vm1099_vm2, %v2465_v61 }
 0x3b0   : > { %3227 = vmatprep.mubr.msk.f32.mxu1 %vm1099_vm2, %v2466_v2 }
 0x3b3   : > { %3228 = vmatmul.mubr.msk.f32.gmra.mrb[16].mxu1 %vm1099_vm2, %v2467_v39  ;;  %v3538_v39 = vld [vmem:[%s3669_s21 + $0x48] sm:$0xff] }
 0x3b4   : > { %3230 = vmatprep.mubr.msk.f32.mxu1 %vm1099_vm2, %v2468_v54 }
 0x3b7   : > { %3231 = vmatmul.mubr.msk.f32.gmra.mrb[18].mxu1 %vm1099_vm2, %v2469_v20 }
 0x3b8   : > { %3233 = vmatprep.mubr.msk.f32.mxu1 %vm1099_vm2, %v2470_v32 }
 0x3bb   : > { %3234 = vmatmul.mubr.msk.f32.gmra.mrb[20].mxu1 %vm1099_vm2, %v2471_v42  ;;  %v3539_v42 = vld [vmem:[%s3669_s21 + $0x40] sm:$0xff] }
 0x3bc   : > { %3236 = vmatprep.mubr.msk.f32.mxu1 %vm1099_vm2, %v2472_v45 }
 0x3bf   : > { %3237 = vmatmul.mubr.msk.f32.gmra.mrb[22].mxu1 %vm1099_vm2, %v2473_v62 }
 0x3c0   : > { %3239 = vmatprep.mubr.msk.f32.mxu1 %vm1099_vm2, %v2474_v3 }
 0x3c3   : > { %3240 = vmatmul.mubr.msk.f32.gmra.mrb[24].mxu1 %vm1099_vm2, %v2475_v17 }
 0x3c4   : > { %3242 = vmatprep.mubr.msk.f32.mxu1 %vm1099_vm2, %v2476_v30 }
 0x3c7   : > { %3243 = vmatmul.mubr.msk.f32.gmra.mrb[26].mxu1 %vm1099_vm2, %v2477_v49  ;;  %v3540_v49 = vld [vmem:[%s3669_s21 + $0x58] sm:$0xff] }
 0x3c8   : > { %3245 = vmatprep.mubr.msk.f32.mxu1 %vm1099_vm2, %v2478_v25 }
 0x3cb   : > { %3246 = vmatmul.mubr.msk.f32.gmra.mrb[28].mxu1 %vm1099_vm2, %v2479_v8 }
 0x3cc   : > { %3248 = vmatprep.mubr.msk.f32.mxu1 %vm1099_vm2, %v2480_v24 }
 0x3cf   : > { %3249 = vmatmul.mubr.msk.f32.gmra.mrb[30].mxu1 %vm1099_vm2, %v2481_v52  ;;  %v3541_v52 = vld [vmem:[%s3669_s21 + $0x50] sm:$0xff] }
 0x466   : > { %v3205_v57 = vpop.f32.mrb[0].mxu1 }
 0x467   : > { %v2812_v15 = vmul.f32 %v3205_v57, %v5224_v34  ;;  %v2645_v50 = vpop.f32.mrb[1].mxu1 }
 0x468   : > { %v2811_v40 = vmul.f32 %v5224_v34, %v2645_v50 }
 0x469   : > { %v2851_v9 = vadd.f32 %v5229_v60, %v2812_v15 }
 0x46a   : > { %v2850_v51 = vadd.f32 %v5229_v60, %v2811_v40  ;;  %v3208_v31 = vpop.f32.mrb[2].mxu1 }
 0x46b   : > { %v2883_v14 = vadd.f32 %v3530_v10, %v2851_v9  ;;  %v2814_v28 = vmul.f32 %v3208_v31, %v5224_v34  ;;  %v2655_v7 = vpop.f32.mrb[3].mxu1 }
 0x46c   : > { %v2882_v63 = vadd.f32 %v3531_v16, %v2850_v51  ;;  %v2813_v23 = vmul.f32 %v5224_v34, %v2655_v7  ;;  %v3542_v51 = vld [vmem:[%s3669_s21 + $0x68] sm:$0xff] }
 0x46d   : > { %2915 = vst.msk [vmem:[%s5239_s18 + $0x8] sm:$0xff] %vm503_vm1, %v2883_v14  ;;  %v2853_v48 = vadd.f32 %v5229_v60, %v2814_v28  ;;  %v3543_v28 = vld [vmem:[%s3669_s21 + $0x60] sm:$0xff] }
 0x46e   : > { %2914 = vst.msk [vmem:[%s5239_s18] sm:$0xff] %vm503_vm1, %v2882_v63  ;;  %v2852_v11 = vadd.f32 %v5229_v60, %v2813_v23  ;;  %v3211_v18 = vpop.f32.mrb[4].mxu1 }
 0x46f   : > { %v2885_v58 = vadd.f32 %v3532_v47, %v2853_v48  ;;  %v2816_v33 = vmul.f32 %v3211_v18, %v5224_v34  ;;  %v2665_v43 = vpop.f32.mrb[5].mxu1 }
 0x470   : > { %v2884_v6 = vadd.f32 %v3533_v1, %v2852_v11  ;;  %v2815_v4 = vmul.f32 %v5224_v34, %v2665_v43  ;;  %v3544_v11 = vld [vmem:[%s3669_s21 + $0x78] sm:$0xff] }
 0x471   : > { %2917 = vst.msk [vmem:[%s5239_s18 + $0x18] sm:$0xff] %vm503_vm1, %v2885_v58  ;;  %v2855_v36 = vadd.f32 %v5229_v60, %v2816_v33  ;;  %v3545_v33 = vld [vmem:[%s3669_s21 + $0x70] sm:$0xff] }
 0x472   : > { %2916 = vst.msk [vmem:[%s5239_s18 + $0x10] sm:$0xff] %vm503_vm1, %v2884_v6  ;;  %v2854_v26 = vadd.f32 %v5229_v60, %v2815_v4  ;;  %v3214_v46 = vpop.f32.mrb[6].mxu1 }
 0x473   : > { %v2887_v0 = vadd.f32 %v3534_v55, %v2855_v36  ;;  %v2818_v12 = vmul.f32 %v3214_v46, %v5224_v34  ;;  %v2675_v41 = vpop.f32.mrb[7].mxu1 }
 0x474   : > { %v2886_v19 = vadd.f32 %v3535_v59, %v2854_v26  ;;  %v2817_v5 = vmul.f32 %v5224_v34, %v2675_v41  ;;  %v3546_v26 = vld [vmem:[%s3669_s21 + $0x88] sm:$0xff] }
 0x475   : > { %2919 = vst.msk [vmem:[%s5239_s18 + $0x28] sm:$0xff] %vm503_vm1, %v2887_v0  ;;  %v2857_v53 = vadd.f32 %v5229_v60, %v2818_v12  ;;  %v3547_v12 = vld [vmem:[%s3669_s21 + $0x80] sm:$0xff] }
 0x476   : > { %2918 = vst.msk [vmem:[%s5239_s18 + $0x20] sm:$0xff] %vm503_vm1, %v2886_v19  ;;  %v2856_v29 = vadd.f32 %v5229_v60, %v2817_v5  ;;  %v3217_v37 = vpop.f32.mrb[8].mxu1 }
 0x477   : > { %v2889_v35 = vadd.f32 %v3536_v21, %v2857_v53  ;;  %v2820_v22 = vmul.f32 %v3217_v37, %v5224_v34  ;;  %v2685_v56 = vpop.f32.mrb[9].mxu1 }
 0x478   : > { %v2888_v13 = vadd.f32 %v3537_v38, %v2856_v29  ;;  %v2819_v27 = vmul.f32 %v5224_v34, %v2685_v56  ;;  %v3548_v29 = vld [vmem:[%s3669_s21 + $0x98] sm:$0xff] }
 0x479   : > { %2921 = vst.msk [vmem:[%s5239_s18 + $0x38] sm:$0xff] %vm503_vm1, %v2889_v35  ;;  %v2859_v44 = vadd.f32 %v5229_v60, %v2820_v22  ;;  %v3549_v22 = vld [vmem:[%s3669_s21 + $0x90] sm:$0xff] }
 0x47a   : > { %2920 = vst.msk [vmem:[%s5239_s18 + $0x30] sm:$0xff] %vm503_vm1, %v2888_v13  ;;  %v2858_v61 = vadd.f32 %v5229_v60, %v2819_v27  ;;  %v3220_v2 = vpop.f32.mrb[10].mxu1 }
 0x47b   : > { %v2891_v54 = vadd.f32 %v3538_v39, %v2859_v44  ;;  %v2822_v20 = vmul.f32 %v3220_v2, %v5224_v34  ;;  %v2695_v32 = vpop.f32.mrb[11].mxu1 }
 0x47c   : > { %v2890_v45 = vadd.f32 %v3539_v42, %v2858_v61  ;;  %v2821_v62 = vmul.f32 %v5224_v34, %v2695_v32  ;;  %v3550_v61 = vld [vmem:[%s3669_s21 + $0xa8] sm:$0xff] }
 0x47d   : > { %2923 = vst.msk [vmem:[%s5239_s18 + $0x48] sm:$0xff] %vm503_vm1, %v2891_v54  ;;  %v2861_v3 = vadd.f32 %v5229_v60, %v2822_v20  ;;  %v3551_v20 = vld [vmem:[%s3669_s21 + $0xa0] sm:$0xff] }
 0x47e   : > { %2922 = vst.msk [vmem:[%s5239_s18 + $0x40] sm:$0xff] %vm503_vm1, %v2890_v45  ;;  %v2860_v17 = vadd.f32 %v5229_v60, %v2821_v62  ;;  %v3223_v30 = vpop.f32.mrb[12].mxu1 }
 0x47f   : > { %v2893_v25 = vadd.f32 %v3540_v49, %v2861_v3  ;;  %v2824_v8 = vmul.f32 %v3223_v30, %v5224_v34  ;;  %v2705_v24 = vpop.f32.mrb[13].mxu1 }
 0x480   : > { %v2892_v57 = vadd.f32 %v3541_v52, %v2860_v17  ;;  %v2823_v15 = vmul.f32 %v5224_v34, %v2705_v24  ;;  %v3552_v17 = vld [vmem:[%s3669_s21 + $0xb8] sm:$0xff] }
 0x481   : > { %2925 = vst.msk [vmem:[%s5239_s18 + $0x58] sm:$0xff] %vm503_vm1, %v2893_v25  ;;  %v2863_v50 = vadd.f32 %v5229_v60, %v2824_v8  ;;  %v3553_v8 = vld [vmem:[%s3669_s21 + $0xb0] sm:$0xff] }
 0x482   : > { %2924 = vst.msk [vmem:[%s5239_s18 + $0x50] sm:$0xff] %vm503_vm1, %v2892_v57  ;;  %v2862_v40 = vadd.f32 %v5229_v60, %v2823_v15  ;;  %v3226_v9 = vpop.f32.mrb[14].mxu1 }
 0x483   : > { %v2895_v31 = vadd.f32 %v3542_v51, %v2863_v50  ;;  %v2826_v10 = vmul.f32 %v3226_v9, %v5224_v34  ;;  %v2715_v14 = vpop.f32.mrb[15].mxu1 }
 0x484   : > { %v2894_v7 = vadd.f32 %v3543_v28, %v2862_v40  ;;  %v2825_v16 = vmul.f32 %v5224_v34, %v2715_v14  ;;  %v3554_v40 = vld [vmem:[%s3669_s21 + $0xc8] sm:$0xff] }
 0x485   : > { %2927 = vst.msk [vmem:[%s5239_s18 + $0x68] sm:$0xff] %vm503_vm1, %v2895_v31  ;;  %v2865_v63 = vadd.f32 %v5229_v60, %v2826_v10  ;;  %v3555_v10 = vld [vmem:[%s3669_s21 + $0xc0] sm:$0xff] }
 0x486   : > { %2926 = vst.msk [vmem:[%s5239_s18 + $0x60] sm:$0xff] %vm503_vm1, %v2894_v7  ;;  %v2864_v23 = vadd.f32 %v5229_v60, %v2825_v16  ;;  %v3229_v48 = vpop.f32.mrb[16].mxu1 }
 0x487   : > { %v2897_v18 = vadd.f32 %v3544_v11, %v2865_v63  ;;  %v2828_v47 = vmul.f32 %v3229_v48, %v5224_v34  ;;  %v2725_v58 = vpop.f32.mrb[17].mxu1 }
 0x488   : > { %v2896_v43 = vadd.f32 %v3545_v33, %v2864_v23  ;;  %v2827_v1 = vmul.f32 %v5224_v34, %v2725_v58  ;;  %v3556_v23 = vld [vmem:[%s3669_s21 + $0xd8] sm:$0xff] }
 0x489   : > { %2929 = vst.msk [vmem:[%s5239_s18 + $0x78] sm:$0xff] %vm503_vm1, %v2897_v18  ;;  %v2867_v6 = vadd.f32 %v5229_v60, %v2828_v47  ;;  %v3557_v47 = vld [vmem:[%s3669_s21 + $0xd0] sm:$0xff] }
 0x48a   : > { %2928 = vst.msk [vmem:[%s5239_s18 + $0x70] sm:$0xff] %vm503_vm1, %v2896_v43  ;;  %v2866_v4 = vadd.f32 %v5229_v60, %v2827_v1  ;;  %v3232_v36 = vpop.f32.mrb[18].mxu1 }
 0x48b   : > { %v2899_v46 = vadd.f32 %v3546_v26, %v2867_v6  ;;  %v2830_v55 = vmul.f32 %v3232_v36, %v5224_v34  ;;  %v2735_v0 = vpop.f32.mrb[19].mxu1 }
 0x48c   : > { %v2898_v41 = vadd.f32 %v3547_v12, %v2866_v4  ;;  %v2829_v59 = vmul.f32 %v5224_v34, %v2735_v0  ;;  %v3558_v4 = vld [vmem:[%s3669_s21 + $0xe8] sm:$0xff] }
 0x48d   : > { %2931 = vst.msk [vmem:[%s5239_s18 + $0x88] sm:$0xff] %vm503_vm1, %v2899_v46  ;;  %v2869_v19 = vadd.f32 %v5229_v60, %v2830_v55  ;;  %v3559_v55 = vld [vmem:[%s3669_s21 + $0xe0] sm:$0xff] }
 0x48e   : > { %2930 = vst.msk [vmem:[%s5239_s18 + $0x80] sm:$0xff] %vm503_vm1, %v2898_v41  ;;  %v2868_v5 = vadd.f32 %v5229_v60, %v2829_v59  ;;  %v3235_v53 = vpop.f32.mrb[20].mxu1 }
 0x48f   : > { %v2901_v37 = vadd.f32 %v3548_v29, %v2869_v19  ;;  %v2832_v21 = vmul.f32 %v3235_v53, %v5224_v34  ;;  %v2745_v35 = vpop.f32.mrb[21].mxu1  ;;  %v3560_v19 = vld [vmem:[%s3669_s21 + $0xf8] sm:$0xff]  ;;  %v3561_v53 = vld [vmem:[%s3669_s21 + $0xf0] sm:$0xff] }
 0x490   : > { %v2900_v56 = vadd.f32 %v3549_v22, %v2868_v5  ;;  %v2831_v38 = vmul.f32 %v5224_v34, %v2745_v35 }
 0x491   : > { %2933 = vst.msk [vmem:[%s5239_s18 + $0x98] sm:$0xff] %vm503_vm1, %v2901_v37  ;;  %v2871_v13 = vadd.f32 %v5229_v60, %v2832_v21 }
 0x492   : > { %2932 = vst.msk [vmem:[%s5239_s18 + $0x90] sm:$0xff] %vm503_vm1, %v2900_v56  ;;  %v2870_v27 = vadd.f32 %v5229_v60, %v2831_v38  ;;  %v3238_v44 = vpop.f32.mrb[22].mxu1 }
 0x493   : > { %v2903_v2 = vadd.f32 %v3550_v61, %v2871_v13  ;;  %v2834_v39 = vmul.f32 %v3238_v44, %v5224_v34  ;;  %v2755_v54 = vpop.f32.mrb[23].mxu1 }
 0x494   : > { %v2902_v32 = vadd.f32 %v3551_v20, %v2870_v27  ;;  %v2833_v42 = vmul.f32 %v5224_v34, %v2755_v54 }
 0x495   : > { %2935 = vst.msk [vmem:[%s5239_s18 + $0xa8] sm:$0xff] %vm503_vm1, %v2903_v2  ;;  %v2873_v45 = vadd.f32 %v5229_v60, %v2834_v39 }
 0x496   : > { %2934 = vst.msk [vmem:[%s5239_s18 + $0xa0] sm:$0xff] %vm503_vm1, %v2902_v32  ;;  %v2872_v62 = vadd.f32 %v5229_v60, %v2833_v42  ;;  %v3241_v3 = vpop.f32.mrb[24].mxu1 }
 0x497   : > { %v2905_v30 = vadd.f32 %v3552_v17, %v2873_v45  ;;  %v2836_v49 = vmul.f32 %v3241_v3, %v5224_v34  ;;  %v2765_v25 = vpop.f32.mrb[25].mxu1 }
 0x498   : > { %v2904_v24 = vadd.f32 %v3553_v8, %v2872_v62  ;;  %v2835_v52 = vmul.f32 %v5224_v34, %v2765_v25 }
 0x499   : > { %2937 = vst.msk [vmem:[%s5239_s18 + $0xb8] sm:$0xff] %vm503_vm1, %v2905_v30  ;;  %v2875_v57 = vadd.f32 %v5229_v60, %v2836_v49 }
 0x49a   : > { %2936 = vst.msk [vmem:[%s5239_s18 + $0xb0] sm:$0xff] %vm503_vm1, %v2904_v24  ;;  %v2874_v15 = vadd.f32 %v5229_v60, %v2835_v52  ;;  %v3244_v50 = vpop.f32.mrb[26].mxu1 }
 0x49b   : > { %v2907_v9 = vadd.f32 %v3554_v40, %v2875_v57  ;;  %v2838_v51 = vmul.f32 %v3244_v50, %v5224_v34  ;;  %v2775_v31 = vpop.f32.mrb[27].mxu1 }
 0x49c   : > { %v2906_v14 = vadd.f32 %v3555_v10, %v2874_v15  ;;  %v2837_v28 = vmul.f32 %v5224_v34, %v2775_v31 }
 0x49d   : > { %2939 = vst.msk [vmem:[%s5239_s18 + $0xc8] sm:$0xff] %vm503_vm1, %v2907_v9  ;;  %v2877_v7 = vadd.f32 %v5229_v60, %v2838_v51 }
 0x49e   : > { %2938 = vst.msk [vmem:[%s5239_s18 + $0xc0] sm:$0xff] %vm503_vm1, %v2906_v14  ;;  %v2876_v16 = vadd.f32 %v5229_v60, %v2837_v28  ;;  %v3247_v63 = vpop.f32.mrb[28].mxu1 }
 0x49f   : > { %v2909_v48 = vadd.f32 %v3556_v23, %v2877_v7  ;;  %v2840_v11 = vmul.f32 %v3247_v63, %v5224_v34  ;;  %v2785_v18 = vpop.f32.mrb[29].mxu1 }
 0x4a0   : > { %v2908_v58 = vadd.f32 %v3557_v47, %v2876_v16  ;;  %v2839_v33 = vmul.f32 %v5224_v34, %v2785_v18 }
 0x4a1   : > { %2941 = vst.msk [vmem:[%s5239_s18 + $0xd8] sm:$0xff] %vm503_vm1, %v2909_v48  ;;  %v2879_v43 = vadd.f32 %v5229_v60, %v2840_v11 }
 0x4a2   : > { %2940 = vst.msk [vmem:[%s5239_s18 + $0xd0] sm:$0xff] %vm503_vm1, %v2908_v58  ;;  %v2878_v1 = vadd.f32 %v5229_v60, %v2839_v33  ;;  %v3250_v6 = vpop.f32.mrb[30].mxu1 }
 0x4a3   : > { %v2911_v36 = vadd.f32 %v3558_v4, %v2879_v43  ;;  %v2842_v26 = vmul.f32 %v3250_v6, %v5224_v34  ;;  %v2795_v46 = vpop.f32.mrb[31].mxu1 }
 0x4a4   : > { %v2910_v0 = vadd.f32 %v3559_v55, %v2878_v1  ;;  %v2841_v12 = vmul.f32 %v5224_v34, %v2795_v46 }
 0x4a5   : > { %2943 = vst.msk [vmem:[%s5239_s18 + $0xe8] sm:$0xff] %vm503_vm1, %v2911_v36  ;;  %v2881_v41 = vadd.f32 %v5229_v60, %v2842_v26 }
 0x4a6   : > { %2942 = vst.msk [vmem:[%s5239_s18 + $0xe0] sm:$0xff] %vm503_vm1, %v2910_v0  ;;  %v2880_v59 = vadd.f32 %v5229_v60, %v2841_v12 }
 0x4a7   : > { %v2913_v5 = vadd.f32 %v3560_v19, %v2881_v41 }
 0x4a8   : > { %v2912_v29 = vadd.f32 %v3561_v53, %v2880_v59 }
 0x4a9   : > { %2945 = vst.msk [vmem:[%s5239_s18 + $0xf8] sm:$0xff] %vm503_vm1, %v2913_v5 }
 0x4aa   : > { %2944 = vst.msk [vmem:[%s5239_s18 + $0xf0] sm:$0xff] %vm503_vm1, %v2912_v29 }
 0x4ab PF: > { %s26_s15 = sadd.s32 1, %s3568_s15  }
 0x4ac   : > { %p23_p4 = scmp.ge.s32.totalorder %s26_s15, 4  }
 0x4ae   :  { %25 = sbr.rel (!%p23_p4) target bundleno = 3 (0x3), region = 109 }

</bundles_post_ra>
